<compile_context>
chip_gen: v5e
topology: v5e:2x2
jax: 0.10.0
libtpu: 0.0.40
codegen_flags: <defaults>
</compile_context>

<pallas_src>
import numpy as np

import jax
import jax.numpy as jnp
from jax import lax
from jax.experimental import pallas as pl
from jax.experimental.pallas import tpu as pltpu

C1 = 0.01 ** 2
C2 = 0.03 ** 2


# ----------------------------------------------------------------------------
# Kernel 1: photometric map  (0.85 * mean_c SSIM + 0.15 * mean_c |x - y|)
# ----------------------------------------------------------------------------
def _make_photometric_kernel(C, H, W):
    inv9 = 1.0 / 9.0

    def kernel(tgt_ref, img_ref, out_ref):
        col = lax.broadcasted_iota(jnp.int32, (H, W), 1)
        row = lax.broadcasted_iota(jnp.int32, (H, W), 0)

        def pool(a):
            """Reflect-pad-1 + 3x3 box mean via XLU rolls + masked edge fix."""
            # --- lane (W) direction: circular 3-tap sum, then fix both edges
            #     with the exact reflected value (direction-agnostic).
            s = a + pltpu.roll(a, shift=1, axis=1) \
                  + pltpu.roll(a, shift=W - 1, axis=1)
            s = jnp.where(col == 0, a[:, 0:1] + 2.0 * a[:, 1:2], s)
            s = jnp.where(col == W - 1,
                          a[:, W - 1:W] + 2.0 * a[:, W - 2:W - 1], s)
            # --- sublane (H) direction.
            t = s + pltpu.roll(s, shift=1, axis=0) \
                  + pltpu.roll(s, shift=H - 1, axis=0)
            t = jnp.where(row == 0, s[0:1, :] + 2.0 * s[1:2, :], t)
            t = jnp.where(row == H - 1,
                          s[H - 1:H, :] + 2.0 * s[H - 2:H - 1, :], t)
            return t * inv9

        ssim_acc = jnp.zeros((H, W), jnp.float32)
        l1_acc = jnp.zeros((H, W), jnp.float32)
        for c in range(C):               # stream per channel: small live set
            xc = img_ref[0, 0, c].astype(jnp.float32)
            yc = tgt_ref[0, c].astype(jnp.float32)
            l1_acc = l1_acc + jnp.abs(xc - yc)

            mu_x = pool(xc)
            mu_y = pool(yc)
            sig_x = pool(xc * xc) - mu_x * mu_x
            sig_y = pool(yc * yc) - mu_y * mu_y
            sig_xy = pool(xc * yc) - mu_x * mu_y

            n = (2.0 * mu_x * mu_y + C1) * (2.0 * sig_xy + C2)
            d = (mu_x * mu_x + mu_y * mu_y + C1) * (sig_x + sig_y + C2)
            ssim_acc = ssim_acc + jnp.clip((1.0 - n / d) * 0.5, 0.0, 1.0)

        out_ref[0, 0, 0] = (0.85 / C) * ssim_acc + (0.15 / C) * l1_acc

    return kernel


def _photometric_maps(imgs, target):
    # imgs: (M, B, C, H, W), target: (B, C, H, W)  ->  (M, B, 1, H, W)
    # TODO(synk): for production widths that are not a multiple of 128, pad W
    # in this wrapper (moving the reflected-edge fix to the true edge column)
    # to keep stores lane-dense.
    # TODO(synk): for v7x at full production resolution, add an H-tile grid
    # axis with a 1-row halo instead of full-plane blocks.
    M, B, C, H, W = imgs.shape
    kernel = _make_photometric_kernel(C, H, W)
    return pl.pallas_call(
        kernel,
        out_shape=jax.ShapeDtypeStruct((M, B, 1, H, W), jnp.float32),
        grid_spec=pltpu.PrefetchScalarGridSpec(
            num_scalar_prefetch=0,
            grid=(B, M),
            in_specs=[
                # target block index depends only on b -> fetched once per b
                pl.BlockSpec((1, C, H, W), lambda b, m: (b, 0, 0, 0)),
                pl.BlockSpec((1, 1, C, H, W), lambda b, m: (m, b, 0, 0, 0)),
            ],
            out_specs=pl.BlockSpec((1, 1, 1, H, W),
                                   lambda b, m: (m, b, 0, 0, 0)),
        ),
        compiler_params=pltpu.CompilerParams(
            dimension_semantics=("parallel", "parallel")),
    )(target, imgs)


# ----------------------------------------------------------------------------
# Kernel 2: per-prediction selection / accumulation / SPP distillation
# ----------------------------------------------------------------------------
def _make_combine_kernel(num_preds, spp_rate):
    inv_n = 1.0 / num_preds

    def kernel(pred_loss_ref, ident_ref, hintsp_ref, hintsd_ref, depth_ref,
               out_ref, total, spp, d_best, r_min, dec_best):
        p = pl.program_id(2)       # 0: photometric/selection pass, 1: SPP pass
        i = pl.program_id(3)       # prediction index
        depth = depth_ref[0, 0, 0]             # (th, W) — used in both passes

        @pl.when(p == 0)
        def _pass0():
            # Hoisted single tile loads (previously re-read per branch).
            pred_l = pred_loss_ref[0, 0, 0]
            ident_l = ident_ref[0, 0]
            hd = hintsd_ref[0, 0]
            # Invalid-hint sentinel folded in-kernel (no extra XLA map op).
            hints_l = jnp.where(hd > 0.0, hintsp_ref[0, 0], 1000.0)

            # torch.min(dim=1) first-index tie-break: 0=pred, 1=ident, 2=hints
            sel1 = (ident_l < pred_l) & (ident_l <= hints_l)
            sel2 = (hints_l < pred_l) & (hints_l < ident_l)
            auto_mask = 1.0 - sel1.astype(jnp.float32)
            hints_mask = sel2.astype(jnp.float32)
            contrib = pred_l * auto_mask + \
                jnp.log(jnp.abs(hd - depth) + 1.0) * hints_mask

            @pl.when(i == 0)
            def _():
                total[...] = contrib
                spp[...] = jnp.zeros_like(spp)
                d_best[...] = depth
                r_min[...] = pred_l
                dec_best[...] = depth

            @pl.when(i != 0)
            def _():
                total[...] = total[...] + contrib

            # idx == 5: start tracking the encoder-side best (EPCDepth's
            # hard-coded 5-decoder-output convention, as in the PyTorch code).
            @pl.when(i == 5)
            def _():
                dec_best[...] = d_best[...]
                d_best[...] = depth
                r_min[...] = pred_l

            @pl.when((i != 0) & (i != 5))
            def _():
                better = pred_l < r_min[...]
                d_best[...] = jnp.where(better, depth, d_best[...])
                r_min[...] = jnp.minimum(pred_l, r_min[...])

        @pl.when(p == 1)
        def _pass1():
            def spp_term(best):
                # |1/best - 1/d| == |d - best| / (best * d): one reciprocal
                # instead of two per element.
                inv = pl.reciprocal(best * depth, approx=False)
                return jnp.log(jnp.abs((depth - best) * inv) + 1.0)

            if num_preds > 5:
                @pl.when(i < 5)
                def _():
                    spp[...] = spp[...] + spp_term(dec_best[...])

                @pl.when(i >= 5)
                def _():
                    spp[...] = spp[...] + spp_term(d_best[...])
            else:
                spp[...] = spp[...] + spp_term(d_best[...])

            # Final combine only on the last grid step of this (b, h) tile.
            @pl.when(i == num_preds - 1)
            def _():
                out_ref[0, 0] = total[...] * inv_n + \
                    (spp_rate * inv_n) * spp[...]

    return kernel


def _pick_h_tile(H, W, budget_bytes=24 << 20, planes=17):
    """H tile sized from a VMEM budget: ~ (6 streams x 2 buffers + 5 scratch)
    f32 planes of (th, W) per grid step.  Returns full H when it fits."""
    bytes_per_row = planes * W * 4
    cap = max(8, (budget_bytes // bytes_per_row) // 8 * 8)
    if H <= cap:
        return H
    for t in range(cap, 7, -8):          # largest multiple of 8 dividing H
        if H % t == 0:
            return t
    return H                             # fallback: full-H blocks


def _combine(pred_loss, ident_loss, hints_photo, hints_depth, depths, spp_rate):
    N, B, _, H, W = pred_loss.shape
    th = _pick_h_tile(H, W)
    nh = H // th
    kernel = _make_combine_kernel(N, float(spp_rate))
    return pl.pallas_call(
        kernel,
        out_shape=jax.ShapeDtypeStruct((B, 1, H, W), jnp.float32),
        grid_spec=pltpu.PrefetchScalarGridSpec(
            num_scalar_prefetch=0,
            grid=(B, nh, 2, N),
            in_specs=[
                # pred_loss is only read in pass 0; during pass 1 the block
                # index is pinned to N-1 so it is never re-DMAed.
                pl.BlockSpec((1, 1, 1, th, W),
                             lambda b, h, p, i:
                             (i * (1 - p) + (N - 1) * p, b, 0, h, 0)),
                pl.BlockSpec((1, 1, th, W), lambda b, h, p, i: (b, 0, h, 0)),
                pl.BlockSpec((1, 1, th, W), lambda b, h, p, i: (b, 0, h, 0)),
                pl.BlockSpec((1, 1, th, W), lambda b, h, p, i: (b, 0, h, 0)),
                pl.BlockSpec((1, 1, 1, th, W),
                             lambda b, h, p, i: (i, b, 0, h, 0)),
            ],
            out_specs=pl.BlockSpec((1, 1, th, W),
                                   lambda b, h, p, i: (b, 0, h, 0)),
            scratch_shapes=[pltpu.VMEM((th, W), jnp.float32)
                            for _ in range(5)],
        ),
        compiler_params=pltpu.CompilerParams(
            dimension_semantics=("parallel", "parallel",
                                 "arbitrary", "arbitrary")),
    )(pred_loss, ident_loss, hints_photo, hints_depth, depths)


# ----------------------------------------------------------------------------
# Full forward (dict plumbing of the PyTorch module done as plain-JAX glue)
# ----------------------------------------------------------------------------
def epcdepth_photo_loss(preds, pred_depths, target, ident, hints, hints_depth,
                        spp_rate=1.0):
    """preds: (N,B,C,H,W), pred_depths: (N,B,1,H,W), others (B,C,H,W)/(B,1,H,W)."""
    pred_loss = _photometric_maps(preds, target)             # (N, B, 1, H, W)
    # ident / hints handled with two small extra calls instead of
    # concatenating them into one (N+2, B, C, H, W) HBM stack.
    ident_loss = _photometric_maps(ident[None], target)[0]   # (B, 1, H, W)
    hints_photo = _photometric_maps(hints[None], target)[0]  # (B, 1, H, W)
    return _combine(pred_loss, ident_loss, hints_photo, hints_depth,
                    pred_depths, spp_rate)


# ----------------------------------------------------------------------------
# Pure-JAX reference (mirrors the PyTorch code) for verification
# ----------------------------------------------------------------------------
def _photometric_ref(pred, target):
    l1 = jnp.mean(jnp.abs(pred - target), axis=1, keepdims=True)
    H, W = pred.shape[2], pred.shape[3]
    x = jnp.pad(pred, ((0, 0), (0, 0), (1, 1), (1, 1)), mode="reflect")
    y = jnp.pad(target, ((0, 0), (0, 0), (1, 1), (1, 1)), mode="reflect")

    def pool(a):
        s = 0.0
        for di in range(3):
            for dj in range(3):
                s = s + a[:, :, di:di + H, dj:dj + W]
        return s / 9.0

    mu_x, mu_y = pool(x), pool(y)
    sig_x = pool(x * x) - mu_x ** 2
    sig_y = pool(y * y) - mu_y ** 2
    sig_xy = pool(x * y) - mu_x * mu_y
    n = (2 * mu_x * mu_y + C1) * (2 * sig_xy + C2)
    d = (mu_x ** 2 + mu_y ** 2 + C1) * (sig_x + sig_y + C2)
    ssim = jnp.clip((1 - n / d) / 2, 0.0, 1.0)
    return 0.85 * jnp.mean(ssim, axis=1, keepdims=True) + 0.15 * l1


def _forward_ref(preds, pred_depths, target, ident, hints, hints_depth, rate):
    N = preds.shape[0]
    hints_loss = _photometric_ref(hints, target)
    hints_loss = jnp.where(hints_depth > 0, hints_loss, 1000.0)
    ident_loss = _photometric_ref(ident, target)
    total = 0.0
    depth_best = dec_best = r_min = None
    for idx in range(N):
        pred_loss = _photometric_ref(preds[idx], target)
        depth = pred_depths[idx]
        stacked = jnp.concatenate([pred_loss, ident_loss, hints_loss], axis=1)
        sel = jnp.argmin(stacked, axis=1, keepdims=True)
        auto = (sel != 1).astype(jnp.float32)
        hmask = (sel == 2).astype(jnp.float32)
        total = total + pred_loss * auto + \
            jnp.log(jnp.abs(hints_depth - depth) + 1.0) * hmask
        if idx == 0:
            depth_best, r_min = depth, pred_loss
        elif idx == 5:
            dec_best, depth_best, r_min = depth_best, depth, pred_loss
        else:
            depth_best = jnp.where(pred_loss < r_min, depth, depth_best)
            r_min = jnp.minimum(pred_loss, r_min)
    total = total / N
    if dec_best is not None:
        enc_best = depth_best
    else:
        dec_best = depth_best
        enc_best = depth_best
    spp = 0.0
    for idx in range(N):
        best = dec_best if idx < 5 else enc_best
        spp = spp + jnp.log(jnp.abs(1.0 / best - 1.0 / pred_depths[idx]) + 1.0)
    return total + rate * spp / N


if __name__ == "__main__":
    key = jax.random.PRNGKey(0)
    N, B, Cc, H, W = 8, 2, 3, 16, 128
    ks = jax.random.split(key, 6)
    preds = jax.random.uniform(ks[0], (N, B, Cc, H, W), jnp.float32)
    target = jax.random.uniform(ks[1], (B, Cc, H, W), jnp.float32)
    ident = jax.random.uniform(ks[2], (B, Cc, H, W), jnp.float32)
    hints = jax.random.uniform(ks[3], (B, Cc, H, W), jnp.float32)
    pred_depths = jax.random.uniform(ks[4], (N, B, 1, H, W), jnp.float32,
                                     0.5, 2.0)
    # mixture of valid (>0) and invalid (<=0) depth hints
    hints_depth = jax.random.uniform(ks[5], (B, 1, H, W), jnp.float32,
                                     -0.5, 1.5)

    out = epcdepth_photo_loss(preds, pred_depths, target, ident, hints,
                              hints_depth, spp_rate=1.0)
    out = jax.block_until_ready(out)

    ref = _forward_ref(preds, pred_depths, target, ident, hints,
                       hints_depth, 1.0)
    np.testing.assert_allclose(np.asarray(out), np.asarray(ref),
                               rtol=1e-3, atol=1e-3)
    print("KERNEL_OK")
</pallas_src>

<mosaic_0001>
module attributes {stable_mosaic.version = 11 : i64} {
  func.func @kernel(%arg0: i32, %arg1: i32, %arg2: memref<1x3x16x128xf32, #tpu.memory_space<vmem>>, %arg3: memref<1x1x3x16x128xf32, #tpu.memory_space<vmem>>, %arg4: memref<1x1x1x16x128xf32, #tpu.memory_space<vmem>>) attributes {dimension_semantics = [#tpu.dimension_semantics<parallel>, #tpu.dimension_semantics<parallel>], iteration_bounds = array<i64: 2, 8>, scalar_prefetch = 0 : i64, scratch_operands = 0 : i64, tpu.core_type = #tpu.core_type<tc>, window_params = [{transform_indices = @transform_0, window_bounds = array<i64: 1, 3, 16, 128>}, {transform_indices = @transform_1, window_bounds = array<i64: 1, 1, 3, 16, 128>}, {transform_indices = @transform_2, window_bounds = array<i64: 1, 1, 1, 16, 128>}]} {
    %0 = tpu.iota {dimensions = array<i32: 1>} : vector<16x128xi32>
    %1 = tpu.iota {dimensions = array<i32: 0>} : vector<16x128xi32>
    %cst = arith.constant 0.000000e+00 : f32
    %2 = vector.broadcast %cst : f32 to vector<16x128xf32>
    %cst_0 = arith.constant 0.000000e+00 : f32
    %3 = vector.broadcast %cst_0 : f32 to vector<16x128xf32>
    %c0 = arith.constant 0 : index
    %c0_1 = arith.constant 0 : index
    %c0_2 = arith.constant 0 : index
    %c0_3 = arith.constant 0 : index
    %c0_4 = arith.constant 0 : index
    %4 = vector.load %arg3[%c0, %c0_1, %c0_2, %c0_3, %c0_4] : memref<1x1x3x16x128xf32, #tpu.memory_space<vmem>>, vector<1x1x1x16x128xf32>
    %5 = vector.shape_cast %4 : vector<1x1x1x16x128xf32> to vector<16x128xf32>
    %c0_5 = arith.constant 0 : index
    %c0_6 = arith.constant 0 : index
    %c0_7 = arith.constant 0 : index
    %c0_8 = arith.constant 0 : index
    %6 = vector.load %arg2[%c0_5, %c0_6, %c0_7, %c0_8] : memref<1x3x16x128xf32, #tpu.memory_space<vmem>>, vector<1x1x16x128xf32>
    %7 = vector.shape_cast %6 : vector<1x1x16x128xf32> to vector<16x128xf32>
    %8 = arith.subf %5, %7 : vector<16x128xf32>
    %9 = math.absf %8 : vector<16x128xf32>
    %10 = arith.addf %3, %9 : vector<16x128xf32>
    %c1_i32 = arith.constant 1 : i32
    %11 = tpu.dynamic_rotate %5 by %c1_i32 dim 1 : vector<16x128xf32>, i32 -> vector<16x128xf32>
    %12 = arith.addf %5, %11 : vector<16x128xf32>
    %c127_i32 = arith.constant 127 : i32
    %13 = tpu.dynamic_rotate %5 by %c127_i32 dim 1 : vector<16x128xf32>, i32 -> vector<16x128xf32>
    %14 = arith.addf %12, %13 : vector<16x128xf32>
    %c0_i32 = arith.constant 0 : i32
    %15 = vector.broadcast %c0_i32 : i32 to vector<16x128xi32>
    %16 = arith.cmpi eq, %0, %15 : vector<16x128xi32>
    %17 = vector.extract_strided_slice %5 {offsets = [0, 0], sizes = [16, 1], strides = [1, 1]} : vector<16x128xf32> to vector<16x1xf32>
    %18 = vector.extract_strided_slice %5 {offsets = [0, 1], sizes = [16, 1], strides = [1, 1]} : vector<16x128xf32> to vector<16x1xf32>
    %cst_9 = arith.constant 2.000000e+00 : f32
    %19 = vector.broadcast %cst_9 : f32 to vector<16x1xf32>
    %20 = arith.mulf %19, %18 : vector<16x1xf32>
    %21 = arith.addf %17, %20 : vector<16x1xf32>
    %22 = vector.shape_cast %21 : vector<16x1xf32> to vector<16x1xf32>
    %23 = vector.broadcast %22 : vector<16x1xf32> to vector<16x128xf32>
    %24 = arith.select %16, %23, %14 : vector<16x128xi1>, vector<16x128xf32>
    %c127_i32_10 = arith.constant 127 : i32
    %25 = vector.broadcast %c127_i32_10 : i32 to vector<16x128xi32>
    %26 = arith.cmpi eq, %0, %25 : vector<16x128xi32>
    %27 = vector.extract_strided_slice %5 {offsets = [0, 127], sizes = [16, 1], strides = [1, 1]} : vector<16x128xf32> to vector<16x1xf32>
    %28 = vector.extract_strided_slice %5 {offsets = [0, 126], sizes = [16, 1], strides = [1, 1]} : vector<16x128xf32> to vector<16x1xf32>
    %cst_11 = arith.constant 2.000000e+00 : f32
    %29 = vector.broadcast %cst_11 : f32 to vector<16x1xf32>
    %30 = arith.mulf %29, %28 : vector<16x1xf32>
    %31 = arith.addf %27, %30 : vector<16x1xf32>
    %32 = vector.shape_cast %31 : vector<16x1xf32> to vector<16x1xf32>
    %33 = vector.broadcast %32 : vector<16x1xf32> to vector<16x128xf32>
    %34 = arith.select %26, %33, %24 : vector<16x128xi1>, vector<16x128xf32>
    %c1_i32_12 = arith.constant 1 : i32
    %35 = tpu.dynamic_rotate %34 by %c1_i32_12 dim 0 : vector<16x128xf32>, i32 -> vector<16x128xf32>
    %36 = arith.addf %34, %35 : vector<16x128xf32>
    %c15_i32 = arith.constant 15 : i32
    %37 = tpu.dynamic_rotate %34 by %c15_i32 dim 0 : vector<16x128xf32>, i32 -> vector<16x128xf32>
    %38 = arith.addf %36, %37 : vector<16x128xf32>
    %c0_i32_13 = arith.constant 0 : i32
    %39 = vector.broadcast %c0_i32_13 : i32 to vector<16x128xi32>
    %40 = arith.cmpi eq, %1, %39 : vector<16x128xi32>
    %41 = vector.extract_strided_slice %34 {offsets = [0, 0], sizes = [1, 128], strides = [1, 1]} : vector<16x128xf32> to vector<1x128xf32>
    %42 = vector.extract_strided_slice %34 {offsets = [1, 0], sizes = [1, 128], strides = [1, 1]} : vector<16x128xf32> to vector<1x128xf32>
    %cst_14 = arith.constant 2.000000e+00 : f32
    %43 = vector.broadcast %cst_14 : f32 to vector<1x128xf32>
    %44 = arith.mulf %43, %42 : vector<1x128xf32>
    %45 = arith.addf %41, %44 : vector<1x128xf32>
    %46 = vector.shape_cast %45 : vector<1x128xf32> to vector<1x128xf32>
    %47 = vector.broadcast %46 : vector<1x128xf32> to vector<16x128xf32>
    %48 = arith.select %40, %47, %38 : vector<16x128xi1>, vector<16x128xf32>
    %c15_i32_15 = arith.constant 15 : i32
    %49 = vector.broadcast %c15_i32_15 : i32 to vector<16x128xi32>
    %50 = arith.cmpi eq, %1, %49 : vector<16x128xi32>
    %51 = vector.extract_strided_slice %34 {offsets = [15, 0], sizes = [1, 128], strides = [1, 1]} : vector<16x128xf32> to vector<1x128xf32>
    %52 = vector.extract_strided_slice %34 {offsets = [14, 0], sizes = [1, 128], strides = [1, 1]} : vector<16x128xf32> to vector<1x128xf32>
    %cst_16 = arith.constant 2.000000e+00 : f32
    %53 = vector.broadcast %cst_16 : f32 to vector<1x128xf32>
    %54 = arith.mulf %53, %52 : vector<1x128xf32>
    %55 = arith.addf %51, %54 : vector<1x128xf32>
    %56 = vector.shape_cast %55 : vector<1x128xf32> to vector<1x128xf32>
    %57 = vector.broadcast %56 : vector<1x128xf32> to vector<16x128xf32>
    %58 = arith.select %50, %57, %48 : vector<16x128xi1>, vector<16x128xf32>
    %cst_17 = arith.constant 0.111111112 : f32
    %59 = vector.broadcast %cst_17 : f32 to vector<16x128xf32>
    %60 = arith.mulf %58, %59 : vector<16x128xf32>
    %c1_i32_18 = arith.constant 1 : i32
    %61 = tpu.dynamic_rotate %7 by %c1_i32_18 dim 1 : vector<16x128xf32>, i32 -> vector<16x128xf32>
    %62 = arith.addf %7, %61 : vector<16x128xf32>
    %c127_i32_19 = arith.constant 127 : i32
    %63 = tpu.dynamic_rotate %7 by %c127_i32_19 dim 1 : vector<16x128xf32>, i32 -> vector<16x128xf32>
    %64 = arith.addf %62, %63 : vector<16x128xf32>
    %c0_i32_20 = arith.constant 0 : i32
    %65 = vector.broadcast %c0_i32_20 : i32 to vector<16x128xi32>
    %66 = arith.cmpi eq, %0, %65 : vector<16x128xi32>
    %67 = vector.extract_strided_slice %7 {offsets = [0, 0], sizes = [16, 1], strides = [1, 1]} : vector<16x128xf32> to vector<16x1xf32>
    %68 = vector.extract_strided_slice %7 {offsets = [0, 1], sizes = [16, 1], strides = [1, 1]} : vector<16x128xf32> to vector<16x1xf32>
    %cst_21 = arith.constant 2.000000e+00 : f32
    %69 = vector.broadcast %cst_21 : f32 to vector<16x1xf32>
    %70 = arith.mulf %69, %68 : vector<16x1xf32>
    %71 = arith.addf %67, %70 : vector<16x1xf32>
    %72 = vector.shape_cast %71 : vector<16x1xf32> to vector<16x1xf32>
    %73 = vector.broadcast %72 : vector<16x1xf32> to vector<16x128xf32>
    %74 = arith.select %66, %73, %64 : vector<16x128xi1>, vector<16x128xf32>
    %c127_i32_22 = arith.constant 127 : i32
    %75 = vector.broadcast %c127_i32_22 : i32 to vector<16x128xi32>
    %76 = arith.cmpi eq, %0, %75 : vector<16x128xi32>
    %77 = vector.extract_strided_slice %7 {offsets = [0, 127], sizes = [16, 1], strides = [1, 1]} : vector<16x128xf32> to vector<16x1xf32>
    %78 = vector.extract_strided_slice %7 {offsets = [0, 126], sizes = [16, 1], strides = [1, 1]} : vector<16x128xf32> to vector<16x1xf32>
    %cst_23 = arith.constant 2.000000e+00 : f32
    %79 = vector.broadcast %cst_23 : f32 to vector<16x1xf32>
    %80 = arith.mulf %79, %78 : vector<16x1xf32>
    %81 = arith.addf %77, %80 : vector<16x1xf32>
    %82 = vector.shape_cast %81 : vector<16x1xf32> to vector<16x1xf32>
    %83 = vector.broadcast %82 : vector<16x1xf32> to vector<16x128xf32>
    %84 = arith.select %76, %83, %74 : vector<16x128xi1>, vector<16x128xf32>
    %c1_i32_24 = arith.constant 1 : i32
    %85 = tpu.dynamic_rotate %84 by %c1_i32_24 dim 0 : vector<16x128xf32>, i32 -> vector<16x128xf32>
    %86 = arith.addf %84, %85 : vector<16x128xf32>
    %c15_i32_25 = arith.constant 15 : i32
    %87 = tpu.dynamic_rotate %84 by %c15_i32_25 dim 0 : vector<16x128xf32>, i32 -> vector<16x128xf32>
    %88 = arith.addf %86, %87 : vector<16x128xf32>
    %c0_i32_26 = arith.constant 0 : i32
    %89 = vector.broadcast %c0_i32_26 : i32 to vector<16x128xi32>
    %90 = arith.cmpi eq, %1, %89 : vector<16x128xi32>
    %91 = vector.extract_strided_slice %84 {offsets = [0, 0], sizes = [1, 128], strides = [1, 1]} : vector<16x128xf32> to vector<1x128xf32>
    %92 = vector.extract_strided_slice %84 {offsets = [1, 0], sizes = [1, 128], strides = [1, 1]} : vector<16x128xf32> to vector<1x128xf32>
    %cst_27 = arith.constant 2.000000e+00 : f32
    %93 = vector.broadcast %cst_27 : f32 to vector<1x128xf32>
    %94 = arith.mulf %93, %92 : vector<1x128xf32>
    %95 = arith.addf %91, %94 : vector<1x128xf32>
    %96 = vector.shape_cast %95 : vector<1x128xf32> to vector<1x128xf32>
    %97 = vector.broadcast %96 : vector<1x128xf32> to vector<16x128xf32>
    %98 = arith.select %90, %97, %88 : vector<16x128xi1>, vector<16x128xf32>
    %c15_i32_28 = arith.constant 15 : i32
    %99 = vector.broadcast %c15_i32_28 : i32 to vector<16x128xi32>
    %100 = arith.cmpi eq, %1, %99 : vector<16x128xi32>
    %101 = vector.extract_strided_slice %84 {offsets = [15, 0], sizes = [1, 128], strides = [1, 1]} : vector<16x128xf32> to vector<1x128xf32>
    %102 = vector.extract_strided_slice %84 {offsets = [14, 0], sizes = [1, 128], strides = [1, 1]} : vector<16x128xf32> to vector<1x128xf32>
    %cst_29 = arith.constant 2.000000e+00 : f32
    %103 = vector.broadcast %cst_29 : f32 to vector<1x128xf32>
    %104 = arith.mulf %103, %102 : vector<1x128xf32>
    %105 = arith.addf %101, %104 : vector<1x128xf32>
    %106 = vector.shape_cast %105 : vector<1x128xf32> to vector<1x128xf32>
    %107 = vector.broadcast %106 : vector<1x128xf32> to vector<16x128xf32>
    %108 = arith.select %100, %107, %98 : vector<16x128xi1>, vector<16x128xf32>
    %cst_30 = arith.constant 0.111111112 : f32
    %109 = vector.broadcast %cst_30 : f32 to vector<16x128xf32>
    %110 = arith.mulf %108, %109 : vector<16x128xf32>
    %111 = arith.mulf %5, %5 : vector<16x128xf32>
    %c1_i32_31 = arith.constant 1 : i32
    %112 = tpu.dynamic_rotate %111 by %c1_i32_31 dim 1 : vector<16x128xf32>, i32 -> vector<16x128xf32>
    %113 = arith.addf %111, %112 : vector<16x128xf32>
    %c127_i32_32 = arith.constant 127 : i32
    %114 = tpu.dynamic_rotate %111 by %c127_i32_32 dim 1 : vector<16x128xf32>, i32 -> vector<16x128xf32>
    %115 = arith.addf %113, %114 : vector<16x128xf32>
    %c0_i32_33 = arith.constant 0 : i32
    %116 = vector.broadcast %c0_i32_33 : i32 to vector<16x128xi32>
    %117 = arith.cmpi eq, %0, %116 : vector<16x128xi32>
    %118 = vector.extract_strided_slice %111 {offsets = [0, 0], sizes = [16, 1], strides = [1, 1]} : vector<16x128xf32> to vector<16x1xf32>
    %119 = vector.extract_strided_slice %111 {offsets = [0, 1], sizes = [16, 1], strides = [1, 1]} : vector<16x128xf32> to vector<16x1xf32>
    %cst_34 = arith.constant 2.000000e+00 : f32
    %120 = vector.broadcast %cst_34 : f32 to vector<16x1xf32>
    %121 = arith.mulf %120, %119 : vector<16x1xf32>
    %122 = arith.addf %118, %121 : vector<16x1xf32>
    %123 = vector.shape_cast %122 : vector<16x1xf32> to vector<16x1xf32>
    %124 = vector.broadcast %123 : vector<16x1xf32> to vector<16x128xf32>
    %125 = arith.select %117, %124, %115 : vector<16x128xi1>, vector<16x128xf32>
    %c127_i32_35 = arith.constant 127 : i32
    %126 = vector.broadcast %c127_i32_35 : i32 to vector<16x128xi32>
    %127 = arith.cmpi eq, %0, %126 : vector<16x128xi32>
    %128 = vector.extract_strided_slice %111 {offsets = [0, 127], sizes = [16, 1], strides = [1, 1]} : vector<16x128xf32> to vector<16x1xf32>
    %129 = vector.extract_strided_slice %111 {offsets = [0, 126], sizes = [16, 1], strides = [1, 1]} : vector<16x128xf32> to vector<16x1xf32>
    %cst_36 = arith.constant 2.000000e+00 : f32
    %130 = vector.broadcast %cst_36 : f32 to vector<16x1xf32>
    %131 = arith.mulf %130, %129 : vector<16x1xf32>
    %132 = arith.addf %128, %131 : vector<16x1xf32>
    %133 = vector.shape_cast %132 : vector<16x1xf32> to vector<16x1xf32>
    %134 = vector.broadcast %133 : vector<16x1xf32> to vector<16x128xf32>
    %135 = arith.select %127, %134, %125 : vector<16x128xi1>, vector<16x128xf32>
    %c1_i32_37 = arith.constant 1 : i32
    %136 = tpu.dynamic_rotate %135 by %c1_i32_37 dim 0 : vector<16x128xf32>, i32 -> vector<16x128xf32>
    %137 = arith.addf %135, %136 : vector<16x128xf32>
    %c15_i32_38 = arith.constant 15 : i32
    %138 = tpu.dynamic_rotate %135 by %c15_i32_38 dim 0 : vector<16x128xf32>, i32 -> vector<16x128xf32>
    %139 = arith.addf %137, %138 : vector<16x128xf32>
    %c0_i32_39 = arith.constant 0 : i32
    %140 = vector.broadcast %c0_i32_39 : i32 to vector<16x128xi32>
    %141 = arith.cmpi eq, %1, %140 : vector<16x128xi32>
    %142 = vector.extract_strided_slice %135 {offsets = [0, 0], sizes = [1, 128], strides = [1, 1]} : vector<16x128xf32> to vector<1x128xf32>
    %143 = vector.extract_strided_slice %135 {offsets = [1, 0], sizes = [1, 128], strides = [1, 1]} : vector<16x128xf32> to vector<1x128xf32>
    %cst_40 = arith.constant 2.000000e+00 : f32
    %144 = vector.broadcast %cst_40 : f32 to vector<1x128xf32>
    %145 = arith.mulf %144, %143 : vector<1x128xf32>
    %146 = arith.addf %142, %145 : vector<1x128xf32>
    %147 = vector.shape_cast %146 : vector<1x128xf32> to vector<1x128xf32>
    %148 = vector.broadcast %147 : vector<1x128xf32> to vector<16x128xf32>
    %149 = arith.select %141, %148, %139 : vector<16x128xi1>, vector<16x128xf32>
    %c15_i32_41 = arith.constant 15 : i32
    %150 = vector.broadcast %c15_i32_41 : i32 to vector<16x128xi32>
    %151 = arith.cmpi eq, %1, %150 : vector<16x128xi32>
    %152 = vector.extract_strided_slice %135 {offsets = [15, 0], sizes = [1, 128], strides = [1, 1]} : vector<16x128xf32> to vector<1x128xf32>
    %153 = vector.extract_strided_slice %135 {offsets = [14, 0], sizes = [1, 128], strides = [1, 1]} : vector<16x128xf32> to vector<1x128xf32>
    %cst_42 = arith.constant 2.000000e+00 : f32
    %154 = vector.broadcast %cst_42 : f32 to vector<1x128xf32>
    %155 = arith.mulf %154, %153 : vector<1x128xf32>
    %156 = arith.addf %152, %155 : vector<1x128xf32>
    %157 = vector.shape_cast %156 : vector<1x128xf32> to vector<1x128xf32>
    %158 = vector.broadcast %157 : vector<1x128xf32> to vector<16x128xf32>
    %159 = arith.select %151, %158, %149 : vector<16x128xi1>, vector<16x128xf32>
    %cst_43 = arith.constant 0.111111112 : f32
    %160 = vector.broadcast %cst_43 : f32 to vector<16x128xf32>
    %161 = arith.mulf %159, %160 : vector<16x128xf32>
    %162 = arith.mulf %60, %60 : vector<16x128xf32>
    %163 = arith.subf %161, %162 : vector<16x128xf32>
    %164 = arith.mulf %7, %7 : vector<16x128xf32>
    %c1_i32_44 = arith.constant 1 : i32
    %165 = tpu.dynamic_rotate %164 by %c1_i32_44 dim 1 : vector<16x128xf32>, i32 -> vector<16x128xf32>
    %166 = arith.addf %164, %165 : vector<16x128xf32>
    %c127_i32_45 = arith.constant 127 : i32
    %167 = tpu.dynamic_rotate %164 by %c127_i32_45 dim 1 : vector<16x128xf32>, i32 -> vector<16x128xf32>
    %168 = arith.addf %166, %167 : vector<16x128xf32>
    %c0_i32_46 = arith.constant 0 : i32
    %169 = vector.broadcast %c0_i32_46 : i32 to vector<16x128xi32>
    %170 = arith.cmpi eq, %0, %169 : vector<16x128xi32>
    %171 = vector.extract_strided_slice %164 {offsets = [0, 0], sizes = [16, 1], strides = [1, 1]} : vector<16x128xf32> to vector<16x1xf32>
    %172 = vector.extract_strided_slice %164 {offsets = [0, 1], sizes = [16, 1], strides = [1, 1]} : vector<16x128xf32> to vector<16x1xf32>
    %cst_47 = arith.constant 2.000000e+00 : f32
    %173 = vector.broadcast %cst_47 : f32 to vector<16x1xf32>
    %174 = arith.mulf %173, %172 : vector<16x1xf32>
    %175 = arith.addf %171, %174 : vector<16x1xf32>
    %176 = vector.shape_cast %175 : vector<16x1xf32> to vector<16x1xf32>
    %177 = vector.broadcast %176 : vector<16x1xf32> to vector<16x128xf32>
    %178 = arith.select %170, %177, %168 : vector<16x128xi1>, vector<16x128xf32>
    %c127_i32_48 = arith.constant 127 : i32
    %179 = vector.broadcast %c127_i32_48 : i32 to vector<16x128xi32>
    %180 = arith.cmpi eq, %0, %179 : vector<16x128xi32>
    %181 = vector.extract_strided_slice %164 {offsets = [0, 127], sizes = [16, 1], strides = [1, 1]} : vector<16x128xf32> to vector<16x1xf32>
    %182 = vector.extract_strided_slice %164 {offsets = [0, 126], sizes = [16, 1], strides = [1, 1]} : vector<16x128xf32> to vector<16x1xf32>
    %cst_49 = arith.constant 2.000000e+00 : f32
    %183 = vector.broadcast %cst_49 : f32 to vector<16x1xf32>
    %184 = arith.mulf %183, %182 : vector<16x1xf32>
    %185 = arith.addf %181, %184 : vector<16x1xf32>
    %186 = vector.shape_cast %185 : vector<16x1xf32> to vector<16x1xf32>
    %187 = vector.broadcast %186 : vector<16x1xf32> to vector<16x128xf32>
    %188 = arith.select %180, %187, %178 : vector<16x128xi1>, vector<16x128xf32>
    %c1_i32_50 = arith.constant 1 : i32
    %189 = tpu.dynamic_rotate %188 by %c1_i32_50 dim 0 : vector<16x128xf32>, i32 -> vector<16x128xf32>
    %190 = arith.addf %188, %189 : vector<16x128xf32>
    %c15_i32_51 = arith.constant 15 : i32
    %191 = tpu.dynamic_rotate %188 by %c15_i32_51 dim 0 : vector<16x128xf32>, i32 -> vector<16x128xf32>
    %192 = arith.addf %190, %191 : vector<16x128xf32>
    %c0_i32_52 = arith.constant 0 : i32
    %193 = vector.broadcast %c0_i32_52 : i32 to vector<16x128xi32>
    %194 = arith.cmpi eq, %1, %193 : vector<16x128xi32>
    %195 = vector.extract_strided_slice %188 {offsets = [0, 0], sizes = [1, 128], strides = [1, 1]} : vector<16x128xf32> to vector<1x128xf32>
    %196 = vector.extract_strided_slice %188 {offsets = [1, 0], sizes = [1, 128], strides = [1, 1]} : vector<16x128xf32> to vector<1x128xf32>
    %cst_53 = arith.constant 2.000000e+00 : f32
    %197 = vector.broadcast %cst_53 : f32 to vector<1x128xf32>
    %198 = arith.mulf %197, %196 : vector<1x128xf32>
    %199 = arith.addf %195, %198 : vector<1x128xf32>
    %200 = vector.shape_cast %199 : vector<1x128xf32> to vector<1x128xf32>
    %201 = vector.broadcast %200 : vector<1x128xf32> to vector<16x128xf32>
    %202 = arith.select %194, %201, %192 : vector<16x128xi1>, vector<16x128xf32>
    %c15_i32_54 = arith.constant 15 : i32
    %203 = vector.broadcast %c15_i32_54 : i32 to vector<16x128xi32>
    %204 = arith.cmpi eq, %1, %203 : vector<16x128xi32>
    %205 = vector.extract_strided_slice %188 {offsets = [15, 0], sizes = [1, 128], strides = [1, 1]} : vector<16x128xf32> to vector<1x128xf32>
    %206 = vector.extract_strided_slice %188 {offsets = [14, 0], sizes = [1, 128], strides = [1, 1]} : vector<16x128xf32> to vector<1x128xf32>
    %cst_55 = arith.constant 2.000000e+00 : f32
    %207 = vector.broadcast %cst_55 : f32 to vector<1x128xf32>
    %208 = arith.mulf %207, %206 : vector<1x128xf32>
    %209 = arith.addf %205, %208 : vector<1x128xf32>
    %210 = vector.shape_cast %209 : vector<1x128xf32> to vector<1x128xf32>
    %211 = vector.broadcast %210 : vector<1x128xf32> to vector<16x128xf32>
    %212 = arith.select %204, %211, %202 : vector<16x128xi1>, vector<16x128xf32>
    %cst_56 = arith.constant 0.111111112 : f32
    %213 = vector.broadcast %cst_56 : f32 to vector<16x128xf32>
    %214 = arith.mulf %212, %213 : vector<16x128xf32>
    %215 = arith.mulf %110, %110 : vector<16x128xf32>
    %216 = arith.subf %214, %215 : vector<16x128xf32>
    %217 = arith.mulf %5, %7 : vector<16x128xf32>
    %c1_i32_57 = arith.constant 1 : i32
    %218 = tpu.dynamic_rotate %217 by %c1_i32_57 dim 1 : vector<16x128xf32>, i32 -> vector<16x128xf32>
    %219 = arith.addf %217, %218 : vector<16x128xf32>
    %c127_i32_58 = arith.constant 127 : i32
    %220 = tpu.dynamic_rotate %217 by %c127_i32_58 dim 1 : vector<16x128xf32>, i32 -> vector<16x128xf32>
    %221 = arith.addf %219, %220 : vector<16x128xf32>
    %c0_i32_59 = arith.constant 0 : i32
    %222 = vector.broadcast %c0_i32_59 : i32 to vector<16x128xi32>
    %223 = arith.cmpi eq, %0, %222 : vector<16x128xi32>
    %224 = vector.extract_strided_slice %217 {offsets = [0, 0], sizes = [16, 1], strides = [1, 1]} : vector<16x128xf32> to vector<16x1xf32>
    %225 = vector.extract_strided_slice %217 {offsets = [0, 1], sizes = [16, 1], strides = [1, 1]} : vector<16x128xf32> to vector<16x1xf32>
    %cst_60 = arith.constant 2.000000e+00 : f32
    %226 = vector.broadcast %cst_60 : f32 to vector<16x1xf32>
    %227 = arith.mulf %226, %225 : vector<16x1xf32>
    %228 = arith.addf %224, %227 : vector<16x1xf32>
    %229 = vector.shape_cast %228 : vector<16x1xf32> to vector<16x1xf32>
    %230 = vector.broadcast %229 : vector<16x1xf32> to vector<16x128xf32>
    %231 = arith.select %223, %230, %221 : vector<16x128xi1>, vector<16x128xf32>
    %c127_i32_61 = arith.constant 127 : i32
    %232 = vector.broadcast %c127_i32_61 : i32 to vector<16x128xi32>
    %233 = arith.cmpi eq, %0, %232 : vector<16x128xi32>
    %234 = vector.extract_strided_slice %217 {offsets = [0, 127], sizes = [16, 1], strides = [1, 1]} : vector<16x128xf32> to vector<16x1xf32>
    %235 = vector.extract_strided_slice %217 {offsets = [0, 126], sizes = [16, 1], strides = [1, 1]} : vector<16x128xf32> to vector<16x1xf32>
    %cst_62 = arith.constant 2.000000e+00 : f32
    %236 = vector.broadcast %cst_62 : f32 to vector<16x1xf32>
    %237 = arith.mulf %236, %235 : vector<16x1xf32>
    %238 = arith.addf %234, %237 : vector<16x1xf32>
    %239 = vector.shape_cast %238 : vector<16x1xf32> to vector<16x1xf32>
    %240 = vector.broadcast %239 : vector<16x1xf32> to vector<16x128xf32>
    %241 = arith.select %233, %240, %231 : vector<16x128xi1>, vector<16x128xf32>
    %c1_i32_63 = arith.constant 1 : i32
    %242 = tpu.dynamic_rotate %241 by %c1_i32_63 dim 0 : vector<16x128xf32>, i32 -> vector<16x128xf32>
    %243 = arith.addf %241, %242 : vector<16x128xf32>
    %c15_i32_64 = arith.constant 15 : i32
    %244 = tpu.dynamic_rotate %241 by %c15_i32_64 dim 0 : vector<16x128xf32>, i32 -> vector<16x128xf32>
    %245 = arith.addf %243, %244 : vector<16x128xf32>
    %c0_i32_65 = arith.constant 0 : i32
    %246 = vector.broadcast %c0_i32_65 : i32 to vector<16x128xi32>
    %247 = arith.cmpi eq, %1, %246 : vector<16x128xi32>
    %248 = vector.extract_strided_slice %241 {offsets = [0, 0], sizes = [1, 128], strides = [1, 1]} : vector<16x128xf32> to vector<1x128xf32>
    %249 = vector.extract_strided_slice %241 {offsets = [1, 0], sizes = [1, 128], strides = [1, 1]} : vector<16x128xf32> to vector<1x128xf32>
    %cst_66 = arith.constant 2.000000e+00 : f32
    %250 = vector.broadcast %cst_66 : f32 to vector<1x128xf32>
    %251 = arith.mulf %250, %249 : vector<1x128xf32>
    %252 = arith.addf %248, %251 : vector<1x128xf32>
    %253 = vector.shape_cast %252 : vector<1x128xf32> to vector<1x128xf32>
    %254 = vector.broadcast %253 : vector<1x128xf32> to vector<16x128xf32>
    %255 = arith.select %247, %254, %245 : vector<16x128xi1>, vector<16x128xf32>
    %c15_i32_67 = arith.constant 15 : i32
    %256 = vector.broadcast %c15_i32_67 : i32 to vector<16x128xi32>
    %257 = arith.cmpi eq, %1, %256 : vector<16x128xi32>
    %258 = vector.extract_strided_slice %241 {offsets = [15, 0], sizes = [1, 128], strides = [1, 1]} : vector<16x128xf32> to vector<1x128xf32>
    %259 = vector.extract_strided_slice %241 {offsets = [14, 0], sizes = [1, 128], strides = [1, 1]} : vector<16x128xf32> to vector<1x128xf32>
    %cst_68 = arith.constant 2.000000e+00 : f32
    %260 = vector.broadcast %cst_68 : f32 to vector<1x128xf32>
    %261 = arith.mulf %260, %259 : vector<1x128xf32>
    %262 = arith.addf %258, %261 : vector<1x128xf32>
    %263 = vector.shape_cast %262 : vector<1x128xf32> to vector<1x128xf32>
    %264 = vector.broadcast %263 : vector<1x128xf32> to vector<16x128xf32>
    %265 = arith.select %257, %264, %255 : vector<16x128xi1>, vector<16x128xf32>
    %cst_69 = arith.constant 0.111111112 : f32
    %266 = vector.broadcast %cst_69 : f32 to vector<16x128xf32>
    %267 = arith.mulf %265, %266 : vector<16x128xf32>
    %268 = arith.mulf %60, %110 : vector<16x128xf32>
    %269 = arith.subf %267, %268 : vector<16x128xf32>
    %cst_70 = arith.constant 2.000000e+00 : f32
    %270 = vector.broadcast %cst_70 : f32 to vector<16x128xf32>
    %271 = arith.mulf %270, %60 : vector<16x128xf32>
    %272 = arith.mulf %271, %110 : vector<16x128xf32>
    %cst_71 = arith.constant 9.99999974E-5 : f32
    %273 = vector.broadcast %cst_71 : f32 to vector<16x128xf32>
    %274 = arith.addf %272, %273 : vector<16x128xf32>
    %cst_72 = arith.constant 2.000000e+00 : f32
    %275 = vector.broadcast %cst_72 : f32 to vector<16x128xf32>
    %276 = arith.mulf %275, %269 : vector<16x128xf32>
    %cst_73 = arith.constant 8.99999984E-4 : f32
    %277 = vector.broadcast %cst_73 : f32 to vector<16x128xf32>
    %278 = arith.addf %276, %277 : vector<16x128xf32>
    %279 = arith.mulf %274, %278 : vector<16x128xf32>
    %280 = arith.mulf %60, %60 : vector<16x128xf32>
    %281 = arith.mulf %110, %110 : vector<16x128xf32>
    %282 = arith.addf %280, %281 : vector<16x128xf32>
    %cst_74 = arith.constant 9.99999974E-5 : f32
    %283 = vector.broadcast %cst_74 : f32 to vector<16x128xf32>
    %284 = arith.addf %282, %283 : vector<16x128xf32>
    %285 = arith.addf %163, %216 : vector<16x128xf32>
    %cst_75 = arith.constant 8.99999984E-4 : f32
    %286 = vector.broadcast %cst_75 : f32 to vector<16x128xf32>
    %287 = arith.addf %285, %286 : vector<16x128xf32>
    %288 = arith.mulf %284, %287 : vector<16x128xf32>
    %289 = arith.divf %279, %288 : vector<16x128xf32>
    %cst_76 = arith.constant 1.000000e+00 : f32
    %290 = vector.broadcast %cst_76 : f32 to vector<16x128xf32>
    %291 = arith.subf %290, %289 : vector<16x128xf32>
    %cst_77 = arith.constant 5.000000e-01 : f32
    %292 = vector.broadcast %cst_77 : f32 to vector<16x128xf32>
    %293 = arith.mulf %291, %292 : vector<16x128xf32>
    %cst_78 = arith.constant 0.000000e+00 : f32
    %cst_79 = arith.constant 1.000000e+00 : f32
    %294 = vector.broadcast %cst_78 : f32 to vector<16x128xf32>
    %295 = arith.maximumf %294, %293 : vector<16x128xf32>
    %296 = vector.broadcast %cst_79 : f32 to vector<16x128xf32>
    %297 = arith.minimumf %296, %295 : vector<16x128xf32>
    %298 = arith.addf %2, %297 : vector<16x128xf32>
    %c0_80 = arith.constant 0 : index
    %c0_81 = arith.constant 0 : index
    %c1 = arith.constant 1 : index
    %c0_82 = arith.constant 0 : index
    %c0_83 = arith.constant 0 : index
    %299 = vector.load %arg3[%c0_80, %c0_81, %c1, %c0_82, %c0_83] : memref<1x1x3x16x128xf32, #tpu.memory_space<vmem>>, vector<1x1x1x16x128xf32>
    %300 = vector.shape_cast %299 : vector<1x1x1x16x128xf32> to vector<16x128xf32>
    %c0_84 = arith.constant 0 : index
    %c1_85 = arith.constant 1 : index
    %c0_86 = arith.constant 0 : index
    %c0_87 = arith.constant 0 : index
    %301 = vector.load %arg2[%c0_84, %c1_85, %c0_86, %c0_87] : memref<1x3x16x128xf32, #tpu.memory_space<vmem>>, vector<1x1x16x128xf32>
    %302 = vector.shape_cast %301 : vector<1x1x16x128xf32> to vector<16x128xf32>
    %303 = arith.subf %300, %302 : vector<16x128xf32>
    %304 = math.absf %303 : vector<16x128xf32>
    %305 = arith.addf %10, %304 : vector<16x128xf32>
    %c1_i32_88 = arith.constant 1 : i32
    %306 = tpu.dynamic_rotate %300 by %c1_i32_88 dim 1 : vector<16x128xf32>, i32 -> vector<16x128xf32>
    %307 = arith.addf %300, %306 : vector<16x128xf32>
    %c127_i32_89 = arith.constant 127 : i32
    %308 = tpu.dynamic_rotate %300 by %c127_i32_89 dim 1 : vector<16x128xf32>, i32 -> vector<16x128xf32>
    %309 = arith.addf %307, %308 : vector<16x128xf32>
    %c0_i32_90 = arith.constant 0 : i32
    %310 = vector.broadcast %c0_i32_90 : i32 to vector<16x128xi32>
    %311 = arith.cmpi eq, %0, %310 : vector<16x128xi32>
    %312 = vector.extract_strided_slice %300 {offsets = [0, 0], sizes = [16, 1], strides = [1, 1]} : vector<16x128xf32> to vector<16x1xf32>
    %313 = vector.extract_strided_slice %300 {offsets = [0, 1], sizes = [16, 1], strides = [1, 1]} : vector<16x128xf32> to vector<16x1xf32>
    %cst_91 = arith.constant 2.000000e+00 : f32
    %314 = vector.broadcast %cst_91 : f32 to vector<16x1xf32>
    %315 = arith.mulf %314, %313 : vector<16x1xf32>
    %316 = arith.addf %312, %315 : vector<16x1xf32>
    %317 = vector.shape_cast %316 : vector<16x1xf32> to vector<16x1xf32>
    %318 = vector.broadcast %317 : vector<16x1xf32> to vector<16x128xf32>
    %319 = arith.select %311, %318, %309 : vector<16x128xi1>, vector<16x128xf32>
    %c127_i32_92 = arith.constant 127 : i32
    %320 = vector.broadcast %c127_i32_92 : i32 to vector<16x128xi32>
    %321 = arith.cmpi eq, %0, %320 : vector<16x128xi32>
    %322 = vector.extract_strided_slice %300 {offsets = [0, 127], sizes = [16, 1], strides = [1, 1]} : vector<16x128xf32> to vector<16x1xf32>
    %323 = vector.extract_strided_slice %300 {offsets = [0, 126], sizes = [16, 1], strides = [1, 1]} : vector<16x128xf32> to vector<16x1xf32>
    %cst_93 = arith.constant 2.000000e+00 : f32
    %324 = vector.broadcast %cst_93 : f32 to vector<16x1xf32>
    %325 = arith.mulf %324, %323 : vector<16x1xf32>
    %326 = arith.addf %322, %325 : vector<16x1xf32>
    %327 = vector.shape_cast %326 : vector<16x1xf32> to vector<16x1xf32>
    %328 = vector.broadcast %327 : vector<16x1xf32> to vector<16x128xf32>
    %329 = arith.select %321, %328, %319 : vector<16x128xi1>, vector<16x128xf32>
    %c1_i32_94 = arith.constant 1 : i32
    %330 = tpu.dynamic_rotate %329 by %c1_i32_94 dim 0 : vector<16x128xf32>, i32 -> vector<16x128xf32>
    %331 = arith.addf %329, %330 : vector<16x128xf32>
    %c15_i32_95 = arith.constant 15 : i32
    %332 = tpu.dynamic_rotate %329 by %c15_i32_95 dim 0 : vector<16x128xf32>, i32 -> vector<16x128xf32>
    %333 = arith.addf %331, %332 : vector<16x128xf32>
    %c0_i32_96 = arith.constant 0 : i32
    %334 = vector.broadcast %c0_i32_96 : i32 to vector<16x128xi32>
    %335 = arith.cmpi eq, %1, %334 : vector<16x128xi32>
    %336 = vector.extract_strided_slice %329 {offsets = [0, 0], sizes = [1, 128], strides = [1, 1]} : vector<16x128xf32> to vector<1x128xf32>
    %337 = vector.extract_strided_slice %329 {offsets = [1, 0], sizes = [1, 128], strides = [1, 1]} : vector<16x128xf32> to vector<1x128xf32>
    %cst_97 = arith.constant 2.000000e+00 : f32
    %338 = vector.broadcast %cst_97 : f32 to vector<1x128xf32>
    %339 = arith.mulf %338, %337 : vector<1x128xf32>
    %340 = arith.addf %336, %339 : vector<1x128xf32>
    %341 = vector.shape_cast %340 : vector<1x128xf32> to vector<1x128xf32>
    %342 = vector.broadcast %341 : vector<1x128xf32> to vector<16x128xf32>
    %343 = arith.select %335, %342, %333 : vector<16x128xi1>, vector<16x128xf32>
    %c15_i32_98 = arith.constant 15 : i32
    %344 = vector.broadcast %c15_i32_98 : i32 to vector<16x128xi32>
    %345 = arith.cmpi eq, %1, %344 : vector<16x128xi32>
    %346 = vector.extract_strided_slice %329 {offsets = [15, 0], sizes = [1, 128], strides = [1, 1]} : vector<16x128xf32> to vector<1x128xf32>
    %347 = vector.extract_strided_slice %329 {offsets = [14, 0], sizes = [1, 128], strides = [1, 1]} : vector<16x128xf32> to vector<1x128xf32>
    %cst_99 = arith.constant 2.000000e+00 : f32
    %348 = vector.broadcast %cst_99 : f32 to vector<1x128xf32>
    %349 = arith.mulf %348, %347 : vector<1x128xf32>
    %350 = arith.addf %346, %349 : vector<1x128xf32>
    %351 = vector.shape_cast %350 : vector<1x128xf32> to vector<1x128xf32>
    %352 = vector.broadcast %351 : vector<1x128xf32> to vector<16x128xf32>
    %353 = arith.select %345, %352, %343 : vector<16x128xi1>, vector<16x128xf32>
    %cst_100 = arith.constant 0.111111112 : f32
    %354 = vector.broadcast %cst_100 : f32 to vector<16x128xf32>
    %355 = arith.mulf %353, %354 : vector<16x128xf32>
    %c1_i32_101 = arith.constant 1 : i32
    %356 = tpu.dynamic_rotate %302 by %c1_i32_101 dim 1 : vector<16x128xf32>, i32 -> vector<16x128xf32>
    %357 = arith.addf %302, %356 : vector<16x128xf32>
    %c127_i32_102 = arith.constant 127 : i32
    %358 = tpu.dynamic_rotate %302 by %c127_i32_102 dim 1 : vector<16x128xf32>, i32 -> vector<16x128xf32>
    %359 = arith.addf %357, %358 : vector<16x128xf32>
    %c0_i32_103 = arith.constant 0 : i32
    %360 = vector.broadcast %c0_i32_103 : i32 to vector<16x128xi32>
    %361 = arith.cmpi eq, %0, %360 : vector<16x128xi32>
    %362 = vector.extract_strided_slice %302 {offsets = [0, 0], sizes = [16, 1], strides = [1, 1]} : vector<16x128xf32> to vector<16x1xf32>
    %363 = vector.extract_strided_slice %302 {offsets = [0, 1], sizes = [16, 1], strides = [1, 1]} : vector<16x128xf32> to vector<16x1xf32>
    %cst_104 = arith.constant 2.000000e+00 : f32
    %364 = vector.broadcast %cst_104 : f32 to vector<16x1xf32>
    %365 = arith.mulf %364, %363 : vector<16x1xf32>
    %366 = arith.addf %362, %365 : vector<16x1xf32>
    %367 = vector.shape_cast %366 : vector<16x1xf32> to vector<16x1xf32>
    %368 = vector.broadcast %367 : vector<16x1xf32> to vector<16x128xf32>
    %369 = arith.select %361, %368, %359 : vector<16x128xi1>, vector<16x128xf32>
    %c127_i32_105 = arith.constant 127 : i32
    %370 = vector.broadcast %c127_i32_105 : i32 to vector<16x128xi32>
    %371 = arith.cmpi eq, %0, %370 : vector<16x128xi32>
    %372 = vector.extract_strided_slice %302 {offsets = [0, 127], sizes = [16, 1], strides = [1, 1]} : vector<16x128xf32> to vector<16x1xf32>
    %373 = vector.extract_strided_slice %302 {offsets = [0, 126], sizes = [16, 1], strides = [1, 1]} : vector<16x128xf32> to vector<16x1xf32>
    %cst_106 = arith.constant 2.000000e+00 : f32
    %374 = vector.broadcast %cst_106 : f32 to vector<16x1xf32>
    %375 = arith.mulf %374, %373 : vector<16x1xf32>
    %376 = arith.addf %372, %375 : vector<16x1xf32>
    %377 = vector.shape_cast %376 : vector<16x1xf32> to vector<16x1xf32>
    %378 = vector.broadcast %377 : vector<16x1xf32> to vector<16x128xf32>
    %379 = arith.select %371, %378, %369 : vector<16x128xi1>, vector<16x128xf32>
    %c1_i32_107 = arith.constant 1 : i32
    %380 = tpu.dynamic_rotate %379 by %c1_i32_107 dim 0 : vector<16x128xf32>, i32 -> vector<16x128xf32>
    %381 = arith.addf %379, %380 : vector<16x128xf32>
    %c15_i32_108 = arith.constant 15 : i32
    %382 = tpu.dynamic_rotate %379 by %c15_i32_108 dim 0 : vector<16x128xf32>, i32 -> vector<16x128xf32>
    %383 = arith.addf %381, %382 : vector<16x128xf32>
    %c0_i32_109 = arith.constant 0 : i32
    %384 = vector.broadcast %c0_i32_109 : i32 to vector<16x128xi32>
    %385 = arith.cmpi eq, %1, %384 : vector<16x128xi32>
    %386 = vector.extract_strided_slice %379 {offsets = [0, 0], sizes = [1, 128], strides = [1, 1]} : vector<16x128xf32> to vector<1x128xf32>
    %387 = vector.extract_strided_slice %379 {offsets = [1, 0], sizes = [1, 128], strides = [1, 1]} : vector<16x128xf32> to vector<1x128xf32>
    %cst_110 = arith.constant 2.000000e+00 : f32
    %388 = vector.broadcast %cst_110 : f32 to vector<1x128xf32>
    %389 = arith.mulf %388, %387 : vector<1x128xf32>
    %390 = arith.addf %386, %389 : vector<1x128xf32>
    %391 = vector.shape_cast %390 : vector<1x128xf32> to vector<1x128xf32>
    %392 = vector.broadcast %391 : vector<1x128xf32> to vector<16x128xf32>
    %393 = arith.select %385, %392, %383 : vector<16x128xi1>, vector<16x128xf32>
    %c15_i32_111 = arith.constant 15 : i32
    %394 = vector.broadcast %c15_i32_111 : i32 to vector<16x128xi32>
    %395 = arith.cmpi eq, %1, %394 : vector<16x128xi32>
    %396 = vector.extract_strided_slice %379 {offsets = [15, 0], sizes = [1, 128], strides = [1, 1]} : vector<16x128xf32> to vector<1x128xf32>
    %397 = vector.extract_strided_slice %379 {offsets = [14, 0], sizes = [1, 128], strides = [1, 1]} : vector<16x128xf32> to vector<1x128xf32>
    %cst_112 = arith.constant 2.000000e+00 : f32
    %398 = vector.broadcast %cst_112 : f32 to vector<1x128xf32>
    %399 = arith.mulf %398, %397 : vector<1x128xf32>
    %400 = arith.addf %396, %399 : vector<1x128xf32>
    %401 = vector.shape_cast %400 : vector<1x128xf32> to vector<1x128xf32>
    %402 = vector.broadcast %401 : vector<1x128xf32> to vector<16x128xf32>
    %403 = arith.select %395, %402, %393 : vector<16x128xi1>, vector<16x128xf32>
    %cst_113 = arith.constant 0.111111112 : f32
    %404 = vector.broadcast %cst_113 : f32 to vector<16x128xf32>
    %405 = arith.mulf %403, %404 : vector<16x128xf32>
    %406 = arith.mulf %300, %300 : vector<16x128xf32>
    %c1_i32_114 = arith.constant 1 : i32
    %407 = tpu.dynamic_rotate %406 by %c1_i32_114 dim 1 : vector<16x128xf32>, i32 -> vector<16x128xf32>
    %408 = arith.addf %406, %407 : vector<16x128xf32>
    %c127_i32_115 = arith.constant 127 : i32
    %409 = tpu.dynamic_rotate %406 by %c127_i32_115 dim 1 : vector<16x128xf32>, i32 -> vector<16x128xf32>
    %410 = arith.addf %408, %409 : vector<16x128xf32>
    %c0_i32_116 = arith.constant 0 : i32
    %411 = vector.broadcast %c0_i32_116 : i32 to vector<16x128xi32>
    %412 = arith.cmpi eq, %0, %411 : vector<16x128xi32>
    %413 = vector.extract_strided_slice %406 {offsets = [0, 0], sizes = [16, 1], strides = [1, 1]} : vector<16x128xf32> to vector<16x1xf32>
    %414 = vector.extract_strided_slice %406 {offsets = [0, 1], sizes = [16, 1], strides = [1, 1]} : vector<16x128xf32> to vector<16x1xf32>
    %cst_117 = arith.constant 2.000000e+00 : f32
    %415 = vector.broadcast %cst_117 : f32 to vector<16x1xf32>
    %416 = arith.mulf %415, %414 : vector<16x1xf32>
    %417 = arith.addf %413, %416 : vector<16x1xf32>
    %418 = vector.shape_cast %417 : vector<16x1xf32> to vector<16x1xf32>
    %419 = vector.broadcast %418 : vector<16x1xf32> to vector<16x128xf32>
    %420 = arith.select %412, %419, %410 : vector<16x128xi1>, vector<16x128xf32>
    %c127_i32_118 = arith.constant 127 : i32
    %421 = vector.broadcast %c127_i32_118 : i32 to vector<16x128xi32>
    %422 = arith.cmpi eq, %0, %421 : vector<16x128xi32>
    %423 = vector.extract_strided_slice %406 {offsets = [0, 127], sizes = [16, 1], strides = [1, 1]} : vector<16x128xf32> to vector<16x1xf32>
    %424 = vector.extract_strided_slice %406 {offsets = [0, 126], sizes = [16, 1], strides = [1, 1]} : vector<16x128xf32> to vector<16x1xf32>
    %cst_119 = arith.constant 2.000000e+00 : f32
    %425 = vector.broadcast %cst_119 : f32 to vector<16x1xf32>
    %426 = arith.mulf %425, %424 : vector<16x1xf32>
    %427 = arith.addf %423, %426 : vector<16x1xf32>
    %428 = vector.shape_cast %427 : vector<16x1xf32> to vector<16x1xf32>
    %429 = vector.broadcast %428 : vector<16x1xf32> to vector<16x128xf32>
    %430 = arith.select %422, %429, %420 : vector<16x128xi1>, vector<16x128xf32>
    %c1_i32_120 = arith.constant 1 : i32
    %431 = tpu.dynamic_rotate %430 by %c1_i32_120 dim 0 : vector<16x128xf32>, i32 -> vector<16x128xf32>
    %432 = arith.addf %430, %431 : vector<16x128xf32>
    %c15_i32_121 = arith.constant 15 : i32
    %433 = tpu.dynamic_rotate %430 by %c15_i32_121 dim 0 : vector<16x128xf32>, i32 -> vector<16x128xf32>
    %434 = arith.addf %432, %433 : vector<16x128xf32>
    %c0_i32_122 = arith.constant 0 : i32
    %435 = vector.broadcast %c0_i32_122 : i32 to vector<16x128xi32>
    %436 = arith.cmpi eq, %1, %435 : vector<16x128xi32>
    %437 = vector.extract_strided_slice %430 {offsets = [0, 0], sizes = [1, 128], strides = [1, 1]} : vector<16x128xf32> to vector<1x128xf32>
    %438 = vector.extract_strided_slice %430 {offsets = [1, 0], sizes = [1, 128], strides = [1, 1]} : vector<16x128xf32> to vector<1x128xf32>
    %cst_123 = arith.constant 2.000000e+00 : f32
    %439 = vector.broadcast %cst_123 : f32 to vector<1x128xf32>
    %440 = arith.mulf %439, %438 : vector<1x128xf32>
    %441 = arith.addf %437, %440 : vector<1x128xf32>
    %442 = vector.shape_cast %441 : vector<1x128xf32> to vector<1x128xf32>
    %443 = vector.broadcast %442 : vector<1x128xf32> to vector<16x128xf32>
    %444 = arith.select %436, %443, %434 : vector<16x128xi1>, vector<16x128xf32>
    %c15_i32_124 = arith.constant 15 : i32
    %445 = vector.broadcast %c15_i32_124 : i32 to vector<16x128xi32>
    %446 = arith.cmpi eq, %1, %445 : vector<16x128xi32>
    %447 = vector.extract_strided_slice %430 {offsets = [15, 0], sizes = [1, 128], strides = [1, 1]} : vector<16x128xf32> to vector<1x128xf32>
    %448 = vector.extract_strided_slice %430 {offsets = [14, 0], sizes = [1, 128], strides = [1, 1]} : vector<16x128xf32> to vector<1x128xf32>
    %cst_125 = arith.constant 2.000000e+00 : f32
    %449 = vector.broadcast %cst_125 : f32 to vector<1x128xf32>
    %450 = arith.mulf %449, %448 : vector<1x128xf32>
    %451 = arith.addf %447, %450 : vector<1x128xf32>
    %452 = vector.shape_cast %451 : vector<1x128xf32> to vector<1x128xf32>
    %453 = vector.broadcast %452 : vector<1x128xf32> to vector<16x128xf32>
    %454 = arith.select %446, %453, %444 : vector<16x128xi1>, vector<16x128xf32>
    %cst_126 = arith.constant 0.111111112 : f32
    %455 = vector.broadcast %cst_126 : f32 to vector<16x128xf32>
    %456 = arith.mulf %454, %455 : vector<16x128xf32>
    %457 = arith.mulf %355, %355 : vector<16x128xf32>
    %458 = arith.subf %456, %457 : vector<16x128xf32>
    %459 = arith.mulf %302, %302 : vector<16x128xf32>
    %c1_i32_127 = arith.constant 1 : i32
    %460 = tpu.dynamic_rotate %459 by %c1_i32_127 dim 1 : vector<16x128xf32>, i32 -> vector<16x128xf32>
    %461 = arith.addf %459, %460 : vector<16x128xf32>
    %c127_i32_128 = arith.constant 127 : i32
    %462 = tpu.dynamic_rotate %459 by %c127_i32_128 dim 1 : vector<16x128xf32>, i32 -> vector<16x128xf32>
    %463 = arith.addf %461, %462 : vector<16x128xf32>
    %c0_i32_129 = arith.constant 0 : i32
    %464 = vector.broadcast %c0_i32_129 : i32 to vector<16x128xi32>
    %465 = arith.cmpi eq, %0, %464 : vector<16x128xi32>
    %466 = vector.extract_strided_slice %459 {offsets = [0, 0], sizes = [16, 1], strides = [1, 1]} : vector<16x128xf32> to vector<16x1xf32>
    %467 = vector.extract_strided_slice %459 {offsets = [0, 1], sizes = [16, 1], strides = [1, 1]} : vector<16x128xf32> to vector<16x1xf32>
    %cst_130 = arith.constant 2.000000e+00 : f32
    %468 = vector.broadcast %cst_130 : f32 to vector<16x1xf32>
    %469 = arith.mulf %468, %467 : vector<16x1xf32>
    %470 = arith.addf %466, %469 : vector<16x1xf32>
    %471 = vector.shape_cast %470 : vector<16x1xf32> to vector<16x1xf32>
    %472 = vector.broadcast %471 : vector<16x1xf32> to vector<16x128xf32>
    %473 = arith.select %465, %472, %463 : vector<16x128xi1>, vector<16x128xf32>
    %c127_i32_131 = arith.constant 127 : i32
    %474 = vector.broadcast %c127_i32_131 : i32 to vector<16x128xi32>
    %475 = arith.cmpi eq, %0, %474 : vector<16x128xi32>
    %476 = vector.extract_strided_slice %459 {offsets = [0, 127], sizes = [16, 1], strides = [1, 1]} : vector<16x128xf32> to vector<16x1xf32>
    %477 = vector.extract_strided_slice %459 {offsets = [0, 126], sizes = [16, 1], strides = [1, 1]} : vector<16x128xf32> to vector<16x1xf32>
    %cst_132 = arith.constant 2.000000e+00 : f32
    %478 = vector.broadcast %cst_132 : f32 to vector<16x1xf32>
    %479 = arith.mulf %478, %477 : vector<16x1xf32>
    %480 = arith.addf %476, %479 : vector<16x1xf32>
    %481 = vector.shape_cast %480 : vector<16x1xf32> to vector<16x1xf32>
    %482 = vector.broadcast %481 : vector<16x1xf32> to vector<16x128xf32>
    %483 = arith.select %475, %482, %473 : vector<16x128xi1>, vector<16x128xf32>
    %c1_i32_133 = arith.constant 1 : i32
    %484 = tpu.dynamic_rotate %483 by %c1_i32_133 dim 0 : vector<16x128xf32>, i32 -> vector<16x128xf32>
    %485 = arith.addf %483, %484 : vector<16x128xf32>
    %c15_i32_134 = arith.constant 15 : i32
    %486 = tpu.dynamic_rotate %483 by %c15_i32_134 dim 0 : vector<16x128xf32>, i32 -> vector<16x128xf32>
    %487 = arith.addf %485, %486 : vector<16x128xf32>
    %c0_i32_135 = arith.constant 0 : i32
    %488 = vector.broadcast %c0_i32_135 : i32 to vector<16x128xi32>
    %489 = arith.cmpi eq, %1, %488 : vector<16x128xi32>
    %490 = vector.extract_strided_slice %483 {offsets = [0, 0], sizes = [1, 128], strides = [1, 1]} : vector<16x128xf32> to vector<1x128xf32>
    %491 = vector.extract_strided_slice %483 {offsets = [1, 0], sizes = [1, 128], strides = [1, 1]} : vector<16x128xf32> to vector<1x128xf32>
    %cst_136 = arith.constant 2.000000e+00 : f32
    %492 = vector.broadcast %cst_136 : f32 to vector<1x128xf32>
    %493 = arith.mulf %492, %491 : vector<1x128xf32>
    %494 = arith.addf %490, %493 : vector<1x128xf32>
    %495 = vector.shape_cast %494 : vector<1x128xf32> to vector<1x128xf32>
    %496 = vector.broadcast %495 : vector<1x128xf32> to vector<16x128xf32>
    %497 = arith.select %489, %496, %487 : vector<16x128xi1>, vector<16x128xf32>
    %c15_i32_137 = arith.constant 15 : i32
    %498 = vector.broadcast %c15_i32_137 : i32 to vector<16x128xi32>
    %499 = arith.cmpi eq, %1, %498 : vector<16x128xi32>
    %500 = vector.extract_strided_slice %483 {offsets = [15, 0], sizes = [1, 128], strides = [1, 1]} : vector<16x128xf32> to vector<1x128xf32>
    %501 = vector.extract_strided_slice %483 {offsets = [14, 0], sizes = [1, 128], strides = [1, 1]} : vector<16x128xf32> to vector<1x128xf32>
    %cst_138 = arith.constant 2.000000e+00 : f32
    %502 = vector.broadcast %cst_138 : f32 to vector<1x128xf32>
    %503 = arith.mulf %502, %501 : vector<1x128xf32>
    %504 = arith.addf %500, %503 : vector<1x128xf32>
    %505 = vector.shape_cast %504 : vector<1x128xf32> to vector<1x128xf32>
    %506 = vector.broadcast %505 : vector<1x128xf32> to vector<16x128xf32>
    %507 = arith.select %499, %506, %497 : vector<16x128xi1>, vector<16x128xf32>
    %cst_139 = arith.constant 0.111111112 : f32
    %508 = vector.broadcast %cst_139 : f32 to vector<16x128xf32>
    %509 = arith.mulf %507, %508 : vector<16x128xf32>
    %510 = arith.mulf %405, %405 : vector<16x128xf32>
    %511 = arith.subf %509, %510 : vector<16x128xf32>
    %512 = arith.mulf %300, %302 : vector<16x128xf32>
    %c1_i32_140 = arith.constant 1 : i32
    %513 = tpu.dynamic_rotate %512 by %c1_i32_140 dim 1 : vector<16x128xf32>, i32 -> vector<16x128xf32>
    %514 = arith.addf %512, %513 : vector<16x128xf32>
    %c127_i32_141 = arith.constant 127 : i32
    %515 = tpu.dynamic_rotate %512 by %c127_i32_141 dim 1 : vector<16x128xf32>, i32 -> vector<16x128xf32>
    %516 = arith.addf %514, %515 : vector<16x128xf32>
    %c0_i32_142 = arith.constant 0 : i32
    %517 = vector.broadcast %c0_i32_142 : i32 to vector<16x128xi32>
    %518 = arith.cmpi eq, %0, %517 : vector<16x128xi32>
    %519 = vector.extract_strided_slice %512 {offsets = [0, 0], sizes = [16, 1], strides = [1, 1]} : vector<16x128xf32> to vector<16x1xf32>
    %520 = vector.extract_strided_slice %512 {offsets = [0, 1], sizes = [16, 1], strides = [1, 1]} : vector<16x128xf32> to vector<16x1xf32>
    %cst_143 = arith.constant 2.000000e+00 : f32
    %521 = vector.broadcast %cst_143 : f32 to vector<16x1xf32>
    %522 = arith.mulf %521, %520 : vector<16x1xf32>
    %523 = arith.addf %519, %522 : vector<16x1xf32>
    %524 = vector.shape_cast %523 : vector<16x1xf32> to vector<16x1xf32>
    %525 = vector.broadcast %524 : vector<16x1xf32> to vector<16x128xf32>
    %526 = arith.select %518, %525, %516 : vector<16x128xi1>, vector<16x128xf32>
    %c127_i32_144 = arith.constant 127 : i32
    %527 = vector.broadcast %c127_i32_144 : i32 to vector<16x128xi32>
    %528 = arith.cmpi eq, %0, %527 : vector<16x128xi32>
    %529 = vector.extract_strided_slice %512 {offsets = [0, 127], sizes = [16, 1], strides = [1, 1]} : vector<16x128xf32> to vector<16x1xf32>
    %530 = vector.extract_strided_slice %512 {offsets = [0, 126], sizes = [16, 1], strides = [1, 1]} : vector<16x128xf32> to vector<16x1xf32>
    %cst_145 = arith.constant 2.000000e+00 : f32
    %531 = vector.broadcast %cst_145 : f32 to vector<16x1xf32>
    %532 = arith.mulf %531, %530 : vector<16x1xf32>
    %533 = arith.addf %529, %532 : vector<16x1xf32>
    %534 = vector.shape_cast %533 : vector<16x1xf32> to vector<16x1xf32>
    %535 = vector.broadcast %534 : vector<16x1xf32> to vector<16x128xf32>
    %536 = arith.select %528, %535, %526 : vector<16x128xi1>, vector<16x128xf32>
    %c1_i32_146 = arith.constant 1 : i32
    %537 = tpu.dynamic_rotate %536 by %c1_i32_146 dim 0 : vector<16x128xf32>, i32 -> vector<16x128xf32>
    %538 = arith.addf %536, %537 : vector<16x128xf32>
    %c15_i32_147 = arith.constant 15 : i32
    %539 = tpu.dynamic_rotate %536 by %c15_i32_147 dim 0 : vector<16x128xf32>, i32 -> vector<16x128xf32>
    %540 = arith.addf %538, %539 : vector<16x128xf32>
    %c0_i32_148 = arith.constant 0 : i32
    %541 = vector.broadcast %c0_i32_148 : i32 to vector<16x128xi32>
    %542 = arith.cmpi eq, %1, %541 : vector<16x128xi32>
    %543 = vector.extract_strided_slice %536 {offsets = [0, 0], sizes = [1, 128], strides = [1, 1]} : vector<16x128xf32> to vector<1x128xf32>
    %544 = vector.extract_strided_slice %536 {offsets = [1, 0], sizes = [1, 128], strides = [1, 1]} : vector<16x128xf32> to vector<1x128xf32>
    %cst_149 = arith.constant 2.000000e+00 : f32
    %545 = vector.broadcast %cst_149 : f32 to vector<1x128xf32>
    %546 = arith.mulf %545, %544 : vector<1x128xf32>
    %547 = arith.addf %543, %546 : vector<1x128xf32>
    %548 = vector.shape_cast %547 : vector<1x128xf32> to vector<1x128xf32>
    %549 = vector.broadcast %548 : vector<1x128xf32> to vector<16x128xf32>
    %550 = arith.select %542, %549, %540 : vector<16x128xi1>, vector<16x128xf32>
    %c15_i32_150 = arith.constant 15 : i32
    %551 = vector.broadcast %c15_i32_150 : i32 to vector<16x128xi32>
    %552 = arith.cmpi eq, %1, %551 : vector<16x128xi32>
    %553 = vector.extract_strided_slice %536 {offsets = [15, 0], sizes = [1, 128], strides = [1, 1]} : vector<16x128xf32> to vector<1x128xf32>
    %554 = vector.extract_strided_slice %536 {offsets = [14, 0], sizes = [1, 128], strides = [1, 1]} : vector<16x128xf32> to vector<1x128xf32>
    %cst_151 = arith.constant 2.000000e+00 : f32
    %555 = vector.broadcast %cst_151 : f32 to vector<1x128xf32>
    %556 = arith.mulf %555, %554 : vector<1x128xf32>
    %557 = arith.addf %553, %556 : vector<1x128xf32>
    %558 = vector.shape_cast %557 : vector<1x128xf32> to vector<1x128xf32>
    %559 = vector.broadcast %558 : vector<1x128xf32> to vector<16x128xf32>
    %560 = arith.select %552, %559, %550 : vector<16x128xi1>, vector<16x128xf32>
    %cst_152 = arith.constant 0.111111112 : f32
    %561 = vector.broadcast %cst_152 : f32 to vector<16x128xf32>
    %562 = arith.mulf %560, %561 : vector<16x128xf32>
    %563 = arith.mulf %355, %405 : vector<16x128xf32>
    %564 = arith.subf %562, %563 : vector<16x128xf32>
    %cst_153 = arith.constant 2.000000e+00 : f32
    %565 = vector.broadcast %cst_153 : f32 to vector<16x128xf32>
    %566 = arith.mulf %565, %355 : vector<16x128xf32>
    %567 = arith.mulf %566, %405 : vector<16x128xf32>
    %cst_154 = arith.constant 9.99999974E-5 : f32
    %568 = vector.broadcast %cst_154 : f32 to vector<16x128xf32>
    %569 = arith.addf %567, %568 : vector<16x128xf32>
    %cst_155 = arith.constant 2.000000e+00 : f32
    %570 = vector.broadcast %cst_155 : f32 to vector<16x128xf32>
    %571 = arith.mulf %570, %564 : vector<16x128xf32>
    %cst_156 = arith.constant 8.99999984E-4 : f32
    %572 = vector.broadcast %cst_156 : f32 to vector<16x128xf32>
    %573 = arith.addf %571, %572 : vector<16x128xf32>
    %574 = arith.mulf %569, %573 : vector<16x128xf32>
    %575 = arith.mulf %355, %355 : vector<16x128xf32>
    %576 = arith.mulf %405, %405 : vector<16x128xf32>
    %577 = arith.addf %575, %576 : vector<16x128xf32>
    %cst_157 = arith.constant 9.99999974E-5 : f32
    %578 = vector.broadcast %cst_157 : f32 to vector<16x128xf32>
    %579 = arith.addf %577, %578 : vector<16x128xf32>
    %580 = arith.addf %458, %511 : vector<16x128xf32>
    %cst_158 = arith.constant 8.99999984E-4 : f32
    %581 = vector.broadcast %cst_158 : f32 to vector<16x128xf32>
    %582 = arith.addf %580, %581 : vector<16x128xf32>
    %583 = arith.mulf %579, %582 : vector<16x128xf32>
    %584 = arith.divf %574, %583 : vector<16x128xf32>
    %cst_159 = arith.constant 1.000000e+00 : f32
    %585 = vector.broadcast %cst_159 : f32 to vector<16x128xf32>
    %586 = arith.subf %585, %584 : vector<16x128xf32>
    %cst_160 = arith.constant 5.000000e-01 : f32
    %587 = vector.broadcast %cst_160 : f32 to vector<16x128xf32>
    %588 = arith.mulf %586, %587 : vector<16x128xf32>
    %cst_161 = arith.constant 0.000000e+00 : f32
    %cst_162 = arith.constant 1.000000e+00 : f32
    %589 = vector.broadcast %cst_161 : f32 to vector<16x128xf32>
    %590 = arith.maximumf %589, %588 : vector<16x128xf32>
    %591 = vector.broadcast %cst_162 : f32 to vector<16x128xf32>
    %592 = arith.minimumf %591, %590 : vector<16x128xf32>
    %593 = arith.addf %298, %592 : vector<16x128xf32>
    %c0_163 = arith.constant 0 : index
    %c0_164 = arith.constant 0 : index
    %c2 = arith.constant 2 : index
    %c0_165 = arith.constant 0 : index
    %c0_166 = arith.constant 0 : index
    %594 = vector.load %arg3[%c0_163, %c0_164, %c2, %c0_165, %c0_166] : memref<1x1x3x16x128xf32, #tpu.memory_space<vmem>>, vector<1x1x1x16x128xf32>
    %595 = vector.shape_cast %594 : vector<1x1x1x16x128xf32> to vector<16x128xf32>
    %c0_167 = arith.constant 0 : index
    %c2_168 = arith.constant 2 : index
    %c0_169 = arith.constant 0 : index
    %c0_170 = arith.constant 0 : index
    %596 = vector.load %arg2[%c0_167, %c2_168, %c0_169, %c0_170] : memref<1x3x16x128xf32, #tpu.memory_space<vmem>>, vector<1x1x16x128xf32>
    %597 = vector.shape_cast %596 : vector<1x1x16x128xf32> to vector<16x128xf32>
    %598 = arith.subf %595, %597 : vector<16x128xf32>
    %599 = math.absf %598 : vector<16x128xf32>
    %600 = arith.addf %305, %599 : vector<16x128xf32>
    %c1_i32_171 = arith.constant 1 : i32
    %601 = tpu.dynamic_rotate %595 by %c1_i32_171 dim 1 : vector<16x128xf32>, i32 -> vector<16x128xf32>
    %602 = arith.addf %595, %601 : vector<16x128xf32>
    %c127_i32_172 = arith.constant 127 : i32
    %603 = tpu.dynamic_rotate %595 by %c127_i32_172 dim 1 : vector<16x128xf32>, i32 -> vector<16x128xf32>
    %604 = arith.addf %602, %603 : vector<16x128xf32>
    %c0_i32_173 = arith.constant 0 : i32
    %605 = vector.broadcast %c0_i32_173 : i32 to vector<16x128xi32>
    %606 = arith.cmpi eq, %0, %605 : vector<16x128xi32>
    %607 = vector.extract_strided_slice %595 {offsets = [0, 0], sizes = [16, 1], strides = [1, 1]} : vector<16x128xf32> to vector<16x1xf32>
    %608 = vector.extract_strided_slice %595 {offsets = [0, 1], sizes = [16, 1], strides = [1, 1]} : vector<16x128xf32> to vector<16x1xf32>
    %cst_174 = arith.constant 2.000000e+00 : f32
    %609 = vector.broadcast %cst_174 : f32 to vector<16x1xf32>
    %610 = arith.mulf %609, %608 : vector<16x1xf32>
    %611 = arith.addf %607, %610 : vector<16x1xf32>
    %612 = vector.shape_cast %611 : vector<16x1xf32> to vector<16x1xf32>
    %613 = vector.broadcast %612 : vector<16x1xf32> to vector<16x128xf32>
    %614 = arith.select %606, %613, %604 : vector<16x128xi1>, vector<16x128xf32>
    %c127_i32_175 = arith.constant 127 : i32
    %615 = vector.broadcast %c127_i32_175 : i32 to vector<16x128xi32>
    %616 = arith.cmpi eq, %0, %615 : vector<16x128xi32>
    %617 = vector.extract_strided_slice %595 {offsets = [0, 127], sizes = [16, 1], strides = [1, 1]} : vector<16x128xf32> to vector<16x1xf32>
    %618 = vector.extract_strided_slice %595 {offsets = [0, 126], sizes = [16, 1], strides = [1, 1]} : vector<16x128xf32> to vector<16x1xf32>
    %cst_176 = arith.constant 2.000000e+00 : f32
    %619 = vector.broadcast %cst_176 : f32 to vector<16x1xf32>
    %620 = arith.mulf %619, %618 : vector<16x1xf32>
    %621 = arith.addf %617, %620 : vector<16x1xf32>
    %622 = vector.shape_cast %621 : vector<16x1xf32> to vector<16x1xf32>
    %623 = vector.broadcast %622 : vector<16x1xf32> to vector<16x128xf32>
    %624 = arith.select %616, %623, %614 : vector<16x128xi1>, vector<16x128xf32>
    %c1_i32_177 = arith.constant 1 : i32
    %625 = tpu.dynamic_rotate %624 by %c1_i32_177 dim 0 : vector<16x128xf32>, i32 -> vector<16x128xf32>
    %626 = arith.addf %624, %625 : vector<16x128xf32>
    %c15_i32_178 = arith.constant 15 : i32
    %627 = tpu.dynamic_rotate %624 by %c15_i32_178 dim 0 : vector<16x128xf32>, i32 -> vector<16x128xf32>
    %628 = arith.addf %626, %627 : vector<16x128xf32>
    %c0_i32_179 = arith.constant 0 : i32
    %629 = vector.broadcast %c0_i32_179 : i32 to vector<16x128xi32>
    %630 = arith.cmpi eq, %1, %629 : vector<16x128xi32>
    %631 = vector.extract_strided_slice %624 {offsets = [0, 0], sizes = [1, 128], strides = [1, 1]} : vector<16x128xf32> to vector<1x128xf32>
    %632 = vector.extract_strided_slice %624 {offsets = [1, 0], sizes = [1, 128], strides = [1, 1]} : vector<16x128xf32> to vector<1x128xf32>
    %cst_180 = arith.constant 2.000000e+00 : f32
    %633 = vector.broadcast %cst_180 : f32 to vector<1x128xf32>
    %634 = arith.mulf %633, %632 : vector<1x128xf32>
    %635 = arith.addf %631, %634 : vector<1x128xf32>
    %636 = vector.shape_cast %635 : vector<1x128xf32> to vector<1x128xf32>
    %637 = vector.broadcast %636 : vector<1x128xf32> to vector<16x128xf32>
    %638 = arith.select %630, %637, %628 : vector<16x128xi1>, vector<16x128xf32>
    %c15_i32_181 = arith.constant 15 : i32
    %639 = vector.broadcast %c15_i32_181 : i32 to vector<16x128xi32>
    %640 = arith.cmpi eq, %1, %639 : vector<16x128xi32>
    %641 = vector.extract_strided_slice %624 {offsets = [15, 0], sizes = [1, 128], strides = [1, 1]} : vector<16x128xf32> to vector<1x128xf32>
    %642 = vector.extract_strided_slice %624 {offsets = [14, 0], sizes = [1, 128], strides = [1, 1]} : vector<16x128xf32> to vector<1x128xf32>
    %cst_182 = arith.constant 2.000000e+00 : f32
    %643 = vector.broadcast %cst_182 : f32 to vector<1x128xf32>
    %644 = arith.mulf %643, %642 : vector<1x128xf32>
    %645 = arith.addf %641, %644 : vector<1x128xf32>
    %646 = vector.shape_cast %645 : vector<1x128xf32> to vector<1x128xf32>
    %647 = vector.broadcast %646 : vector<1x128xf32> to vector<16x128xf32>
    %648 = arith.select %640, %647, %638 : vector<16x128xi1>, vector<16x128xf32>
    %cst_183 = arith.constant 0.111111112 : f32
    %649 = vector.broadcast %cst_183 : f32 to vector<16x128xf32>
    %650 = arith.mulf %648, %649 : vector<16x128xf32>
    %c1_i32_184 = arith.constant 1 : i32
    %651 = tpu.dynamic_rotate %597 by %c1_i32_184 dim 1 : vector<16x128xf32>, i32 -> vector<16x128xf32>
    %652 = arith.addf %597, %651 : vector<16x128xf32>
    %c127_i32_185 = arith.constant 127 : i32
    %653 = tpu.dynamic_rotate %597 by %c127_i32_185 dim 1 : vector<16x128xf32>, i32 -> vector<16x128xf32>
    %654 = arith.addf %652, %653 : vector<16x128xf32>
    %c0_i32_186 = arith.constant 0 : i32
    %655 = vector.broadcast %c0_i32_186 : i32 to vector<16x128xi32>
    %656 = arith.cmpi eq, %0, %655 : vector<16x128xi32>
    %657 = vector.extract_strided_slice %597 {offsets = [0, 0], sizes = [16, 1], strides = [1, 1]} : vector<16x128xf32> to vector<16x1xf32>
    %658 = vector.extract_strided_slice %597 {offsets = [0, 1], sizes = [16, 1], strides = [1, 1]} : vector<16x128xf32> to vector<16x1xf32>
    %cst_187 = arith.constant 2.000000e+00 : f32
    %659 = vector.broadcast %cst_187 : f32 to vector<16x1xf32>
    %660 = arith.mulf %659, %658 : vector<16x1xf32>
    %661 = arith.addf %657, %660 : vector<16x1xf32>
    %662 = vector.shape_cast %661 : vector<16x1xf32> to vector<16x1xf32>
    %663 = vector.broadcast %662 : vector<16x1xf32> to vector<16x128xf32>
    %664 = arith.select %656, %663, %654 : vector<16x128xi1>, vector<16x128xf32>
    %c127_i32_188 = arith.constant 127 : i32
    %665 = vector.broadcast %c127_i32_188 : i32 to vector<16x128xi32>
    %666 = arith.cmpi eq, %0, %665 : vector<16x128xi32>
    %667 = vector.extract_strided_slice %597 {offsets = [0, 127], sizes = [16, 1], strides = [1, 1]} : vector<16x128xf32> to vector<16x1xf32>
    %668 = vector.extract_strided_slice %597 {offsets = [0, 126], sizes = [16, 1], strides = [1, 1]} : vector<16x128xf32> to vector<16x1xf32>
    %cst_189 = arith.constant 2.000000e+00 : f32
    %669 = vector.broadcast %cst_189 : f32 to vector<16x1xf32>
    %670 = arith.mulf %669, %668 : vector<16x1xf32>
    %671 = arith.addf %667, %670 : vector<16x1xf32>
    %672 = vector.shape_cast %671 : vector<16x1xf32> to vector<16x1xf32>
    %673 = vector.broadcast %672 : vector<16x1xf32> to vector<16x128xf32>
    %674 = arith.select %666, %673, %664 : vector<16x128xi1>, vector<16x128xf32>
    %c1_i32_190 = arith.constant 1 : i32
    %675 = tpu.dynamic_rotate %674 by %c1_i32_190 dim 0 : vector<16x128xf32>, i32 -> vector<16x128xf32>
    %676 = arith.addf %674, %675 : vector<16x128xf32>
    %c15_i32_191 = arith.constant 15 : i32
    %677 = tpu.dynamic_rotate %674 by %c15_i32_191 dim 0 : vector<16x128xf32>, i32 -> vector<16x128xf32>
    %678 = arith.addf %676, %677 : vector<16x128xf32>
    %c0_i32_192 = arith.constant 0 : i32
    %679 = vector.broadcast %c0_i32_192 : i32 to vector<16x128xi32>
    %680 = arith.cmpi eq, %1, %679 : vector<16x128xi32>
    %681 = vector.extract_strided_slice %674 {offsets = [0, 0], sizes = [1, 128], strides = [1, 1]} : vector<16x128xf32> to vector<1x128xf32>
    %682 = vector.extract_strided_slice %674 {offsets = [1, 0], sizes = [1, 128], strides = [1, 1]} : vector<16x128xf32> to vector<1x128xf32>
    %cst_193 = arith.constant 2.000000e+00 : f32
    %683 = vector.broadcast %cst_193 : f32 to vector<1x128xf32>
    %684 = arith.mulf %683, %682 : vector<1x128xf32>
    %685 = arith.addf %681, %684 : vector<1x128xf32>
    %686 = vector.shape_cast %685 : vector<1x128xf32> to vector<1x128xf32>
    %687 = vector.broadcast %686 : vector<1x128xf32> to vector<16x128xf32>
    %688 = arith.select %680, %687, %678 : vector<16x128xi1>, vector<16x128xf32>
    %c15_i32_194 = arith.constant 15 : i32
    %689 = vector.broadcast %c15_i32_194 : i32 to vector<16x128xi32>
    %690 = arith.cmpi eq, %1, %689 : vector<16x128xi32>
    %691 = vector.extract_strided_slice %674 {offsets = [15, 0], sizes = [1, 128], strides = [1, 1]} : vector<16x128xf32> to vector<1x128xf32>
    %692 = vector.extract_strided_slice %674 {offsets = [14, 0], sizes = [1, 128], strides = [1, 1]} : vector<16x128xf32> to vector<1x128xf32>
    %cst_195 = arith.constant 2.000000e+00 : f32
    %693 = vector.broadcast %cst_195 : f32 to vector<1x128xf32>
    %694 = arith.mulf %693, %692 : vector<1x128xf32>
    %695 = arith.addf %691, %694 : vector<1x128xf32>
    %696 = vector.shape_cast %695 : vector<1x128xf32> to vector<1x128xf32>
    %697 = vector.broadcast %696 : vector<1x128xf32> to vector<16x128xf32>
    %698 = arith.select %690, %697, %688 : vector<16x128xi1>, vector<16x128xf32>
    %cst_196 = arith.constant 0.111111112 : f32
    %699 = vector.broadcast %cst_196 : f32 to vector<16x128xf32>
    %700 = arith.mulf %698, %699 : vector<16x128xf32>
    %701 = arith.mulf %595, %595 : vector<16x128xf32>
    %c1_i32_197 = arith.constant 1 : i32
    %702 = tpu.dynamic_rotate %701 by %c1_i32_197 dim 1 : vector<16x128xf32>, i32 -> vector<16x128xf32>
    %703 = arith.addf %701, %702 : vector<16x128xf32>
    %c127_i32_198 = arith.constant 127 : i32
    %704 = tpu.dynamic_rotate %701 by %c127_i32_198 dim 1 : vector<16x128xf32>, i32 -> vector<16x128xf32>
    %705 = arith.addf %703, %704 : vector<16x128xf32>
    %c0_i32_199 = arith.constant 0 : i32
    %706 = vector.broadcast %c0_i32_199 : i32 to vector<16x128xi32>
    %707 = arith.cmpi eq, %0, %706 : vector<16x128xi32>
    %708 = vector.extract_strided_slice %701 {offsets = [0, 0], sizes = [16, 1], strides = [1, 1]} : vector<16x128xf32> to vector<16x1xf32>
    %709 = vector.extract_strided_slice %701 {offsets = [0, 1], sizes = [16, 1], strides = [1, 1]} : vector<16x128xf32> to vector<16x1xf32>
    %cst_200 = arith.constant 2.000000e+00 : f32
    %710 = vector.broadcast %cst_200 : f32 to vector<16x1xf32>
    %711 = arith.mulf %710, %709 : vector<16x1xf32>
    %712 = arith.addf %708, %711 : vector<16x1xf32>
    %713 = vector.shape_cast %712 : vector<16x1xf32> to vector<16x1xf32>
    %714 = vector.broadcast %713 : vector<16x1xf32> to vector<16x128xf32>
    %715 = arith.select %707, %714, %705 : vector<16x128xi1>, vector<16x128xf32>
    %c127_i32_201 = arith.constant 127 : i32
    %716 = vector.broadcast %c127_i32_201 : i32 to vector<16x128xi32>
    %717 = arith.cmpi eq, %0, %716 : vector<16x128xi32>
    %718 = vector.extract_strided_slice %701 {offsets = [0, 127], sizes = [16, 1], strides = [1, 1]} : vector<16x128xf32> to vector<16x1xf32>
    %719 = vector.extract_strided_slice %701 {offsets = [0, 126], sizes = [16, 1], strides = [1, 1]} : vector<16x128xf32> to vector<16x1xf32>
    %cst_202 = arith.constant 2.000000e+00 : f32
    %720 = vector.broadcast %cst_202 : f32 to vector<16x1xf32>
    %721 = arith.mulf %720, %719 : vector<16x1xf32>
    %722 = arith.addf %718, %721 : vector<16x1xf32>
    %723 = vector.shape_cast %722 : vector<16x1xf32> to vector<16x1xf32>
    %724 = vector.broadcast %723 : vector<16x1xf32> to vector<16x128xf32>
    %725 = arith.select %717, %724, %715 : vector<16x128xi1>, vector<16x128xf32>
    %c1_i32_203 = arith.constant 1 : i32
    %726 = tpu.dynamic_rotate %725 by %c1_i32_203 dim 0 : vector<16x128xf32>, i32 -> vector<16x128xf32>
    %727 = arith.addf %725, %726 : vector<16x128xf32>
    %c15_i32_204 = arith.constant 15 : i32
    %728 = tpu.dynamic_rotate %725 by %c15_i32_204 dim 0 : vector<16x128xf32>, i32 -> vector<16x128xf32>
    %729 = arith.addf %727, %728 : vector<16x128xf32>
    %c0_i32_205 = arith.constant 0 : i32
    %730 = vector.broadcast %c0_i32_205 : i32 to vector<16x128xi32>
    %731 = arith.cmpi eq, %1, %730 : vector<16x128xi32>
    %732 = vector.extract_strided_slice %725 {offsets = [0, 0], sizes = [1, 128], strides = [1, 1]} : vector<16x128xf32> to vector<1x128xf32>
    %733 = vector.extract_strided_slice %725 {offsets = [1, 0], sizes = [1, 128], strides = [1, 1]} : vector<16x128xf32> to vector<1x128xf32>
    %cst_206 = arith.constant 2.000000e+00 : f32
    %734 = vector.broadcast %cst_206 : f32 to vector<1x128xf32>
    %735 = arith.mulf %734, %733 : vector<1x128xf32>
    %736 = arith.addf %732, %735 : vector<1x128xf32>
    %737 = vector.shape_cast %736 : vector<1x128xf32> to vector<1x128xf32>
    %738 = vector.broadcast %737 : vector<1x128xf32> to vector<16x128xf32>
    %739 = arith.select %731, %738, %729 : vector<16x128xi1>, vector<16x128xf32>
    %c15_i32_207 = arith.constant 15 : i32
    %740 = vector.broadcast %c15_i32_207 : i32 to vector<16x128xi32>
    %741 = arith.cmpi eq, %1, %740 : vector<16x128xi32>
    %742 = vector.extract_strided_slice %725 {offsets = [15, 0], sizes = [1, 128], strides = [1, 1]} : vector<16x128xf32> to vector<1x128xf32>
    %743 = vector.extract_strided_slice %725 {offsets = [14, 0], sizes = [1, 128], strides = [1, 1]} : vector<16x128xf32> to vector<1x128xf32>
    %cst_208 = arith.constant 2.000000e+00 : f32
    %744 = vector.broadcast %cst_208 : f32 to vector<1x128xf32>
    %745 = arith.mulf %744, %743 : vector<1x128xf32>
    %746 = arith.addf %742, %745 : vector<1x128xf32>
    %747 = vector.shape_cast %746 : vector<1x128xf32> to vector<1x128xf32>
    %748 = vector.broadcast %747 : vector<1x128xf32> to vector<16x128xf32>
    %749 = arith.select %741, %748, %739 : vector<16x128xi1>, vector<16x128xf32>
    %cst_209 = arith.constant 0.111111112 : f32
    %750 = vector.broadcast %cst_209 : f32 to vector<16x128xf32>
    %751 = arith.mulf %749, %750 : vector<16x128xf32>
    %752 = arith.mulf %650, %650 : vector<16x128xf32>
    %753 = arith.subf %751, %752 : vector<16x128xf32>
    %754 = arith.mulf %597, %597 : vector<16x128xf32>
    %c1_i32_210 = arith.constant 1 : i32
    %755 = tpu.dynamic_rotate %754 by %c1_i32_210 dim 1 : vector<16x128xf32>, i32 -> vector<16x128xf32>
    %756 = arith.addf %754, %755 : vector<16x128xf32>
    %c127_i32_211 = arith.constant 127 : i32
    %757 = tpu.dynamic_rotate %754 by %c127_i32_211 dim 1 : vector<16x128xf32>, i32 -> vector<16x128xf32>
    %758 = arith.addf %756, %757 : vector<16x128xf32>
    %c0_i32_212 = arith.constant 0 : i32
    %759 = vector.broadcast %c0_i32_212 : i32 to vector<16x128xi32>
    %760 = arith.cmpi eq, %0, %759 : vector<16x128xi32>
    %761 = vector.extract_strided_slice %754 {offsets = [0, 0], sizes = [16, 1], strides = [1, 1]} : vector<16x128xf32> to vector<16x1xf32>
    %762 = vector.extract_strided_slice %754 {offsets = [0, 1], sizes = [16, 1], strides = [1, 1]} : vector<16x128xf32> to vector<16x1xf32>
    %cst_213 = arith.constant 2.000000e+00 : f32
    %763 = vector.broadcast %cst_213 : f32 to vector<16x1xf32>
    %764 = arith.mulf %763, %762 : vector<16x1xf32>
    %765 = arith.addf %761, %764 : vector<16x1xf32>
    %766 = vector.shape_cast %765 : vector<16x1xf32> to vector<16x1xf32>
    %767 = vector.broadcast %766 : vector<16x1xf32> to vector<16x128xf32>
    %768 = arith.select %760, %767, %758 : vector<16x128xi1>, vector<16x128xf32>
    %c127_i32_214 = arith.constant 127 : i32
    %769 = vector.broadcast %c127_i32_214 : i32 to vector<16x128xi32>
    %770 = arith.cmpi eq, %0, %769 : vector<16x128xi32>
    %771 = vector.extract_strided_slice %754 {offsets = [0, 127], sizes = [16, 1], strides = [1, 1]} : vector<16x128xf32> to vector<16x1xf32>
    %772 = vector.extract_strided_slice %754 {offsets = [0, 126], sizes = [16, 1], strides = [1, 1]} : vector<16x128xf32> to vector<16x1xf32>
    %cst_215 = arith.constant 2.000000e+00 : f32
    %773 = vector.broadcast %cst_215 : f32 to vector<16x1xf32>
    %774 = arith.mulf %773, %772 : vector<16x1xf32>
    %775 = arith.addf %771, %774 : vector<16x1xf32>
    %776 = vector.shape_cast %775 : vector<16x1xf32> to vector<16x1xf32>
    %777 = vector.broadcast %776 : vector<16x1xf32> to vector<16x128xf32>
    %778 = arith.select %770, %777, %768 : vector<16x128xi1>, vector<16x128xf32>
    %c1_i32_216 = arith.constant 1 : i32
    %779 = tpu.dynamic_rotate %778 by %c1_i32_216 dim 0 : vector<16x128xf32>, i32 -> vector<16x128xf32>
    %780 = arith.addf %778, %779 : vector<16x128xf32>
    %c15_i32_217 = arith.constant 15 : i32
    %781 = tpu.dynamic_rotate %778 by %c15_i32_217 dim 0 : vector<16x128xf32>, i32 -> vector<16x128xf32>
    %782 = arith.addf %780, %781 : vector<16x128xf32>
    %c0_i32_218 = arith.constant 0 : i32
    %783 = vector.broadcast %c0_i32_218 : i32 to vector<16x128xi32>
    %784 = arith.cmpi eq, %1, %783 : vector<16x128xi32>
    %785 = vector.extract_strided_slice %778 {offsets = [0, 0], sizes = [1, 128], strides = [1, 1]} : vector<16x128xf32> to vector<1x128xf32>
    %786 = vector.extract_strided_slice %778 {offsets = [1, 0], sizes = [1, 128], strides = [1, 1]} : vector<16x128xf32> to vector<1x128xf32>
    %cst_219 = arith.constant 2.000000e+00 : f32
    %787 = vector.broadcast %cst_219 : f32 to vector<1x128xf32>
    %788 = arith.mulf %787, %786 : vector<1x128xf32>
    %789 = arith.addf %785, %788 : vector<1x128xf32>
    %790 = vector.shape_cast %789 : vector<1x128xf32> to vector<1x128xf32>
    %791 = vector.broadcast %790 : vector<1x128xf32> to vector<16x128xf32>
    %792 = arith.select %784, %791, %782 : vector<16x128xi1>, vector<16x128xf32>
    %c15_i32_220 = arith.constant 15 : i32
    %793 = vector.broadcast %c15_i32_220 : i32 to vector<16x128xi32>
    %794 = arith.cmpi eq, %1, %793 : vector<16x128xi32>
    %795 = vector.extract_strided_slice %778 {offsets = [15, 0], sizes = [1, 128], strides = [1, 1]} : vector<16x128xf32> to vector<1x128xf32>
    %796 = vector.extract_strided_slice %778 {offsets = [14, 0], sizes = [1, 128], strides = [1, 1]} : vector<16x128xf32> to vector<1x128xf32>
    %cst_221 = arith.constant 2.000000e+00 : f32
    %797 = vector.broadcast %cst_221 : f32 to vector<1x128xf32>
    %798 = arith.mulf %797, %796 : vector<1x128xf32>
    %799 = arith.addf %795, %798 : vector<1x128xf32>
    %800 = vector.shape_cast %799 : vector<1x128xf32> to vector<1x128xf32>
    %801 = vector.broadcast %800 : vector<1x128xf32> to vector<16x128xf32>
    %802 = arith.select %794, %801, %792 : vector<16x128xi1>, vector<16x128xf32>
    %cst_222 = arith.constant 0.111111112 : f32
    %803 = vector.broadcast %cst_222 : f32 to vector<16x128xf32>
    %804 = arith.mulf %802, %803 : vector<16x128xf32>
    %805 = arith.mulf %700, %700 : vector<16x128xf32>
    %806 = arith.subf %804, %805 : vector<16x128xf32>
    %807 = arith.mulf %595, %597 : vector<16x128xf32>
    %c1_i32_223 = arith.constant 1 : i32
    %808 = tpu.dynamic_rotate %807 by %c1_i32_223 dim 1 : vector<16x128xf32>, i32 -> vector<16x128xf32>
    %809 = arith.addf %807, %808 : vector<16x128xf32>
    %c127_i32_224 = arith.constant 127 : i32
    %810 = tpu.dynamic_rotate %807 by %c127_i32_224 dim 1 : vector<16x128xf32>, i32 -> vector<16x128xf32>
    %811 = arith.addf %809, %810 : vector<16x128xf32>
    %c0_i32_225 = arith.constant 0 : i32
    %812 = vector.broadcast %c0_i32_225 : i32 to vector<16x128xi32>
    %813 = arith.cmpi eq, %0, %812 : vector<16x128xi32>
    %814 = vector.extract_strided_slice %807 {offsets = [0, 0], sizes = [16, 1], strides = [1, 1]} : vector<16x128xf32> to vector<16x1xf32>
    %815 = vector.extract_strided_slice %807 {offsets = [0, 1], sizes = [16, 1], strides = [1, 1]} : vector<16x128xf32> to vector<16x1xf32>
    %cst_226 = arith.constant 2.000000e+00 : f32
    %816 = vector.broadcast %cst_226 : f32 to vector<16x1xf32>
    %817 = arith.mulf %816, %815 : vector<16x1xf32>
    %818 = arith.addf %814, %817 : vector<16x1xf32>
    %819 = vector.shape_cast %818 : vector<16x1xf32> to vector<16x1xf32>
    %820 = vector.broadcast %819 : vector<16x1xf32> to vector<16x128xf32>
    %821 = arith.select %813, %820, %811 : vector<16x128xi1>, vector<16x128xf32>
    %c127_i32_227 = arith.constant 127 : i32
    %822 = vector.broadcast %c127_i32_227 : i32 to vector<16x128xi32>
    %823 = arith.cmpi eq, %0, %822 : vector<16x128xi32>
    %824 = vector.extract_strided_slice %807 {offsets = [0, 127], sizes = [16, 1], strides = [1, 1]} : vector<16x128xf32> to vector<16x1xf32>
    %825 = vector.extract_strided_slice %807 {offsets = [0, 126], sizes = [16, 1], strides = [1, 1]} : vector<16x128xf32> to vector<16x1xf32>
    %cst_228 = arith.constant 2.000000e+00 : f32
    %826 = vector.broadcast %cst_228 : f32 to vector<16x1xf32>
    %827 = arith.mulf %826, %825 : vector<16x1xf32>
    %828 = arith.addf %824, %827 : vector<16x1xf32>
    %829 = vector.shape_cast %828 : vector<16x1xf32> to vector<16x1xf32>
    %830 = vector.broadcast %829 : vector<16x1xf32> to vector<16x128xf32>
    %831 = arith.select %823, %830, %821 : vector<16x128xi1>, vector<16x128xf32>
    %c1_i32_229 = arith.constant 1 : i32
    %832 = tpu.dynamic_rotate %831 by %c1_i32_229 dim 0 : vector<16x128xf32>, i32 -> vector<16x128xf32>
    %833 = arith.addf %831, %832 : vector<16x128xf32>
    %c15_i32_230 = arith.constant 15 : i32
    %834 = tpu.dynamic_rotate %831 by %c15_i32_230 dim 0 : vector<16x128xf32>, i32 -> vector<16x128xf32>
    %835 = arith.addf %833, %834 : vector<16x128xf32>
    %c0_i32_231 = arith.constant 0 : i32
    %836 = vector.broadcast %c0_i32_231 : i32 to vector<16x128xi32>
    %837 = arith.cmpi eq, %1, %836 : vector<16x128xi32>
    %838 = vector.extract_strided_slice %831 {offsets = [0, 0], sizes = [1, 128], strides = [1, 1]} : vector<16x128xf32> to vector<1x128xf32>
    %839 = vector.extract_strided_slice %831 {offsets = [1, 0], sizes = [1, 128], strides = [1, 1]} : vector<16x128xf32> to vector<1x128xf32>
    %cst_232 = arith.constant 2.000000e+00 : f32
    %840 = vector.broadcast %cst_232 : f32 to vector<1x128xf32>
    %841 = arith.mulf %840, %839 : vector<1x128xf32>
    %842 = arith.addf %838, %841 : vector<1x128xf32>
    %843 = vector.shape_cast %842 : vector<1x128xf32> to vector<1x128xf32>
    %844 = vector.broadcast %843 : vector<1x128xf32> to vector<16x128xf32>
    %845 = arith.select %837, %844, %835 : vector<16x128xi1>, vector<16x128xf32>
    %c15_i32_233 = arith.constant 15 : i32
    %846 = vector.broadcast %c15_i32_233 : i32 to vector<16x128xi32>
    %847 = arith.cmpi eq, %1, %846 : vector<16x128xi32>
    %848 = vector.extract_strided_slice %831 {offsets = [15, 0], sizes = [1, 128], strides = [1, 1]} : vector<16x128xf32> to vector<1x128xf32>
    %849 = vector.extract_strided_slice %831 {offsets = [14, 0], sizes = [1, 128], strides = [1, 1]} : vector<16x128xf32> to vector<1x128xf32>
    %cst_234 = arith.constant 2.000000e+00 : f32
    %850 = vector.broadcast %cst_234 : f32 to vector<1x128xf32>
    %851 = arith.mulf %850, %849 : vector<1x128xf32>
    %852 = arith.addf %848, %851 : vector<1x128xf32>
    %853 = vector.shape_cast %852 : vector<1x128xf32> to vector<1x128xf32>
    %854 = vector.broadcast %853 : vector<1x128xf32> to vector<16x128xf32>
    %855 = arith.select %847, %854, %845 : vector<16x128xi1>, vector<16x128xf32>
    %cst_235 = arith.constant 0.111111112 : f32
    %856 = vector.broadcast %cst_235 : f32 to vector<16x128xf32>
    %857 = arith.mulf %855, %856 : vector<16x128xf32>
    %858 = arith.mulf %650, %700 : vector<16x128xf32>
    %859 = arith.subf %857, %858 : vector<16x128xf32>
    %cst_236 = arith.constant 2.000000e+00 : f32
    %860 = vector.broadcast %cst_236 : f32 to vector<16x128xf32>
    %861 = arith.mulf %860, %650 : vector<16x128xf32>
    %862 = arith.mulf %861, %700 : vector<16x128xf32>
    %cst_237 = arith.constant 9.99999974E-5 : f32
    %863 = vector.broadcast %cst_237 : f32 to vector<16x128xf32>
    %864 = arith.addf %862, %863 : vector<16x128xf32>
    %cst_238 = arith.constant 2.000000e+00 : f32
    %865 = vector.broadcast %cst_238 : f32 to vector<16x128xf32>
    %866 = arith.mulf %865, %859 : vector<16x128xf32>
    %cst_239 = arith.constant 8.99999984E-4 : f32
    %867 = vector.broadcast %cst_239 : f32 to vector<16x128xf32>
    %868 = arith.addf %866, %867 : vector<16x128xf32>
    %869 = arith.mulf %864, %868 : vector<16x128xf32>
    %870 = arith.mulf %650, %650 : vector<16x128xf32>
    %871 = arith.mulf %700, %700 : vector<16x128xf32>
    %872 = arith.addf %870, %871 : vector<16x128xf32>
    %cst_240 = arith.constant 9.99999974E-5 : f32
    %873 = vector.broadcast %cst_240 : f32 to vector<16x128xf32>
    %874 = arith.addf %872, %873 : vector<16x128xf32>
    %875 = arith.addf %753, %806 : vector<16x128xf32>
    %cst_241 = arith.constant 8.99999984E-4 : f32
    %876 = vector.broadcast %cst_241 : f32 to vector<16x128xf32>
    %877 = arith.addf %875, %876 : vector<16x128xf32>
    %878 = arith.mulf %874, %877 : vector<16x128xf32>
    %879 = arith.divf %869, %878 : vector<16x128xf32>
    %cst_242 = arith.constant 1.000000e+00 : f32
    %880 = vector.broadcast %cst_242 : f32 to vector<16x128xf32>
    %881 = arith.subf %880, %879 : vector<16x128xf32>
    %cst_243 = arith.constant 5.000000e-01 : f32
    %882 = vector.broadcast %cst_243 : f32 to vector<16x128xf32>
    %883 = arith.mulf %881, %882 : vector<16x128xf32>
    %cst_244 = arith.constant 0.000000e+00 : f32
    %cst_245 = arith.constant 1.000000e+00 : f32
    %884 = vector.broadcast %cst_244 : f32 to vector<16x128xf32>
    %885 = arith.maximumf %884, %883 : vector<16x128xf32>
    %886 = vector.broadcast %cst_245 : f32 to vector<16x128xf32>
    %887 = arith.minimumf %886, %885 : vector<16x128xf32>
    %888 = arith.addf %593, %887 : vector<16x128xf32>
    %cst_246 = arith.constant 0.283333331 : f32
    %889 = vector.broadcast %cst_246 : f32 to vector<16x128xf32>
    %890 = arith.mulf %889, %888 : vector<16x128xf32>
    %cst_247 = arith.constant 5.000000e-02 : f32
    %891 = vector.broadcast %cst_247 : f32 to vector<16x128xf32>
    %892 = arith.mulf %891, %600 : vector<16x128xf32>
    %893 = arith.addf %890, %892 : vector<16x128xf32>
    %c0_248 = arith.constant 0 : index
    %c0_249 = arith.constant 0 : index
    %c0_250 = arith.constant 0 : index
    %c0_251 = arith.constant 0 : index
    %c0_252 = arith.constant 0 : index
    %894 = vector.load %arg4[%c0_248, %c0_249, %c0_250, %c0_251, %c0_252] : memref<1x1x1x16x128xf32, #tpu.memory_space<vmem>>, vector<1x1x1x16x128xf32>
    %895 = vector.shape_cast %894 : vector<1x1x1x16x128xf32> to vector<16x128xf32>
    %896 = vector.shape_cast %893 : vector<16x128xf32> to vector<1x1x1x16x128xf32>
    tpu.vector_store %arg4[%c0_248, %c0_249, %c0_250, %c0_251, %c0_252], %896 {strides = array<i32>} : memref<1x1x1x16x128xf32, #tpu.memory_space<vmem>>, vector<1x1x1x16x128xf32>,
    return
  }
  func.func @transform_0(%arg0: i32, %arg1: i32) -> (i32, i32, i32, i32) {
    %c0_i32 = arith.constant 0 : i32
    %c0_i32_0 = arith.constant 0 : i32
    %c0_i32_1 = arith.constant 0 : i32
    %c0_i32_2 = arith.constant 0 : i32
    return %arg0, %c0_i32, %c0_i32_0, %c0_i32_1 : i32, i32, i32, i32
  }
  func.func @transform_1(%arg0: i32, %arg1: i32) -> (i32, i32, i32, i32, i32) {
    %c0_i32 = arith.constant 0 : i32
    %c0_i32_0 = arith.constant 0 : i32
    %c0_i32_1 = arith.constant 0 : i32
    %c0_i32_2 = arith.constant 0 : i32
    return %arg1, %arg0, %c0_i32, %c0_i32_0, %c0_i32_1 : i32, i32, i32, i32, i32
  }
  func.func @transform_2(%arg0: i32, %arg1: i32) -> (i32, i32, i32, i32, i32) {
    %c0_i32 = arith.constant 0 : i32
    %c0_i32_0 = arith.constant 0 : i32
    %c0_i32_1 = arith.constant 0 : i32
    %c0_i32_2 = arith.constant 0 : i32
    return %arg1, %arg0, %c0_i32, %c0_i32_0, %c0_i32_1 : i32, i32, i32, i32, i32
  }
}

</mosaic_0001>

<bundles_post_ra>
// kernel: tpu_custom_call.1
= control target key start
LH: loop header
LB: loop body
LE: loop exit
PB: predicated region body
PF: predicated region fallthrough
CT: control target
= control target key end

     0   :  { %s3783_s0 = inlined_call_operand.hbm [shape: f32[2,3,16,128], index: 0, kind: input, shape index: {}]   ;;  %s3784_s1 = inlined_call_operand.hbm [shape: f32[8,2,3,16,128], index: 1, kind: input, shape index: {}]   ;;  %s3785_s2 = inlined_call_operand.hbm [shape: f32[8,2,1,16,128], index: 2, kind: output, shape index: {}]  }
   0x1   :  { %3800 = sst [smem:[#allocation16_spill]] %s3783_s0 }
   0x2   :  { %3801 = sst [smem:[#allocation17_spill]] %s3785_s2 }
   0x3   :  { %7 = vsyncpa [#allocation3], 0 }
   0x4   :  { %9 = vsyncpa [#allocation3 + $0x1], 0 }
   0x5   :  { %10 = vsyncpa [#allocation6], 0 }
   0x6   :  { %12 = vsyncpa [#allocation6 + $0x1], 0 }
   0x7   :  { %13 = vsyncpa [#allocation4], 0 }
   0x8   :  { %15 = vsyncpa [#allocation4 + $0x1], 0  ;;  %s2354_s9 = smov 0   ;;  %s2356_s10 = smov 0  }
   0x9   :  { %s2358_s11 = smov 0   ;;  %s2360_s12 = smov 0  }
   0xa   :  { %s2362_s13 = smov 0   ;;  %s2364_s14 = smov 0  }
   0xb   :  { %s2366_s15 = smov 0   ;;  %s2368_s16 = smov 0  }
   0xc   :  { %s2370_s17 = smov 0   ;;  %s2372_s18 = smov 0  }
   0xd   :  { %s2374_s19 = smov 0  }
   0xe LB: > { %3802 = sst [smem:[#allocation11_spill]] %s2289_s9  ;;  %s1940_s20 = sadd.s32 4294967295, %s2329_s19   ;;  %s2329_s19 = sphi %s2374_s19, %s21_s19   ;;  %s2325_s18 = sphi %s2372_s18, %s3844_s18   ;;  %s2321_s17 = sphi %s2370_s17, %s3843_s17   ;;  %s2317_s16 = sphi %s2368_s16, %s3842_s16   ;;  %s2313_s15 = sphi %s2366_s15, %s3841_s15   ;;  %s2309_s14 = sphi %s2364_s14, %s3840_s14   ;;  %s2305_s13 = sphi %s2362_s13, %s3839_s13   ;;  %s2301_s12 = sphi %s2360_s12, %s3838_s12   ;;  %s2297_s11 = sphi %s2358_s11, %s3837_s11   ;;  %s2293_s10 = sphi %s2356_s10, %s3836_s10   ;;  %s2289_s9 = sphi %s2354_s9, %s3835_s9  }
   0xf   : > { %s33_s21 = sadd.s32 1, %s2325_s18  ;;  %p47_p0 = scmp.ne.s32.totalorder %s2309_s14, %s2305_s13 }
  0x10   : > { %p48_p1 = scmp.eq.s32.totalorder %s2329_s19, 0  ;;  %p53_p2 = scmp.ne.s32.totalorder %s2305_s13, %s2301_s12 }
  0x11   : > { %p2415_p3 = scmp.eq.s32.totalorder %s1940_s20, 0  ;;  %p3786_p5 = scmp.lt.s32.totalorder %s2329_s19, 16 }
  0x12   : > { %p49_p4 = por %p48_p1, %p47_p0  ;;  %s133_s24 = sand.u32 1, %s2309_s14  }
  0x13   : > { %p2424_p6 = por %p2415_p3, %p53_p2  ;;  %s1962_s25 = smul.u32 48, %s133_s24 }
  0x14   : > { %s1963_s26 = smul.u32 48, %s2325_s18  ;;  %p1976_p7 = pnand %p3786_p5, %p49_p4 }
  0x15   : > { %s3805_s0 = sld [smem:[#allocation16_spill]]  ;;  %s137_s30 = scalar_lea.vmem [#allocation2], %s1962_s25 }
  0x16   : > { %s145_s3 = sshll.u32 %s137_s30, 4  ;;  %p1946_p8 = scmp.ge.s32.totalorder %s2329_s19, 1  ;;  %s146_s3 = int_to_ptr.vmem [resolvable:$true] %s145_s3 }
  0x17   : > { %s134_s5 = scalar_lea.sflag [#allocation3], %s133_s24  ;;  %s3787_s6 = smov 128  }
  0x18   : > { %s3788_s7 = smov 8   ;;  %p177_p9 = scmp.lt.s32.totalorder %s2329_s19, 17 }
  0x19   : > { %s40_s12 = sadd.s32 1, %s2309_s14  ;;  %s30_s25 = sadd.s32 1, %s2321_s17 }
  0x1a   : > { %p2440_p10 = pnand %p1946_p8, %p177_p9  ;;  %p31_p11 = scmp.ge.s32.totalorder %s30_s25, 8 }
  0x1b   : > { %s142_s29 = scalar_lea.hbm %s3805_s0, %s1963_s26  ;;  %s1941_s26 = sadd.s32 4294967294, %s2329_s19  }
  0x1c   : > { %s143_s4 = sshll.u32 %s142_s29, 4  ;;  %s68_s24 = sadd.s32 1, %s2297_s11  ;;  %s144_s4 = int_to_ptr.hbm [resolvable:$true] %s143_s4 }
  0x1d   : > { %1978 = dma.hbm_to_vmem [thread:$0]  (!%p1976_p7), %s144_s4, 768, %s146_s3, %s134_s5, %s3787_s6, %s3787_s6, %s3788_s7  }
  0x1e   : > { %p81_p12 = scmp.ne.s32.totalorder %s2293_s10, %s2289_s9  ;;  %s3846_s25 = smov (%p31_p11, %s30_s25), 0 }
  0x1f   : > { %3807 = sst [smem:[#allocation12_spill]] %s3846_s25  ;;  %s3848_s21 = smov (!%p31_p11, %s33_s21), %s2325_s18 }
  0x20   : > { %s63_s27 = ssub.s32 %s2321_s17, %s3846_s25  ;;  %p75_p13 = scmp.ne.s32.totalorder %s2297_s11, %s2293_s10 }
  0x21   : > { %p35_p0 = scmp.ge.s32.totalorder %s3848_s21, 2  ;;  %p2461_p2 = por %p81_p12, %p2415_p3 }
  0x22   : > { %p107_p4 = scmp.eq.s32.totalorder %s1940_s20, 15  ;;  %p113_p7 = scmp.eq.s32.totalorder %s1941_s26, 15 }
  0x23   : > { %s3850_s21 = smov (%p35_p0, %s3848_s21), 0  ;;  %p77_p3 = por %p75_p13, %p48_p1 }
  0x24   : > { %3809 = sst [smem:[#allocation13_spill]] %s3850_s21  ;;  %p2469_p8 = por %p107_p4, %p75_p13 }
  0x25   : > { %p2473_p9 = por %p113_p7, %p81_p12  ;;  %s37_s22 = ssub.s32 %s2325_s18, %s3850_s21 }
  0x26   : > { %s3810_s29 = scalar_select %p2469_p8, 1, 0 }
  0x27   : > { %s3812_s30 = scalar_select %p2473_p9, 1, 0 }
  0x28   : > { %3811 = sst [smem:[#allocation14_spill]] %s3810_s29  ;;  %p38_p11 = scmp.eq.s32.totalorder %s37_s22, 0 }
  0x29   : > { %3813 = sst [smem:[#allocation15_spill]] %s3812_s30  ;;  %s65_s3 = sor.u32 %s63_s27, %s37_s22 }
  0x2a   : > { %p66_p5 = scmp.eq.s32.totalorder %s65_s3, 0  ;;  %s155_s20 = sand.u32 1, %s2297_s11  }
  0x2b   : > { %s2483_s4 = scalar_select %p38_p11, %s2309_s14, %s40_s12  }
  0x2c   : > { %s2486_s5 = scalar_select %p66_p5, %s2297_s11, %s68_s24  }
  0x2d   : > { %s1964_s26 = smul.u32 48, %s155_s20  ;;  %p3814_p0 = scmp.lt.s32.totalorder %s2329_s19, 16 }
  0x2e   : > { %s1965_s6 = smul.u32 6, %s2325_s18  ;;  %s156_s12 = scalar_lea.sflag [#allocation6], %s155_s20 }
  0x2f   : > { %p1979_p4 = pnand %p3814_p0, %p77_p3  ;;  %s1966_s7 = smul.u32 12, %s2321_s17 }
  0x30   : > { %s159_s0 = scalar_lea.vmem [#allocation5], %s1964_s26  ;;  %s3815_s22 = smov 8  }
  0x31   : > { %s169_s25 = sshll.u32 %s159_s0, 4  ;;  %s164_s9 = sadd.s32 %s1966_s7, %s1965_s6  ;;  %s170_s25 = int_to_ptr.vmem [resolvable:$true] %s169_s25 }
  0x32   : > { %s1945_s30 = sshll.u32 %s164_s9, 3  ;;  %s3816_s24 = smov 128  }
  0x33   : > { %s166_s2 = scalar_lea.hbm %s3784_s1, %s1945_s30  ;;  %181 = sbr.rel (%p2440_p10) target bundleno = 2105 (0x839), region = 28 }
  0x34   : > { %s167_s27 = sshll.u32 %s166_s2, 4  ;;  %s183_s0 = sand.u32 (!%p2440_p10), 1, %s2305_s13   ;;  %s168_s27 = int_to_ptr.hbm [resolvable:$true] %s167_s27 }
  0x35   : > { %1981 = dma.hbm_to_vmem [thread:$0]  (!%p1979_p4), %s168_s27, 768, %s170_s25, %s156_s12, %s3816_s24, %s3816_s24, %s3815_s22  }
  0x36   : > { %s1967_s6 = smul.u32 (!%p2440_p10), 48, %s183_s0  ;;  %s184_s9 = scalar_lea.sflag (!%p2440_p10), [#allocation3], %s183_s0 }
  0x38   : > { %s2501_s7 = scalar_lea.vmem [#allocation2], %s1967_s6 }
  0x39   : > { %2276 = dma.done.wait (%p2424_p6), %s184_s9, 768  }
  0x3a   : > { %2278 = vsyncadd (%p2424_p6), %s184_s9, 4294966528  ;;  %s2508_s2 = sand.u32 1, %s2293_s10  }
  0x3b   : > { %s1968_s21 = smul.u32 48, %s2508_s2  ;;  %s194_s8 = scalar_lea.sflag [#allocation6], %s2508_s2 }
  0x3d   : > { %s2512_s25 = scalar_lea.vmem [#allocation5], %s1968_s21 }
  0x3e   : > { %2280 = dma.done.wait (%p2461_p2), %s194_s8, 768  }
  0x3f   : > { %2282 = vsyncadd (%p2461_p2), %s194_s8, 4294966528  ;;  %v2519_v0 = vld [vmem:[%s2512_s25] sm:$0xff]  ;;  %s2333_s23 = smov 127   ;;  %s2334_s29 = smov 1   ;;  %v2528_v2 = vld [vmem:[%s2512_s25 + $0x8] sm:$0xff]  ;;  %v3796_v15 = vmov 0  }
  0x40   : > { %245 = vrot.lane.b32.xlu1 %v2519_v0, %s2333_s23  ;;  %239 = vrot.lane.b32.xlu0 %v2519_v0, %s2334_s29  ;;  %v252_v1 = vmul.f32 2.0, %v2519_v0  ;;  %v253_v3 = vmul.f32 2.0, %v2528_v2  ;;  %v2536_v4 = vld [vmem:[%s2501_s7] sm:$0xff]  ;;  %v2545_v6 = vmul.f32 %v2519_v0, %v2519_v0  ;;  %v2548_v7 = vld [vmem:[%s2501_s7 + $0x8] sm:$0xff]  ;;  %v2558_v8 = vmul.f32 %v2528_v2, %v2528_v2  ;;  %s1957_s28 = sshll.u32 %s2317_s16, 1  ;;  %s1958_s30 = sshll.u32 %s2313_s15, 2 }
  0x41   : > { %v345_v5 = vmul.f32 2.0, %v2536_v4  ;;  %v346_v9 = vmul.f32 2.0, %v2548_v7  ;;  %v2573_v11 = vmul.f32 %v2536_v4, %v2536_v4  ;;  %v2582_v12 = vmul.f32 %v2548_v7, %v2548_v7  ;;  %2084 = vset.pattern.permute.xlu0 %v3796_v15  ;;  %2085 = vset.pattern.permute.xlu1 %v3796_v15  ;;  %s1821_s3 = sadd.s32 %s1958_s30, %s1957_s28  ;;  %s1947_s20 = sshll.u32 %s2508_s2, 4 }
  0x42   : > { %256 = vrot.lane.b32.xlu2 %v252_v1, %s2333_s23  ;;  %v434_v10 = vmul.f32 2.0, %v2558_v8  ;;  %v433_v14 = vmul.f32 2.0, %v2545_v6  ;;  %v2598_v16 = vmul.f32 %v2536_v4, %v2519_v0  ;;  %v3798_v18 = vmov 127   ;;  %s1959_s26 = sshll.u32 %s1821_s3, 3  ;;  %s3829_s27 = sld [smem:[#allocation17_spill]] }
  0x43   : > { %v526_v13 = vmul.f32 2.0, %v2582_v12  ;;  %v525_v17 = vmul.f32 2.0, %v2573_v11  ;;  %2086 = vset.pattern.permute.xlu2 %v3798_v18  ;;  %v2667_v62 = vmul.f32 %v2548_v7, %v2528_v2  ;;  %s223_s24 = scalar_lea.vmem [#allocation7], %s1947_s20  ;;  %s1810_s9 = scalar_lea.sflag [#allocation4], %s2508_s2 }
  0x44   : > { %s1824_s0 = sshll.u32 %s223_s24, 4  ;;  %s1825_s0 = int_to_ptr.vmem [resolvable:$true] %s1824_s0 }
  0x45   : > { %v2671_v63 = vmul.f32 2.0, %v2667_v62 }
  0x48   : > { %247 = vrot.lane.b32.xlu1 %v2528_v2, %s2333_s23  ;;  %241 = vrot.lane.b32.xlu0 %v2528_v2, %s2334_s29  ;;  %s1823_s12 = scalar_lea.hbm %s3829_s27, %s1959_s26 }
  0x49   : > { %s1826_s6 = sshll.u32 %s1823_s12, 4  ;;  %s1827_s6 = int_to_ptr.hbm [resolvable:$true] %s1826_s6 }
  0x4a   : > { %258 = vrot.lane.b32.xlu2 %v253_v3, %s2333_s23 }
  0x50   : > { %279 = vrot.lane.b32.xlu1 %v253_v3, %s2334_s29  ;;  %349 = vrot.lane.b32.xlu0 %v345_v5, %s2333_s23 }
  0x52   : > { %277 = vrot.lane.b32.xlu2 %v252_v1, %s2334_s29 }
  0x58   : > { %333 = vrot.lane.b32.xlu1 %v2536_v4, %s2334_s29  ;;  %421 = vrot.lane.b32.xlu0 %v2545_v6, %s2334_s29 }
  0x5a   : > { %335 = vrot.lane.b32.xlu2 %v2548_v7, %s2334_s29 }
  0x60   : > { %339 = vrot.lane.b32.xlu1 %v2536_v4, %s2333_s23  ;;  %429 = vrot.lane.b32.xlu0 %v2558_v8, %s2333_s23 }
  0x62   : > { %341 = vrot.lane.b32.xlu2 %v2548_v7, %s2333_s23 }
  0x68   : > { %351 = vrot.lane.b32.xlu1 %v346_v9, %s2333_s23  ;;  %459 = vrot.lane.b32.xlu0 %v434_v10, %s2334_s29 }
  0x6a   : > { %371 = vrot.lane.b32.xlu2 %v346_v9, %s2334_s29 }
  0x70   : > { %369 = vrot.lane.b32.xlu1 %v345_v5, %s2334_s29  ;;  %513 = vrot.lane.b32.xlu0 %v2573_v11, %s2334_s29 }
  0x72   : > { %427 = vrot.lane.b32.xlu2 %v2545_v6, %s2333_s23 }
  0x78   : > { %423 = vrot.lane.b32.xlu1 %v2558_v8, %s2334_s29  ;;  %521 = vrot.lane.b32.xlu0 %v2582_v12, %s2333_s23 }
  0x7a   : > { %439 = vrot.lane.b32.xlu2 %v434_v10, %s2333_s23 }
  0x80   : > { %551 = vrot.lane.b32.xlu0 %v526_v13, %s2334_s29  ;;  %437 = vrot.lane.b32.xlu1 %v433_v14, %s2333_s23 }
  0x82   : > { %457 = vrot.lane.b32.xlu2 %v433_v14, %s2334_s29 }
  0x88   : > { %515 = vrot.lane.b32.xlu1 %v2582_v12, %s2334_s29  ;;  %605 = vrot.lane.b32.xlu0 %v2598_v16, %s2334_s29 }
  0x8a   : > { %519 = vrot.lane.b32.xlu2 %v2573_v11, %s2333_s23 }
  0x90   : > { %529 = vrot.lane.b32.xlu1 %v525_v17, %s2333_s23 }
  0x92   : > { %531 = vrot.lane.b32.xlu2 %v526_v13, %s2333_s23  ;;  %v224_v13 = vlaneseq }
  0x94   : > { %v2679_v14 = vand.u32 127, %v224_v13 }
  0x96   : > { %vm251_vm0 = vcmp.eq.s32.totalorder %v2679_v14, 0  ;;  %vm276_vm1 = vcmp.eq.s32.totalorder %v2679_v14, 127 }
  0x9a   : > { %549 = vrot.lane.b32.xlu2 %v525_v17, %s2334_s29 }
  0x9c   : > { %v257_v19 = vpop.permute.xlu2 %256 }
  0x9d   : > { %v262_v20 = vadd.f32 %v257_v19, %v2519_v0 }
  0x9f   : > { %266 = vperm.xlu0 %2084, %v262_v20  }
  0xa4   : > { %v259_v21 = vpop.permute.xlu2 %258 }
  0xa5   : > { %v263_v22 = vadd.f32 %v259_v21, %v2528_v2  ;;  %v617_v2 = vmul.f32 2.0, %v2598_v16 }
  0xa7   : > { %271 = vperm.xlu1 %2085, %v263_v22  }
  0xac   : > { %v278_v23 = vpop.permute.xlu2 %277 }
  0xad   : > { %v283_v24 = vadd.f32 %v278_v23, %v2519_v0 }
  0xaf   : > { %287 = vperm.xlu2 %2086, %v283_v24   ;;  %2088 = vset.pattern.permute.xlu1 %v3798_v18 }
  0xb2   : > { %v2615_v25 = vpop.permute.xlu1 %245  ;;  %v2617_v26 = vpop.permute.xlu0 %239 }
  0xb3   : > { %v243_v17 = vadd.f32 %v2617_v26, %v2519_v0 }
  0xb4   : > { %v2619_v27 = vpop.permute.xlu2 %335 }
  0xb5   : > { %v249_v19 = vadd.f32 %v2615_v25, %v243_v17  ;;  %v338_v26 = vadd.f32 %v2619_v27, %v2548_v7 }
  0xb7   : > { %2087 = vset.pattern.permute.xlu2 %v3796_v15 }
  0xba   : > { %v2622_v28 = vpop.permute.xlu1 %247  ;;  %v2624_v29 = vpop.permute.xlu0 %241 }
  0xbc   : > { %v2626_v30 = vpop.permute.xlu2 %341 }
  0xc2   : > { %v2628_v31 = vpop.permute.xlu1 %279  ;;  %v350_v32 = vpop.permute.xlu0 %349 }
  0xc3   : > { %v355_v33 = vadd.f32 %v350_v32, %v2536_v4  ;;  %v344_v32 = vadd.f32 %v2626_v30, %v338_v26 }
  0xc4   : > { %v372_v34 = vpop.permute.xlu2 %371 }
  0xc5   : > { %359 = vperm.xlu2 %2087, %v355_v33   ;;  %v376_v37 = vadd.f32 %v372_v34, %v2548_v7 }
  0xca   : > { %v2631_v35 = vpop.permute.xlu1 %333  ;;  %v2633_v36 = vpop.permute.xlu0 %421 }
  0xcc   : > { %v2637_v38 = vpop.permute.xlu2 %427 }
  0xcd   : > { %2089 = vset.pattern.permute.xlu2 %v3798_v18 }
  0xce   : > { %384 = vperm.xlu2 %2089, %v376_v37  }
  0xd2   : > { %v2639_v39 = vpop.permute.xlu1 %339  ;;  %v2641_v40 = vpop.permute.xlu0 %429 }
  0xd4   : > { %v440_v41 = vpop.permute.xlu2 %439 }
  0xd5   : > { %v444_v52 = vadd.f32 %v440_v41, %v2558_v8 }
  0xda   : > { %v352_v42 = vpop.permute.xlu1 %351  ;;  %v460_v43 = vpop.permute.xlu0 %459 }
  0xdb   : > { %v356_v44 = vadd.f32 %v352_v42, %v2548_v7  ;;  %v464_v45 = vadd.f32 %v460_v43, %v2558_v8 }
  0xdc   : > { %v458_v49 = vpop.permute.xlu2 %457 }
  0xdd   : > { %364 = vperm.xlu0 %2084, %v356_v44   ;;  %472 = vperm.xlu2 %2089, %v464_v45   ;;  %v463_v58 = vadd.f32 %v458_v49, %v2545_v6  ;;  %v337_v44 = vadd.f32 %v2631_v35, %v2536_v4  ;;  %v2712_v45 = vshrl.u32 %v224_v13, 7 }
  0xdf   : > { %v343_v27 = vadd.f32 %v2639_v39, %v337_v44  ;;  %vm299_vm2 = vcmp.lt.s32.totalorder %v2712_v45, 1  ;;  %vm306_vm3 = vcmp.lt.s32.totalorder %v2712_v45, 7  ;;  %vm311_vm5 = vcmp.eq.s32.totalorder %v2712_v45, 0 }
  0xe2   : > { %v370_v46 = vpop.permute.xlu1 %369  ;;  %v2645_v47 = vpop.permute.xlu0 %513 }
  0xe3   : > { %v375_v48 = vadd.f32 %v370_v46, %v2536_v4 }
  0xe4   : > { %v2654_v53 = vpop.permute.xlu2 %519 }
  0xe5   : > { %379 = vperm.xlu1 %2088, %v375_v48   ;;  %v2719_v48 = vadd.s32 8, %v2712_v45 }
  0xe7   : > { %vm322_vm4 = vcmp.eq.s32.totalorder %v2719_v48, 15 }
  0xea   : > { %v2648_v50 = vpop.permute.xlu1 %423  ;;  %v2650_v51 = vpop.permute.xlu0 %521 }
  0xec   : > { %v532_v59 = vpop.permute.xlu2 %531 }
  0xed   : > { %2090 = vset.pattern.permute.xlu1 %v3796_v15  ;;  %v536_v61 = vadd.f32 %v532_v59, %v2582_v12 }
  0xee   : > { %452 = vperm.xlu1 %2090, %v444_v52  }
  0xf2   : > { %v552_v54 = vpop.permute.xlu0 %551  ;;  %v438_v55 = vpop.permute.xlu1 %437 }
  0xf3   : > { %v556_v56 = vadd.f32 %v552_v54, %v2582_v12  ;;  %v443_v57 = vadd.f32 %v438_v55, %v2545_v6 }
  0xf4   : > { %v550_v3 = vpop.permute.xlu2 %549 }
  0xf5   : > { %447 = vperm.xlu0 %2084, %v443_v57   ;;  %564 = vperm.xlu2 %2089, %v556_v56   ;;  %v555_v9 = vadd.f32 %v550_v3, %v2573_v11 }
  0xf6   : > { %2091 = vset.pattern.permute.xlu1 %v3798_v18 }
  0xf7   : > { %467 = vperm.xlu1 %2091, %v463_v58   ;;  %v426_v58 = vadd.f32 %v2648_v50, %v2558_v8 }
  0xfa   : > { %v2660_v60 = vpop.permute.xlu1 %515  ;;  %v606_v10 = vpop.permute.xlu0 %605 }
  0xfb   : > { %v609_v7 = vadd.f32 %v606_v10, %v2598_v16 }
  0xfd   : > { %611 = vrot.lane.b32.xlu2 %v2598_v16, %s2333_s23 }
  0xff   : > { %2092 = vset.pattern.permute.xlu1 %v3796_v15 }
 0x100   : > { %544 = vperm.xlu1 %2092, %v536_v61  }
 0x102   : > { %v530_v1 = vpop.permute.xlu1 %529 }
 0x103   : > { %v535_v5 = vadd.f32 %v530_v1, %v2573_v11 }
 0x105   : > { %539 = vperm.xlu0 %2084, %v535_v5   ;;  %623 = vrot.lane.b32.xlu2 %v2671_v63, %s2333_s23 }
 0x108   : > { %2093 = vset.pattern.permute.xlu1 %v3798_v18 }
 0x109   : > { %559 = vperm.xlu1 %2093, %v555_v9   ;;  %v288_v20 = vpop.permute.xlu2 %287 }
 0x10d   : > { %641 = vrot.lane.b32.xlu2 %v617_v2, %s2334_s29  ;;  %613 = vrot.lane.b32.xlu0 %v2667_v62, %s2333_s23 }
 0x111   : > { %v267_v21 = vpop.permute.xlu0 %266  ;;  %607 = vrot.lane.b32.xlu1 %v2667_v62, %s2334_s29 }
 0x112   : > { %v274_v22 = vsel %vm251_vm0, %v267_v21, %v249_v19  ;;  %2094 = vset.pattern.permute.xlu1 %v3796_v15  ;;  %v432_v19 = vadd.f32 %v2641_v40, %v426_v58 }
 0x113   : > { %v2696_v0 = vsel %vm276_vm1, %v288_v20, %v274_v22 }
 0x119   : > { %621 = vrot.lane.b32.xlu1 %v617_v2, %s2333_s23  ;;  %v2702_v33 = vpop.permute.xlu1 %271 }
 0x11f   : > { %v360_v23 = vpop.permute.xlu2 %359 }
 0x120   : > { %v367_v46 = vsel %vm251_vm0, %v360_v23, %v343_v27 }
 0x128   : > { %v385_v24 = vpop.permute.xlu2 %384 }
 0x137   : > { %v473_v25 = vpop.permute.xlu2 %472 }
 0x14f   : > { %v365_v34 = vpop.permute.xlu0 %364  ;;  %v2704_v37 = vpop.permute.xlu2 %564 }
 0x150   : > { %v368_v41 = vsel %vm251_vm0, %v365_v34, %v344_v32  ;;  %v425_v32 = vadd.f32 %v2633_v36, %v2545_v6 }
 0x151   : > { %v388_v42 = vsel %vm276_vm1, %v385_v24, %v368_v41 }
 0x152   : > { %v409_v43 = vmul.f32 2.0, %v388_v42  ;;  %v390_v54 = vrot.slane %v388_v42, 7  ;;  %v396_v39 = vrot.slane %v388_v42, 1 }
 0x154   : > { %v411_v30 = vrot.slane %v409_v43, 7 }
 0x156   : > { %v413_v59 = vadd.f32 %v411_v30, %v388_v42 }
 0x157   : > { %v380_v49 = vpop.permute.xlu1 %379  ;;  %v612_v52 = vpop.permute.xlu2 %611 }
 0x158   : > { %v387_v4 = vsel %vm276_vm1, %v380_v49, %v367_v46  ;;  %v2725_v35 = vadd.f32 %v612_v52, %v609_v7  ;;  %v414_v2 = vperm.slane %v413_v59, 7 }
 0x159   : > { %v389_v55 = vrot.slane %v387_v4, 7  ;;  %v395_v56 = vrot.slane %v387_v4, 1  ;;  %v401_v57 = vmul.f32 2.0, %v387_v4 }
 0x15b   : > { %v391_v61 = vsel %vm299_vm2, %v389_v55, %v390_v54  ;;  %v392_v1 = vsel %vm299_vm2, %v390_v54, %v389_v55  ;;  %v397_v3 = vsel %vm306_vm3, %v395_v56, %v396_v39  ;;  %v398_v5 = vsel %vm306_vm3, %v396_v39, %v395_v56 }
 0x15c   : > { %v393_v9 = vadd.f32 %v392_v1, %v387_v4  ;;  %v394_v10 = vadd.f32 %v391_v61, %v388_v42  ;;  %v403_v13 = vrot.slane %v401_v57, 1  ;;  %v431_v42 = vadd.f32 %v2637_v38, %v425_v32 }
 0x15d   : > { %v518_v54 = vadd.f32 %v2660_v60, %v2582_v12 }
 0x15e   : > { %v399_v8 = vadd.f32 %v397_v3, %v393_v9  ;;  %v400_v50 = vadd.f32 %v398_v5, %v394_v10  ;;  %v405_v17 = vadd.f32 %v403_v13, %v387_v4  ;;  %v2773_v5 = vld [vmem:[%s2512_s25 + $0x18] sm:$0xff] }
 0x15f   : > { %v624_v20 = vpop.permute.xlu2 %623  ;;  %v524_v9 = vadd.f32 %v2650_v51, %v518_v54 }
 0x160   : > { %v406_v21 = vperm.slane %v405_v17, 0  ;;  %v2742_v22 = vsel %vm322_vm4, %v414_v2, %v400_v50  ;;  %v628_v23 = vadd.f32 %v624_v20, %v2667_v62  ;;  %v453_v24 = vpop.permute.xlu1 %452  ;;  %v2792_v17 = vld [vmem:[%s2512_s25 + $0x10] sm:$0xff] }
 0x161   : > { %v456_v26 = vsel %vm251_vm0, %v453_v24, %v432_v19  ;;  %v517_v19 = vadd.f32 %v2645_v47, %v2573_v11 }
 0x162   : > { %v2751_v40 = vsel %vm311_vm5, %v406_v21, %v399_v8  ;;  %v476_v34 = vsel %vm276_vm1, %v473_v25, %v456_v26  ;;  %636 = vperm.xlu1 %2094, %v628_v23   ;;  %v781_v21 = vmul.f32 2.0, %v2792_v17 }
 0x163   : > { %v497_v41 = vmul.f32 2.0, %v476_v34  ;;  %v478_v36 = vrot.slane %v476_v34, 7  ;;  %v484_v25 = vrot.slane %v476_v34, 1  ;;  %v523_v24 = vadd.f32 %v2654_v53, %v517_v19 }
 0x165   : > { %v499_v7 = vrot.slane %v497_v41, 7 }
 0x167   : > { %v448_v43 = vpop.permute.xlu0 %447  ;;  %v642_v44 = vpop.permute.xlu2 %641  ;;  %v501_v4 = vadd.f32 %v499_v7, %v476_v34 }
 0x168   : > { %v455_v27 = vsel %vm251_vm0, %v448_v43, %v431_v42  ;;  %v647_v30 = vadd.f32 %v642_v44, %v2598_v16 }
 0x169   : > { %v468_v6 = vpop.permute.xlu1 %467  ;;  %v502_v1 = vperm.slane %v501_v4, 7  ;;  %v2816_v4 = vmul.f32 0.11111111, %v2751_v40 }
 0x16a   : > { %v475_v46 = vsel %vm276_vm1, %v468_v6, %v455_v27  ;;  %2095 = vset.pattern.permute.xlu1 %v3798_v18 }
 0x16b   : > { %v477_v49 = vrot.slane %v475_v46, 7  ;;  %v483_v52 = vrot.slane %v475_v46, 1  ;;  %v489_v38 = vmul.f32 2.0, %v475_v46  ;;  %651 = vperm.xlu1 %2095, %v647_v30   ;;  %v2832_v40 = vmul.f32 %v2816_v4, %v2816_v4 }
 0x16d   : > { %v479_v39 = vsel %vm299_vm2, %v477_v49, %v478_v36  ;;  %v480_v55 = vsel %vm299_vm2, %v478_v36, %v477_v49  ;;  %v485_v56 = vsel %vm306_vm3, %v483_v52, %v484_v25  ;;  %v486_v57 = vsel %vm306_vm3, %v484_v25, %v483_v52 }
 0x16e   : > { %v481_v58 = vadd.f32 %v480_v55, %v475_v46  ;;  %v482_v59 = vadd.f32 %v479_v39, %v476_v34  ;;  %v491_v61 = vrot.slane %v489_v38, 1  ;;  %v2813_v25 = vmul.f32 0.11111111, %v2742_v22 }
 0x170   : > { %v487_v3 = vadd.f32 %v485_v56, %v481_v58  ;;  %v488_v12 = vadd.f32 %v486_v57, %v482_v59  ;;  %v493_v60 = vadd.f32 %v491_v61, %v475_v46  ;;  %v2824_v58 = vmul.f32 %v2813_v25, %v2813_v25 }
 0x172   : > { %v494_v10 = vperm.slane %v493_v60, 0  ;;  %v2778_v13 = vsel %vm322_vm4, %v502_v1, %v488_v12  ;;  %v545_v2 = vpop.permute.xlu1 %544 }
 0x173   : > { %v548_v8 = vsel %vm251_vm0, %v545_v2, %v524_v9  ;;  %771 = vrot.lane.b32.xlu1 %v2773_v5, %s2334_s29 }
 0x174   : > { %v2786_v50 = vsel %vm311_vm5, %v494_v10, %v487_v3  ;;  %v568_v51 = vsel %vm276_vm1, %v2704_v37, %v548_v8  ;;  %2096 = vset.pattern.permute.xlu1 %v3796_v15 }
 0x175   : > { %v589_v20 = vmul.f32 2.0, %v568_v51  ;;  %v570_v37 = vrot.slane %v568_v51, 7  ;;  %v576_v42 = vrot.slane %v568_v51, 1 }
 0x177   : > { %v540_v23 = vpop.permute.xlu0 %539  ;;  %v591_v26 = vrot.slane %v589_v20, 7  ;;  %v782_v20 = vmul.f32 2.0, %v2773_v5 }
 0x178   : > { %v547_v32 = vsel %vm251_vm0, %v540_v23, %v523_v24 }
 0x179   : > { %v593_v44 = vadd.f32 %v591_v26, %v568_v51 }
 0x17b   : > { %v560_v34 = vpop.permute.xlu1 %559  ;;  %785 = vrot.lane.b32.xlu1 %v781_v21, %s2333_s23  ;;  %v594_v49 = vperm.slane %v593_v44, 7 }
 0x17c   : > { %v567_v41 = vsel %vm276_vm1, %v560_v34, %v547_v32 }
 0x17d   : > { %v569_v43 = vrot.slane %v567_v41, 7  ;;  %v575_v11 = vrot.slane %v567_v41, 1  ;;  %v581_v47 = vmul.f32 2.0, %v567_v41 }
 0x17f   : > { %v571_v7 = vsel %vm299_vm2, %v569_v43, %v570_v37  ;;  %v572_v53 = vsel %vm299_vm2, %v570_v37, %v569_v43  ;;  %v577_v27 = vsel %vm306_vm3, %v575_v11, %v576_v42  ;;  %v578_v30 = vsel %vm306_vm3, %v576_v42, %v575_v11  ;;  %v614_v9 = vpop.permute.xlu0 %613 }
 0x180   : > { %v573_v6 = vadd.f32 %v572_v53, %v567_v41  ;;  %v574_v36 = vadd.f32 %v571_v7, %v568_v51  ;;  %v583_v46 = vrot.slane %v581_v47, 1 }
 0x182   : > { %v579_v52 = vadd.f32 %v577_v27, %v573_v6  ;;  %v580_v38 = vadd.f32 %v578_v30, %v574_v36  ;;  %v585_v54 = vadd.f32 %v583_v46, %v567_v41  ;;  %v2864_v41 = vld [vmem:[%s2501_s7 + $0x10] sm:$0xff] }
 0x183   : > { %v608_v39 = vpop.permute.xlu1 %607 }
 0x184   : > { %v586_v55 = vperm.slane %v585_v54, 0  ;;  %v596_v56 = vsel %vm322_vm4, %v594_v49, %v580_v38  ;;  %v610_v60 = vadd.f32 %v608_v39, %v2667_v62 }
 0x185   : > { %v2820_v57 = vmul.f32 0.11111111, %v596_v56 }
 0x186   : > { %v587_v22 = vsel %vm311_vm5, %v586_v55, %v579_v52  ;;  %v616_v10 = vadd.f32 %v614_v9, %v610_v60 }
 0x187   : > { %v2828_v59 = vmul.f32 0.11111111, %v587_v22 }
 0x18b   : > { %v622_v3 = vpop.permute.xlu1 %621 }
 0x18c   : > { %v627_v12 = vadd.f32 %v622_v3, %v2598_v16 }
 0x18e   : > { %631 = vperm.xlu0 %2084, %v627_v12  }
 0x196   : > { %643 = vrot.lane.b32.xlu0 %v2671_v63, %s2334_s29 }
 0x19e   : > { %769 = vrot.lane.b32.xlu0 %v2792_v17, %s2334_s29 }
 0x1a6   : > { %777 = vrot.lane.b32.xlu0 %v2773_v5, %s2333_s23 }
 0x1d4   : > { %v637_v2 = vpop.permute.xlu1 %636 }
 0x1d5   : > { %v640_v8 = vsel %vm251_vm0, %v637_v2, %v616_v10 }
 0x1dd   : > { %v652_v51 = vpop.permute.xlu1 %651 }
 0x1e5   : > { %v2848_v16 = vpop.permute.xlu1 %771 }
 0x1ed   : > { %v786_v19 = vpop.permute.xlu1 %785 }
 0x1ee   : > { %v791_v63 = vadd.f32 %v2792_v17, %v786_v19 }
 0x1f0   : > { %795 = vperm.xlu0 %2084, %v791_v63  }
 0x1f8   : > { %807 = vrot.lane.b32.xlu0 %v782_v20, %s2334_s29 }
 0x200   : > { %v632_v23 = vpop.permute.xlu0 %631  ;;  %855 = vrot.lane.b32.xlu0 %v2864_v41, %s2334_s29 }
 0x201   : > { %v639_v24 = vsel %vm251_vm0, %v632_v23, %v2725_v35  ;;  %v2869_v35 = vld [vmem:[%s2501_s7 + $0x18] sm:$0xff] }
 0x202   : > { %v659_v26 = vsel %vm276_vm1, %v652_v51, %v639_v24  ;;  %v868_v24 = vmul.f32 2.0, %v2869_v35 }
 0x203   : > { %v661_v44 = vrot.slane %v659_v26, 7  ;;  %v667_v7 = vrot.slane %v659_v26, 1 }
 0x208   : > { %v644_v32 = vpop.permute.xlu0 %643  ;;  %863 = vrot.lane.b32.xlu0 %v2869_v35, %s2333_s23 }
 0x209   : > { %v648_v34 = vadd.f32 %v644_v32, %v2667_v62  ;;  %v673_v62 = vmul.f32 2.0, %v659_v26 }
 0x20b   : > { %656 = vperm.xlu2 %2089, %v648_v34   ;;  %v675_v11 = vrot.slane %v673_v62, 1  ;;  %v867_v34 = vmul.f32 2.0, %v2864_v41 }
 0x20d   : > { %v677_v6 = vadd.f32 %v675_v11, %v659_v26 }
 0x20f   : > { %v678_v3 = vperm.slane %v677_v6, 0 }
 0x210   : > { %v770_v37 = vpop.permute.xlu0 %769 }
 0x211   : > { %v773_v38 = vadd.f32 %v2792_v17, %v770_v37 }
 0x213   : > { %775 = vrot.lane.b32.xlu2 %v2792_v17, %s2333_s23 }
 0x218   : > { %v2871_v42 = vpop.permute.xlu0 %777 }
 0x21b   : > { %787 = vrot.lane.b32.xlu2 %v782_v20, %s2333_s23 }
 0x223   : > { %805 = vrot.lane.b32.xlu2 %v781_v21, %s2334_s29 }
 0x262   : > { %v796_v43 = vpop.permute.xlu0 %795 }
 0x265   : > { %v657_v47 = vpop.permute.xlu2 %656 }
 0x266   : > { %v660_v21 = vsel %vm276_vm1, %v657_v47, %v640_v8 }
 0x267   : > { %v662_v53 = vrot.slane %v660_v21, 7  ;;  %v668_v27 = vrot.slane %v660_v21, 1  ;;  %v681_v30 = vmul.f32 2.0, %v660_v21 }
 0x269   : > { %v663_v36 = vsel %vm299_vm2, %v661_v44, %v662_v53  ;;  %v664_v46 = vsel %vm299_vm2, %v662_v53, %v661_v44  ;;  %v669_v49 = vsel %vm306_vm3, %v667_v7, %v668_v27  ;;  %v670_v52 = vsel %vm306_vm3, %v668_v27, %v667_v7 }
 0x26a   : > { %v665_v54 = vadd.f32 %v664_v46, %v659_v26  ;;  %v666_v39 = vadd.f32 %v663_v36, %v660_v21  ;;  %v683_v55 = vrot.slane %v681_v30, 7  ;;  %v808_v56 = vpop.permute.xlu0 %807  ;;  %v774_v27 = vadd.f32 %v2773_v5, %v2848_v16 }
 0x26b   : > { %v812_v22 = vadd.f32 %v2773_v5, %v808_v56  ;;  %v2918_v30 = vmul.f32 %v2773_v5, %v2773_v5 }
 0x26c   : > { %v671_v12 = vadd.f32 %v669_v49, %v665_v54  ;;  %v672_v60 = vadd.f32 %v670_v52, %v666_v39  ;;  %v685_v9 = vadd.f32 %v683_v55, %v660_v21  ;;  %v780_v6 = vadd.f32 %v2871_v42, %v774_v27 }
 0x26d   : > { %820 = vperm.xlu2 %2089, %v812_v22   ;;  %v776_v10 = vpop.permute.xlu2 %775  ;;  %v2927_v49 = vmul.f32 %v2792_v17, %v2792_v17 }
 0x26e   : > { %v2889_v2 = vsel %vm311_vm5, %v678_v3, %v671_v12  ;;  %v686_v8 = vperm.slane %v685_v9, 7  ;;  %v779_v51 = vadd.f32 %v776_v10, %v773_v38 }
 0x26f   : > { %v955_v38 = vmul.f32 2.0, %v2927_v49 }
 0x270   : > { %v2893_v19 = vsel %vm322_vm4, %v686_v8, %v672_v60  ;;  %v803_v63 = vsel %vm251_vm0, %v796_v43, %v779_v51 }
 0x272   : > { %v856_v47 = vpop.permute.xlu0 %855 }
 0x273   : > { %v859_v44 = vadd.f32 %v2864_v41, %v856_v47 }
 0x275   : > { %861 = vrot.lane.b32.xlu2 %v2864_v41, %s2333_s23  ;;  %v788_v20 = vpop.permute.xlu2 %787 }
 0x276   : > { %v792_v23 = vadd.f32 %v2773_v5, %v788_v20 }
 0x278   : > { %800 = vperm.xlu1 %2096, %v792_v23  }
 0x27a   : > { %v864_v27 = vpop.permute.xlu0 %863 }
 0x27d   : > { %873 = vrot.lane.b32.xlu2 %v868_v24, %s2333_s23  ;;  %v806_v26 = vpop.permute.xlu2 %805 }
 0x27e   : > { %v811_v32 = vadd.f32 %v2792_v17, %v806_v26 }
 0x280   : > { %2097 = vset.pattern.permute.xlu1 %v3798_v18 }
 0x281   : > { %815 = vperm.xlu1 %2097, %v811_v32  }
 0x285   : > { %891 = vrot.lane.b32.xlu2 %v867_v34, %s2334_s29 }
 0x289   : > { %857 = vrot.lane.b32.xlu1 %v2869_v35, %s2334_s29 }
 0x28a   : > { %2098 = vset.pattern.permute.xlu1 %v3796_v15 }
 0x291   : > { %871 = vrot.lane.b32.xlu1 %v867_v34, %s2333_s23 }
 0x2c7   : > { %v821_v37 = vpop.permute.xlu2 %820 }
 0x2cf   : > { %v862_v62 = vpop.permute.xlu2 %861 }
 0x2d0   : > { %v865_v21 = vadd.f32 %v862_v62, %v859_v44 }
 0x2d7   : > { %v874_v43 = vpop.permute.xlu2 %873 }
 0x2d8   : > { %v878_v11 = vadd.f32 %v2869_v35, %v874_v43 }
 0x2da   : > { %886 = vperm.xlu1 %2098, %v878_v11  }
 0x2df   : > { %v892_v7 = vpop.permute.xlu2 %891 }
 0x2e0   : > { %v897_v53 = vadd.f32 %v2864_v41, %v892_v7 }
 0x2e2   : > { %2099 = vset.pattern.permute.xlu1 %v3798_v18 }
 0x2e3   : > { %901 = vperm.xlu1 %2099, %v897_v53  }
 0x2ea   : > { %v801_v36 = vpop.permute.xlu1 %800 }
 0x2eb   : > { %v804_v46 = vsel %vm251_vm0, %v801_v36, %v780_v6  ;;  %945 = vrot.lane.b32.xlu1 %v2918_v30, %s2334_s29 }
 0x2ec   : > { %v824_v16 = vsel %vm276_vm1, %v821_v37, %v804_v46  ;;  %2100 = vset.pattern.permute.xlu1 %v3796_v15 }
 0x2ed   : > { %v845_v52 = vmul.f32 2.0, %v824_v16  ;;  %v826_v39 = vrot.slane %v824_v16, 7  ;;  %v832_v56 = vrot.slane %v824_v16, 1 }
 0x2ef   : > { %v847_v42 = vrot.slane %v845_v52, 7 }
 0x2f1   : > { %v849_v60 = vadd.f32 %v847_v42, %v824_v16 }
 0x2f3   : > { %v816_v54 = vpop.permute.xlu1 %815  ;;  %959 = vrot.lane.b32.xlu1 %v955_v38, %s2333_s23  ;;  %v850_v26 = vperm.slane %v849_v60, 7  ;;  %v2973_v60 = vmul.f32 %v2864_v41, %v2864_v41 }
 0x2f4   : > { %v823_v55 = vsel %vm276_vm1, %v816_v54, %v803_v63  ;;  %v956_v54 = vmul.f32 2.0, %v2918_v30 }
 0x2f5   : > { %v825_v22 = vrot.slane %v823_v55, 7  ;;  %v831_v3 = vrot.slane %v823_v55, 1  ;;  %v837_v12 = vmul.f32 2.0, %v823_v55 }
 0x2f7   : > { %v827_v9 = vsel %vm299_vm2, %v825_v22, %v826_v39  ;;  %v828_v10 = vsel %vm299_vm2, %v826_v39, %v825_v22  ;;  %v833_v8 = vsel %vm306_vm3, %v831_v3, %v832_v56  ;;  %v834_v51 = vsel %vm306_vm3, %v832_v56, %v831_v3 }
 0x2f8   : > { %v829_v20 = vadd.f32 %v828_v10, %v823_v55  ;;  %v830_v23 = vadd.f32 %v827_v9, %v824_v16  ;;  %v839_v63 = vrot.slane %v837_v12, 1  ;;  %v2981_v9 = vmul.f32 %v2869_v35, %v2869_v35 }
 0x2fa   : > { %v835_v32 = vadd.f32 %v833_v8, %v829_v20  ;;  %v836_v34 = vadd.f32 %v834_v51, %v830_v23  ;;  %v841_v37 = vadd.f32 %v839_v63, %v823_v55 }
 0x2fb   : > { %v858_v62 = vpop.permute.xlu1 %857 }
 0x2fc   : > { %v842_v43 = vperm.slane %v841_v37, 0  ;;  %v852_v11 = vsel %vm322_vm4, %v850_v26, %v836_v34  ;;  %v860_v53 = vadd.f32 %v2869_v35, %v858_v62 }
 0x2fe   : > { %v843_v47 = vsel %vm311_vm5, %v842_v43, %v835_v32  ;;  %v866_v6 = vadd.f32 %v864_v27, %v860_v53 }
 0x303   : > { %v872_v44 = vpop.permute.xlu1 %871 }
 0x304   : > { %v877_v7 = vadd.f32 %v2864_v41, %v872_v44 }
 0x306   : > { %881 = vperm.xlu0 %2084, %v877_v7  }
 0x30e   : > { %893 = vrot.lane.b32.xlu0 %v868_v24, %s2334_s29 }
 0x316   : > { %943 = vrot.lane.b32.xlu0 %v2927_v49, %s2334_s29 }
 0x31e   : > { %951 = vrot.lane.b32.xlu0 %v2918_v30, %s2333_s23 }
 0x34c   : > { %v887_v36 = vpop.permute.xlu1 %886 }
 0x34d   : > { %v890_v46 = vsel %vm251_vm0, %v887_v36, %v866_v6 }
 0x355   : > { %v902_v16 = vpop.permute.xlu1 %901 }
 0x35d   : > { %v2957_v52 = vpop.permute.xlu1 %945 }
 0x365   : > { %v960_v42 = vpop.permute.xlu1 %959 }
 0x366   : > { %v965_v24 = vadd.f32 %v960_v42, %v2927_v49  ;;  %v854_v42 = vmul.f32 0.11111111, %v852_v11 }
 0x368   : > { %969 = vperm.xlu0 %2084, %v965_v24  }
 0x370   : > { %981 = vrot.lane.b32.xlu0 %v956_v54, %s2334_s29 }
 0x378   : > { %v882_v39 = vpop.permute.xlu0 %881  ;;  %1035 = vrot.lane.b32.xlu0 %v2973_v60, %s2334_s29 }
 0x379   : > { %v889_v55 = vsel %vm251_vm0, %v882_v39, %v865_v21 }
 0x37a   : > { %v909_v56 = vsel %vm276_vm1, %v902_v16, %v889_v55  ;;  %v853_v16 = vmul.f32 0.11111111, %v843_v47 }
 0x37b   : > { %v923_v10 = vmul.f32 2.0, %v909_v56  ;;  %v911_v20 = vrot.slane %v909_v56, 7  ;;  %v917_v63 = vrot.slane %v909_v56, 1 }
 0x380   : > { %v894_v22 = vpop.permute.xlu0 %893  ;;  %1043 = vrot.lane.b32.xlu0 %v2981_v9, %s2333_s23 }
 0x381   : > { %v898_v3 = vadd.f32 %v2869_v35, %v894_v22 }
 0x383   : > { %906 = vperm.xlu2 %2089, %v898_v3  }
 0x388   : > { %v944_v12 = vpop.permute.xlu0 %943 }
 0x389   : > { %v947_v53 = vadd.f32 %v944_v12, %v2927_v49  ;;  %v1217_v12 = vmul.f32 2.0, %v853_v16 }
 0x38b   : > { %949 = vrot.lane.b32.xlu2 %v2927_v49, %s2333_s23 }
 0x390   : > { %v2977_v21 = vpop.permute.xlu0 %951 }
 0x393   : > { %961 = vrot.lane.b32.xlu2 %v956_v54, %s2333_s23 }
 0x39b   : > { %979 = vrot.lane.b32.xlu2 %v955_v38, %s2334_s29  ;;  %v925_v38 = vrot.slane %v923_v10, 1 }
 0x39d   : > { %v927_v37 = vadd.f32 %v925_v38, %v909_v56 }
 0x39f   : > { %v928_v54 = vperm.slane %v927_v37, 0  ;;  %v3011_v37 = vmul.f32 %v854_v42, %v854_v42 }
 0x3da   : > { %v970_v8 = vpop.permute.xlu0 %969 }
 0x3dd   : > { %v907_v51 = vpop.permute.xlu2 %906 }
 0x3de   : > { %v910_v23 = vsel %vm276_vm1, %v907_v51, %v890_v46 }
 0x3df   : > { %v912_v26 = vrot.slane %v910_v23, 7  ;;  %v918_v32 = vrot.slane %v910_v23, 1  ;;  %v931_v34 = vmul.f32 2.0, %v910_v23 }
 0x3e1   : > { %v913_v62 = vsel %vm299_vm2, %v911_v20, %v912_v26  ;;  %v914_v43 = vsel %vm299_vm2, %v912_v26, %v911_v20  ;;  %v919_v44 = vsel %vm306_vm3, %v917_v63, %v918_v32  ;;  %v920_v7 = vsel %vm306_vm3, %v918_v32, %v917_v63 }
 0x3e2   : > { %v915_v27 = vadd.f32 %v914_v43, %v909_v56  ;;  %v916_v6 = vadd.f32 %v913_v62, %v910_v23  ;;  %v933_v36 = vrot.slane %v931_v34, 7  ;;  %v982_v46 = vpop.permute.xlu0 %981  ;;  %v1218_v20 = vmul.f32 2.0, %v854_v42 }
 0x3e3   : > { %v986_v24 = vadd.f32 %v982_v46, %v2918_v30  ;;  %v3003_v63 = vmul.f32 %v853_v16, %v853_v16 }
 0x3e4   : > { %v921_v39 = vadd.f32 %v919_v44, %v915_v27  ;;  %v922_v55 = vadd.f32 %v920_v7, %v916_v6  ;;  %v935_v22 = vadd.f32 %v933_v36, %v910_v23  ;;  %v3031_v6 = vmul.f32 2.0, %v2981_v9 }
 0x3e5   : > { %994 = vperm.xlu2 %2089, %v986_v24   ;;  %v950_v3 = vpop.permute.xlu2 %949 }
 0x3e6   : > { %v929_v10 = vsel %vm311_vm5, %v928_v54, %v921_v39  ;;  %v936_v38 = vperm.slane %v935_v22, 7  ;;  %v953_v51 = vadd.f32 %v950_v3, %v947_v53 }
 0x3e7   : > { %v939_v56 = vmul.f32 0.11111111, %v929_v10 }
 0x3e8   : > { %v938_v47 = vsel %vm322_vm4, %v936_v38, %v922_v55  ;;  %v977_v11 = vsel %vm251_vm0, %v970_v8, %v953_v51  ;;  %v948_v38 = vadd.f32 %v2957_v52, %v2918_v30  ;;  %v3053_v51 = vmul.f32 %v2869_v35, %v2773_v5 }
 0x3e9   : > { %v940_v26 = vmul.f32 0.11111111, %v938_v47  ;;  %v3005_v23 = vmul.f32 %v939_v56, %v939_v56  ;;  %v3007_v32 = vmul.f32 %v939_v56, %v853_v16  ;;  %v3009_v34 = vmul.f32 %v1217_v12, %v939_v56 }
 0x3ea   : > { %v1047_v16 = vmul.f32 2.0, %v2973_v60  ;;  %v954_v12 = vadd.f32 %v2977_v21, %v948_v38  ;;  %v3062_v47 = vmul.f32 %v2864_v41, %v2792_v17 }
 0x3eb   : > { %v3013_v62 = vmul.f32 %v940_v26, %v854_v42  ;;  %v3015_v43 = vmul.f32 %v1218_v20, %v940_v26  ;;  %v3019_v44 = vadd.f32 %v3005_v23, %v3003_v63  ;;  %v3021_v8 = vmul.f32 %v940_v26, %v940_v26 }
 0x3ec   : > { %v1139_v35 = vmul.f32 2.0, %v3062_v47 }
 0x3ed   : > { %1041 = vrot.lane.b32.xlu2 %v2973_v60, %s2333_s23  ;;  %v962_v7 = vpop.permute.xlu2 %961  ;;  %v3027_v53 = vadd.f32 %v3021_v8, %v3011_v37 }
 0x3ee   : > { %v966_v27 = vadd.f32 %v962_v7, %v2918_v30 }
 0x3f0   : > { %974 = vperm.xlu1 %2100, %v966_v27  }
 0x3f5   : > { %1053 = vrot.lane.b32.xlu2 %v3031_v6, %s2333_s23  ;;  %v980_v36 = vpop.permute.xlu2 %979 }
 0x3f6   : > { %v985_v46 = vadd.f32 %v980_v36, %v2927_v49  ;;  %v1036_v49 = vpop.permute.xlu0 %1035 }
 0x3f7   : > { %v1039_v55 = vadd.f32 %v1036_v49, %v2973_v60 }
 0x3f8   : > { %2101 = vset.pattern.permute.xlu1 %v3798_v18 }
 0x3f9   : > { %989 = vperm.xlu1 %2101, %v985_v46  }
 0x3fd   : > { %1071 = vrot.lane.b32.xlu2 %v1047_v16, %s2334_s29 }
 0x401   : > { %1037 = vrot.lane.b32.xlu1 %v2981_v9, %s2334_s29 }
 0x402   : > { %2102 = vset.pattern.permute.xlu1 %v3796_v15 }
 0x409   : > { %1051 = vrot.lane.b32.xlu1 %v1047_v16, %s2333_s23 }
 0x43f   : > { %v995_v42 = vpop.permute.xlu2 %994 }
 0x447   : > { %v1042_v24 = vpop.permute.xlu2 %1041 }
 0x448   : > { %v3045_v22 = vadd.f32 %v1042_v24, %v1039_v55 }
 0x44f   : > { %v1054_v54 = vpop.permute.xlu2 %1053 }
 0x450   : > { %v1058_v39 = vadd.f32 %v1054_v54, %v2981_v9 }
 0x452   : > { %1066 = vperm.xlu1 %2102, %v1058_v39  }
 0x457   : > { %v1072_v3 = vpop.permute.xlu2 %1071 }
 0x458   : > { %v1077_v10 = vadd.f32 %v1072_v3, %v2973_v60 }
 0x45a   : > { %2103 = vset.pattern.permute.xlu1 %v3798_v18 }
 0x45b   : > { %1081 = vperm.xlu1 %2103, %v1077_v10  }
 0x462   : > { %v975_v56 = vpop.permute.xlu1 %974 }
 0x463   : > { %v978_v20 = vsel %vm251_vm0, %v975_v56, %v954_v12  ;;  %1129 = vrot.lane.b32.xlu1 %v3053_v51, %s2334_s29 }
 0x464   : > { %v998_v30 = vsel %vm276_vm1, %v995_v42, %v978_v20  ;;  %2104 = vset.pattern.permute.xlu1 %v3796_v15 }
 0x465   : > { %v1019_v5 = vmul.f32 2.0, %v998_v30  ;;  %v1000_v26 = vrot.slane %v998_v30, 7  ;;  %v1006_v27 = vrot.slane %v998_v30, 1 }
 0x467   : > { %v1021_v52 = vrot.slane %v1019_v5, 7 }
 0x469   : > { %v1023_v46 = vadd.f32 %v1021_v52, %v998_v30 }
 0x46b   : > { %v990_v21 = vpop.permute.xlu1 %989  ;;  %1143 = vrot.lane.b32.xlu1 %v1139_v35, %s2333_s23  ;;  %v1024_v55 = vperm.slane %v1023_v46, 7 }
 0x46c   : > { %v997_v7 = vsel %vm276_vm1, %v990_v21, %v977_v11 }
 0x46d   : > { %v999_v36 = vrot.slane %v997_v7, 7  ;;  %v1005_v17 = vrot.slane %v997_v7, 1  ;;  %v1011_v41 = vmul.f32 2.0, %v997_v7 }
 0x46f   : > { %v1001_v16 = vsel %vm299_vm2, %v999_v36, %v1000_v26  ;;  %v1002_v42 = vsel %vm299_vm2, %v1000_v26, %v999_v36  ;;  %v1007_v24 = vsel %vm306_vm3, %v1005_v17, %v1006_v27  ;;  %v1008_v54 = vsel %vm306_vm3, %v1006_v27, %v1005_v17  ;;  %v1044_v17 = vpop.permute.xlu0 %1043 }
 0x470   : > { %v1003_v39 = vadd.f32 %v1002_v42, %v997_v7  ;;  %v1004_v49 = vadd.f32 %v1001_v16, %v998_v30  ;;  %v1013_v11 = vrot.slane %v1011_v41, 1 }
 0x472   : > { %v1009_v3 = vadd.f32 %v1007_v24, %v1003_v39  ;;  %v1010_v10 = vadd.f32 %v1008_v54, %v1004_v49  ;;  %v1015_v38 = vadd.f32 %v1013_v11, %v997_v7  ;;  %v1140_v54 = vmul.f32 2.0, %v3053_v51 }
 0x473   : > { %v1038_v12 = vpop.permute.xlu1 %1037 }
 0x474   : > { %v1016_v56 = vperm.slane %v1015_v38, 0  ;;  %v1026_v20 = vsel %vm322_vm4, %v1024_v55, %v1010_v10  ;;  %v1040_v36 = vadd.f32 %v1038_v12, %v2981_v9  ;;  %v3117_v38 = vld [vmem:[%s2512_s25 + $0x20] sm:$0xff]  ;;  %v3124_v12 = vld [vmem:[%s2512_s25 + $0x28] sm:$0xff] }
 0x475   : > { %v3081_v5 = vmul.f32 0.11111111, %v1026_v20 }
 0x476   : > { %v1017_v52 = vsel %vm311_vm5, %v1016_v56, %v1009_v3  ;;  %v1046_v41 = vadd.f32 %v1044_v17, %v1040_v36 }
 0x477   : > { %v3085_v21 = vmul.f32 0.11111111, %v1017_v52  ;;  %v1032_v30 = vsub.f32 %v3081_v5, %v3011_v37 }
 0x479   : > { %v1031_v26 = vsub.f32 %v3085_v21, %v3003_v63  ;;  %v3817_v21 = vmov 127  }
 0x47b   : > { %v1052_v27 = vpop.permute.xlu1 %1051 }
 0x47c   : > { %v1057_v7 = vadd.f32 %v1052_v27, %v2973_v60 }
 0x47e   : > { %1061 = vperm.xlu0 %2084, %v1057_v7  }
 0x486   : > { %1073 = vrot.lane.b32.xlu0 %v3031_v6, %s2334_s29 }
 0x48e   : > { %1127 = vrot.lane.b32.xlu0 %v3062_v47, %s2334_s29 }
 0x496   : > { %1135 = vrot.lane.b32.xlu0 %v3053_v51, %s2333_s23 }
 0x4c4   : > { %v1067_v46 = vpop.permute.xlu1 %1066 }
 0x4c5   : > { %v1070_v16 = vsel %vm251_vm0, %v1067_v46, %v1046_v41 }
 0x4cd   : > { %v1082_v42 = vpop.permute.xlu1 %1081 }
 0x4d5   : > { %v3101_v60 = vpop.permute.xlu1 %1129 }
 0x4dd   : > { %v1144_v24 = vpop.permute.xlu1 %1143 }
 0x4de   : > { %v1149_v6 = vadd.f32 %v1144_v24, %v3062_v47 }
 0x4e0   : > { %1153 = vperm.xlu0 %2084, %v1149_v6  }
 0x4e8   : > { %1165 = vrot.lane.b32.xlu0 %v1140_v54, %s2334_s29 }
 0x4f0   : > { %v1062_v39 = vpop.permute.xlu0 %1061  ;;  %1291 = vrot.lane.b32.xlu0 %v3117_v38, %s2334_s29 }
 0x4f1   : > { %v1069_v49 = vsel %vm251_vm0, %v1062_v39, %v3045_v22 }
 0x4f2   : > { %v1089_v11 = vsel %vm276_vm1, %v1082_v42, %v1069_v49 }
 0x4f3   : > { %v1091_v27 = vrot.slane %v1089_v11, 7  ;;  %v1097_v7 = vrot.slane %v1089_v11, 1 }
 0x4f8   : > { %v1074_v55 = vpop.permute.xlu0 %1073  ;;  %1299 = vrot.lane.b32.xlu0 %v3124_v12, %s2333_s23 }
 0x4f9   : > { %v1078_v3 = vadd.f32 %v1074_v55, %v2981_v9  ;;  %v1103_v9 = vmul.f32 2.0, %v1089_v11 }
 0x4fb   : > { %1086 = vperm.xlu2 %2089, %v1078_v3   ;;  %v1105_v20 = vrot.slane %v1103_v9, 1 }
 0x4fd   : > { %v1107_v46 = vadd.f32 %v1105_v20, %v1089_v11 }
 0x4ff   : > { %v1108_v20 = vperm.slane %v1107_v46, 0 }
 0x500   : > { %v1128_v10 = vpop.permute.xlu0 %1127 }
 0x501   : > { %v1131_v39 = vadd.f32 %v1128_v10, %v3062_v47 }
 0x503   : > { %1133 = vrot.lane.b32.xlu2 %v3062_v47, %s2333_s23 }
 0x508   : > { %v3121_v22 = vpop.permute.xlu0 %1135 }
 0x50b   : > { %1145 = vrot.lane.b32.xlu2 %v1140_v54, %s2333_s23 }
 0x513   : > { %1163 = vrot.lane.b32.xlu2 %v1139_v35, %s2334_s29 }
 0x552   : > { %v1154_v56 = vpop.permute.xlu0 %1153 }
 0x555   : > { %v1087_v52 = vpop.permute.xlu2 %1086 }
 0x556   : > { %v1090_v35 = vsel %vm276_vm1, %v1087_v52, %v1070_v16 }
 0x557   : > { %v1092_v36 = vrot.slane %v1090_v35, 7  ;;  %v1098_v17 = vrot.slane %v1090_v35, 1  ;;  %v1111_v41 = vmul.f32 2.0, %v1090_v35 }
 0x559   : > { %v1093_v42 = vsel %vm299_vm2, %v1091_v27, %v1092_v36  ;;  %v1094_v24 = vsel %vm299_vm2, %v1092_v36, %v1091_v27  ;;  %v1099_v6 = vsel %vm306_vm3, %v1097_v7, %v1098_v17  ;;  %v1100_v54 = vsel %vm306_vm3, %v1098_v17, %v1097_v7 }
 0x55a   : > { %v1095_v16 = vadd.f32 %v1094_v24, %v1089_v11  ;;  %v1096_v49 = vadd.f32 %v1093_v42, %v1090_v35  ;;  %v1113_v55 = vrot.slane %v1111_v41, 7  ;;  %v1166_v3 = vpop.permute.xlu0 %1165  ;;  %v1231_v42 = vadd.f32 0.0001, %v3019_v44 }
 0x55b   : > { %v1170_v9 = vadd.f32 %v1166_v3, %v3053_v51  ;;  %v3164_v44 = vmul.f32 2.0, %v3124_v12  ;;  %v1132_v3 = vadd.f32 %v3101_v60, %v3053_v51 }
 0x55c   : > { %v1101_v52 = vadd.f32 %v1099_v6, %v1095_v16  ;;  %v1102_v61 = vadd.f32 %v1100_v54, %v1096_v49  ;;  %v1115_v1 = vadd.f32 %v1113_v55, %v1090_v35 }
 0x55d   : > { %1178 = vperm.xlu2 %2089, %v1170_v9   ;;  %v1134_v27 = vpop.permute.xlu2 %1133  ;;  %v3185_v9 = vld [vmem:[%s2501_s7 + $0x28] sm:$0xff] }
 0x55e   : > { %v1109_v36 = vsel %vm311_vm5, %v1108_v20, %v1101_v52  ;;  %v1116_v15 = vperm.slane %v1115_v1, 7  ;;  %v1137_v18 = vadd.f32 %v1134_v27, %v1131_v39  ;;  %v1138_v20 = vadd.f32 %v3121_v22, %v1132_v3 }
 0x55f   : > { %v1119_v7 = vmul.f32 0.11111111, %v1109_v36 }
 0x560   : > { %v1118_v11 = vsel %vm322_vm4, %v1116_v15, %v1102_v61  ;;  %v1161_v10 = vsel %vm251_vm0, %v1154_v56, %v1137_v18  ;;  %v1232_v61 = vadd.f32 0.0001, %v3027_v53  ;;  %v1303_v53 = vmul.f32 2.0, %v3117_v38 }
 0x561   : > { %v1120_v17 = vmul.f32 0.11111111, %v1118_v11  ;;  %v1123_v41 = vsub.f32 %v1119_v7, %v3005_v23  ;;  %v3197_v7 = vld [vmem:[%s2501_s7 + $0x20] sm:$0xff] }
 0x562   : > { %v1292_v54 = vpop.permute.xlu0 %1291  ;;  %v3203_v22 = vmul.f32 2.0, %v3197_v7 }
 0x563   : > { %v1124_v46 = vsub.f32 %v1120_v17, %v3021_v8  ;;  %v1233_v35 = vadd.f32 %v1123_v41, %v1031_v26  ;;  %v1295_v39 = vadd.f32 %v3117_v38, %v1292_v54 }
 0x565   : > { %v1234_v1 = vadd.f32 %v1124_v46, %v1032_v30  ;;  %v1235_v24 = vadd.f32 0.0009, %v1233_v35  ;;  %1297 = vrot.lane.b32.xlu2 %v3117_v38, %s2333_s23  ;;  %v1146_v15 = vpop.permute.xlu2 %1145  ;;  %v3818_v30 = vmov 0  }
 0x566   : > { %v1150_v18 = vadd.f32 %v1146_v15, %v3053_v51 }
 0x567   : > { %v1236_v23 = vadd.f32 0.0009, %v1234_v1  ;;  %v3159_v8 = vmul.f32 %v1235_v24, %v1231_v42 }
 0x568   : > { %1158 = vperm.xlu1 %2104, %v1150_v18  }
 0x569   : > { %v3161_v63 = vmul.f32 %v1236_v23, %v1232_v61  ;;  %vm1244_vm9 = vweird.f32 %v3159_v8 }
 0x56b   : > { %2119 = vrcp.f32 %v3161_v63  ;;  %vm1259_vm7 = vweird.f32 %v3161_v63 }
 0x56c   : > { %2121 = vrcp.f32 %v3159_v8 }
 0x56d   : > { %1309 = vrot.lane.b32.xlu2 %v3164_v44, %s2333_s23  ;;  %v1164_v37 = vpop.permute.xlu2 %1163 }
 0x56e   : > { %v1169_v5 = vadd.f32 %v1164_v37, %v3062_v47 }
 0x570   : > { %2105 = vset.pattern.permute.xlu1 %v3817_v21 }
 0x571   : > { %1173 = vperm.xlu1 %2105, %v1169_v5   ;;  %v3200_v60 = vpop.eup %2119 }
 0x572   : > { %v3205_v11 = vpop.eup %2121  ;;  %v1255_v17 = vmul.f32 %v3200_v60, %v3161_v63  ;;  %vm1260_vm6 = vweird.f32 %v3200_v60 }
 0x573   : > { %v1240_v42 = vmul.f32 %v3205_v11, %v3159_v8  ;;  %vm1245_vm8 = vweird.f32 %v3205_v11  ;;  %vm3241_vm10 = vmor %vm1259_vm7, %vm1260_vm6 }
 0x574   : > { %v1256_v23 = vsub.f32 1.0, %v1255_v17  ;;  %vm1246_vm11 = vmor %vm1244_vm9, %vm1245_vm8 }
 0x575   : > { %1327 = vrot.lane.b32.xlu2 %v1303_v53, %s2334_s29  ;;  %v1241_v54 = vsub.f32 1.0, %v1240_v42 }
 0x577   : > { %v1242_v17 = vmul.f32 %v3205_v11, %v1241_v54 }
 0x579   : > { %1293 = vrot.lane.b32.xlu1 %v3124_v12, %s2334_s29 }
 0x57a   : > { %2106 = vset.pattern.permute.xlu1 %v3818_v30 }
 0x581   : > { %1307 = vrot.lane.b32.xlu1 %v1303_v53, %s2333_s23 }
 0x5b7   : > { %v1179_v26 = vpop.permute.xlu2 %1178 }
 0x5bf   : > { %v1298_v56 = vpop.permute.xlu2 %1297 }
 0x5c0   : > { %v3178_v16 = vadd.f32 %v1298_v56, %v1295_v39 }
 0x5c7   : > { %v1310_v6 = vpop.permute.xlu2 %1309 }
 0x5c8   : > { %v1314_v47 = vadd.f32 %v3124_v12, %v1310_v6 }
 0x5ca   : > { %1322 = vperm.xlu1 %2106, %v1314_v47  }
 0x5cf   : > { %v1328_v49 = vpop.permute.xlu2 %1327 }
 0x5d0   : > { %v1333_v55 = vadd.f32 %v3117_v38, %v1328_v49 }
 0x5d2   : > { %2107 = vset.pattern.permute.xlu1 %v3817_v21 }
 0x5d3   : > { %1337 = vperm.xlu1 %2107, %v1333_v55  }
 0x5da   : > { %v1159_v52 = vpop.permute.xlu1 %1158 }
 0x5db   : > { %v1162_v27 = vsel %vm251_vm0, %v1159_v52, %v1138_v20  ;;  %1379 = vrot.lane.b32.xlu1 %v3185_v9, %s2334_s29  ;;  %v1257_v20 = vmul.f32 %v3200_v60, %v1256_v23  ;;  %v1222_v23 = vadd.f32 0.0001, %v3015_v43 }
 0x5dc   : > { %v1182_v36 = vsel %vm276_vm1, %v1179_v26, %v1162_v27  ;;  %2108 = vset.pattern.permute.xlu1 %v3818_v30 }
 0x5dd   : > { %v1203_v51 = vmul.f32 2.0, %v1182_v36  ;;  %v1184_v35 = vrot.slane %v1182_v36, 7  ;;  %v1190_v24 = vrot.slane %v1182_v36, 1 }
 0x5df   : > { %v1205_v41 = vrot.slane %v1203_v51, 7 }
 0x5e1   : > { %v1207_v37 = vadd.f32 %v1205_v41, %v1182_v36 }
 0x5e3   : > { %v1174_v46 = vpop.permute.xlu1 %1173  ;;  %1393 = vrot.lane.b32.xlu1 %v3203_v22, %s2333_s23  ;;  %v1208_v39 = vperm.slane %v1207_v37, 7  ;;  %v1250_v37 = vand.u32 2147483648, %v3159_v8 }
 0x5e4   : > { %v1181_v1 = vsel %vm276_vm1, %v1174_v46, %v1161_v10 }
 0x5e5   : > { %v1183_v15 = vrot.slane %v1181_v1, 7  ;;  %v1189_v18 = vrot.slane %v1181_v1, 1  ;;  %v1195_v61 = vmul.f32 2.0, %v1181_v1 }
 0x5e7   : > { %v1185_v5 = vsel %vm299_vm2, %v1183_v15, %v1184_v35  ;;  %v1186_v53 = vsel %vm299_vm2, %v1184_v35, %v1183_v15  ;;  %v1191_v26 = vsel %vm306_vm3, %v1189_v18, %v1190_v24  ;;  %v1192_v56 = vsel %vm306_vm3, %v1190_v24, %v1189_v18 }
 0x5e8   : > { %v1187_v6 = vadd.f32 %v1186_v53, %v1181_v1  ;;  %v1188_v10 = vadd.f32 %v1185_v5, %v1182_v36  ;;  %v1197_v47 = vrot.slane %v1195_v61, 1  ;;  %v1258_v36 = vadd.f32 %v3200_v60, %v1257_v20 }
 0x5e9   : > { %v1265_v24 = vand.u32 2147483648, %v3161_v63  ;;  %v1243_v15 = vadd.f32 %v3205_v11, %v1242_v17  ;;  %v1248_v5 = vand.u32 2147483647, %v3159_v8 }
 0x5ea   : > { %v1193_v49 = vadd.f32 %v1191_v26, %v1187_v6  ;;  %v1194_v55 = vadd.f32 %v1192_v56, %v1188_v10  ;;  %v1199_v3 = vadd.f32 %v1197_v47, %v1181_v1  ;;  %v1263_v1 = vand.u32 2147483647, %v3161_v63 }
 0x5eb   : > { %v1294_v52 = vpop.permute.xlu1 %1293  ;;  %v1262_v63 = vsel %vm3241_vm10, %v3200_v60, %v1258_v36  ;;  %v1221_v56 = vadd.f32 0.0001, %v3009_v34  ;;  %v1266_v43 = vor.u32 1.1754944e-38, %v1265_v24  ;;  %v1247_v10 = vsel %vm1246_vm11, %v3205_v11, %v1243_v15  ;;  %v1300_v11 = vpop.permute.xlu0 %1299 }
 0x5ec   : > { %v1200_v27 = vperm.slane %v1199_v3, 0  ;;  %v1210_v51 = vsel %vm322_vm4, %v1208_v39, %v1194_v55  ;;  %vm1264_vm12 = vcmp.eq.f32.partialorder %v1263_v1, 8.507059e+37  ;;  %v1251_v39 = vor.u32 1.1754944e-38, %v1250_v37 }
 0x5ed   : > { %v1212_v41 = vmul.f32 0.11111111, %v1210_v51  ;;  %v1267_v8 = vsel %vm1264_vm12, %v1266_v43, %v1262_v63  ;;  %vm1249_vm13 = vcmp.eq.f32.partialorder %v1248_v5, 8.507059e+37  ;;  %v1296_v34 = vadd.f32 %v3124_v12, %v1294_v52 }
 0x5ee   : > { %v1201_v46 = vsel %vm311_vm5, %v1200_v27, %v1193_v49  ;;  %v1252_v55 = vsel %vm1249_vm13, %v1251_v39, %v1247_v10  ;;  %v1390_v36 = vmul.f32 2.0, %v3185_v9  ;;  %v3277_v1 = vmul.f32 %v3117_v38, %v3117_v38 }
 0x5ef   : > { %v1211_v35 = vmul.f32 0.11111111, %v1201_v46  ;;  %v1216_v42 = vsub.f32 %v1212_v41, %v3013_v62  ;;  %v1302_v20 = vadd.f32 %v1300_v11, %v1296_v34  ;;  %v3303_v37 = vmul.f32 %v3197_v7, %v3197_v7 }
 0x5f0   : > { %v3311_v63 = vmul.f32 %v3185_v9, %v3124_v12 }
 0x5f1   : > { %v1215_v18 = vsub.f32 %v1211_v35, %v3007_v32  ;;  %v1224_v61 = vmul.f32 2.0, %v1216_v42  ;;  %v1569_v5 = vmul.f32 2.0, %v3303_v37 }
 0x5f3   : > { %v1223_v53 = vmul.f32 2.0, %v1215_v18  ;;  %v1226_v26 = vadd.f32 0.0009, %v1224_v61  ;;  %v1308_v32 = vpop.permute.xlu1 %1307  ;;  %v3283_v18 = vmul.f32 2.0, %v3277_v1  ;;  %v3294_v61 = vmul.f32 %v3185_v9, %v3185_v9 }
 0x5f4   : > { %v1313_v6 = vadd.f32 %v3117_v38, %v1308_v32 }
 0x5f5   : > { %v1225_v47 = vadd.f32 0.0009, %v1223_v53  ;;  %v1228_v54 = vmul.f32 %v1226_v26, %v1222_v23  ;;  %v3297_v23 = vmul.f32 2.0, %v3294_v61  ;;  %v1662_v26 = vmul.f32 2.0, %v3311_v63 }
 0x5f6   : > { %1317 = vperm.xlu0 %2084, %v1313_v6  }
 0x5f7   : > { %v1227_v49 = vmul.f32 %v1225_v47, %v1221_v56  ;;  %v3252_v60 = vmul.f32 %v1267_v8, %v1228_v54 }
 0x5f9   : > { %v3254_v3 = vmul.f32 %v1252_v55, %v1227_v49 }
 0x5fe   : > { %1329 = vrot.lane.b32.xlu0 %v3164_v44, %s2334_s29 }
 0x606   : > { %1377 = vrot.lane.b32.xlu0 %v3197_v7, %s2334_s29 }
 0x60e   : > { %1385 = vrot.lane.b32.xlu0 %v3185_v9, %s2333_s23 }
 0x63c   : > { %v1323_v27 = vpop.permute.xlu1 %1322 }
 0x63d   : > { %v1326_v51 = vsel %vm251_vm0, %v1323_v27, %v1302_v20 }
 0x645   : > { %v1338_v17 = vpop.permute.xlu1 %1337 }
 0x64d   : > { %v3265_v41 = vpop.permute.xlu1 %1379 }
 0x655   : > { %v1394_v46 = vpop.permute.xlu1 %1393 }
 0x656   : > { %v1399_v44 = vadd.f32 %v3197_v7, %v1394_v46 }
 0x658   : > { %1403 = vperm.xlu0 %2084, %v1399_v44  }
 0x660   : > { %1415 = vrot.lane.b32.xlu0 %v1390_v36, %s2334_s29 }
 0x668   : > { %v1318_v35 = vpop.permute.xlu0 %1317  ;;  %1465 = vrot.lane.b32.xlu0 %v3277_v1, %s2334_s29 }
 0x669   : > { %v1325_v52 = vsel %vm251_vm0, %v1318_v35, %v3178_v16 }
 0x66a   : > { %v1345_v42 = vsel %vm276_vm1, %v1338_v17, %v1325_v52 }
 0x66b   : > { %v1347_v43 = vrot.slane %v1345_v42, 7  ;;  %v1353_v10 = vrot.slane %v1345_v42, 1 }
 0x670   : > { %v1330_v24 = vpop.permute.xlu0 %1329  ;;  %1481 = vrot.lane.b32.xlu0 %v3283_v18, %s2333_s23 }
 0x671   : > { %v1334_v15 = vadd.f32 %v3124_v12, %v1330_v24 }
 0x673   : > { %1342 = vperm.xlu2 %2089, %v1334_v15  }
 0x678   : > { %v1378_v16 = vpop.permute.xlu0 %1377  ;;  %1575 = vrot.lane.b32.xlu0 %v3297_v23, %s2333_s23 }
 0x679   : > { %v1381_v20 = vadd.f32 %v3197_v7, %v1378_v16 }
 0x67b   : > { %1383 = vrot.lane.b32.xlu2 %v3197_v7, %s2333_s23 }
 0x680   : > { %v3305_v62 = vpop.permute.xlu0 %1385  ;;  %1593 = vrot.lane.b32.xlu0 %v1569_v5, %s2334_s29 }
 0x683   : > { %1395 = vrot.lane.b32.xlu2 %v1390_v36, %s2333_s23  ;;  %v3329_v36 = vmul.f32 %v3124_v12, %v3124_v12 }
 0x688   : > { %1667 = vrot.lane.b32.xlu0 %v1662_v26, %s2333_s23 }
 0x68b   : > { %1413 = vrot.lane.b32.xlu2 %v3203_v22, %s2334_s29  ;;  %v1359_v22 = vmul.f32 2.0, %v1345_v42 }
 0x68d   : > { %v1361_v32 = vrot.slane %v1359_v22, 1 }
 0x68f   : > { %v1363_v8 = vadd.f32 %v1361_v32, %v1345_v42 }
 0x690   : > { %1473 = vrot.lane.b32.xlu0 %v3329_v36, %s2333_s23 }
 0x691   : > { %v1364_v35 = vperm.slane %v1363_v8, 0 }
 0x698   : > { %1563 = vrot.lane.b32.xlu0 %v3303_v37, %s2333_s23 }
 0x6ca   : > { %v1404_v53 = vpop.permute.xlu0 %1403 }
 0x6cd   : > { %v1343_v56 = vpop.permute.xlu2 %1342 }
 0x6ce   : > { %v1346_v6 = vsel %vm276_vm1, %v1343_v56, %v1326_v51 }
 0x6cf   : > { %v1348_v47 = vrot.slane %v1346_v6, 7  ;;  %v1354_v54 = vrot.slane %v1346_v6, 1  ;;  %v1367_v39 = vmul.f32 2.0, %v1346_v6 }
 0x6d1   : > { %v1349_v49 = vsel %vm299_vm2, %v1347_v43, %v1348_v47  ;;  %v1350_v55 = vsel %vm299_vm2, %v1348_v47, %v1347_v43  ;;  %v1355_v34 = vsel %vm306_vm3, %v1353_v10, %v1354_v54  ;;  %v1356_v11 = vsel %vm306_vm3, %v1354_v54, %v1353_v10 }
 0x6d2   : > { %v1351_v27 = vadd.f32 %v1350_v55, %v1345_v42  ;;  %v1352_v51 = vadd.f32 %v1349_v49, %v1346_v6  ;;  %v1369_v17 = vrot.slane %v1367_v39, 7  ;;  %v1416_v46 = vpop.permute.xlu0 %1415  ;;  %v3356_v54 = vmul.f32 %v3197_v7, %v3117_v38 }
 0x6d3   : > { %v1420_v44 = vadd.f32 %v3185_v9, %v1416_v46  ;;  %v1382_v46 = vadd.f32 %v3185_v9, %v3265_v41 }
 0x6d4   : > { %v1357_v52 = vadd.f32 %v1355_v34, %v1351_v27  ;;  %v1358_v24 = vadd.f32 %v1356_v11, %v1352_v51  ;;  %v1371_v15 = vadd.f32 %v1369_v17, %v1346_v6  ;;  %v1661_v39 = vmul.f32 2.0, %v3356_v54 }
 0x6d5   : > { %1428 = vperm.xlu2 %2089, %v1420_v44   ;;  %v1384_v22 = vpop.permute.xlu2 %1383  ;;  %v1388_v44 = vadd.f32 %v3305_v62, %v1382_v46 }
 0x6d6   : > { %v3335_v42 = vsel %vm311_vm5, %v1364_v35, %v1357_v52  ;;  %v1372_v16 = vperm.slane %v1371_v15, 7  ;;  %v1387_v32 = vadd.f32 %v1384_v22, %v1381_v20 }
 0x6d8   : > { %v3339_v56 = vsel %vm322_vm4, %v1372_v16, %v1358_v24  ;;  %v1411_v12 = vsel %vm251_vm0, %v1404_v53, %v1387_v32  ;;  %v1478_v53 = vmul.f32 2.0, %v3329_v36 }
 0x6dd   : > { %1471 = vrot.lane.b32.xlu2 %v3277_v1, %s2333_s23  ;;  %v1396_v43 = vpop.permute.xlu2 %1395 }
 0x6de   : > { %v1400_v6 = vadd.f32 %v3185_v9, %v1396_v43  ;;  %2110 = vset.pattern.permute.xlu2 %v3818_v30 }
 0x6e0   : > { %1408 = vperm.xlu1 %2108, %v1400_v6  }
 0x6e5   : > { %1573 = vrot.lane.b32.xlu2 %v1569_v5, %s2333_s23  ;;  %v1414_v10 = vpop.permute.xlu2 %1413  ;;  %v1466_v5 = vpop.permute.xlu0 %1465 }
 0x6e6   : > { %v1419_v47 = vadd.f32 %v3197_v7, %v1414_v10  ;;  %v1469_v49 = vadd.f32 %v1466_v5, %v3277_v1 }
 0x6e8   : > { %2109 = vset.pattern.permute.xlu1 %v3817_v21 }
 0x6e9   : > { %1423 = vperm.xlu1 %2109, %v1419_v47  }
 0x6ed   : > { %1503 = vrot.lane.b32.xlu2 %v1478_v53, %s2334_s29  ;;  %v1482_v38 = vpop.permute.xlu0 %1481 }
 0x6ee   : > { %v1487_v7 = vadd.f32 %v1482_v38, %v3277_v1 }
 0x6f1   : > { %1467 = vrot.lane.b32.xlu1 %v3329_v36, %s2334_s29 }
 0x6f2   : > { %2112 = vset.pattern.permute.xlu1 %v3818_v30 }
 0x6f5   : > { %1665 = vrot.lane.b32.xlu2 %v1661_v39, %s2333_s23 }
 0x6f9   : > { %1483 = vrot.lane.b32.xlu1 %v1478_v53, %s2333_s23 }
 0x6fd   : > { %1687 = vrot.lane.b32.xlu2 %v1662_v26, %s2334_s29 }
 0x701   : > { %1501 = vrot.lane.b32.xlu1 %v3283_v18, %s2334_s29  ;;  %v1576_v18 = vpop.permute.xlu0 %1575 }
 0x702   : > { %v1580_v8 = vadd.f32 %v1576_v18, %v3294_v61  ;;  %v1376_v18 = vmul.f32 0.11111111, %v3339_v56 }
 0x704   : > { %v3413_v46 = vmul.f32 %v1376_v18, %v1376_v18 }
 0x705   : > { %1559 = vrot.lane.b32.xlu2 %v3294_v61, %s2334_s29 }
 0x709   : > { %1595 = vrot.lane.b32.xlu1 %v3297_v23, %s2334_s29  ;;  %v1594_v34 = vpop.permute.xlu0 %1593 }
 0x70a   : > { %v1599_v11 = vadd.f32 %v1594_v34, %v3303_v37 }
 0x70d   : > { %1491 = vperm.xlu2 %2110, %v1487_v7  }
 0x711   : > { %1685 = vrot.lane.b32.xlu1 %v1661_v39, %s2334_s29 }
 0x715   : > { %1588 = vperm.xlu2 %2110, %v1580_v8  }
 0x719   : > { %1557 = vrot.lane.b32.xlu1 %v3303_v37, %s2334_s29 }
 0x71d   : > { %2114 = vset.pattern.permute.xlu2 %v3817_v21 }
 0x71e   : > { %1603 = vperm.xlu2 %2114, %v1599_v11  }
 0x721   : > { %1565 = vrot.lane.b32.xlu1 %v3294_v61, %s2333_s23 }
 0x726   : > { %1649 = vrot.lane.b32.xlu2 %v3356_v54, %s2334_s29 }
 0x72e   : > { %1657 = vrot.lane.b32.xlu2 %v3311_v63, %s2333_s23 }
 0x72f   : > { %v1429_v26 = vpop.permute.xlu2 %1428 }
 0x737   : > { %v1472_v55 = vpop.permute.xlu2 %1471 }
 0x738   : > { %v3379_v23 = vadd.f32 %v1472_v55, %v1469_v49 }
 0x73f   : > { %v1574_v20 = vpop.permute.xlu2 %1573 }
 0x740   : > { %v1579_v27 = vadd.f32 %v1574_v20, %v3303_v37 }
 0x742   : > { %1583 = vperm.xlu1 %2112, %v1579_v27  }
 0x747   : > { %v1504_v51 = vpop.permute.xlu2 %1503 }
 0x748   : > { %v1508_v17 = vadd.f32 %v1504_v51, %v3329_v36  ;;  %v1740_v51 = vmul.f32 2.0, %v1376_v18 }
 0x74a   : > { %2113 = vset.pattern.permute.xlu1 %v3817_v21 }
 0x74b   : > { %1516 = vperm.xlu1 %2113, %v1508_v17  }
 0x752   : > { %v1409_v35 = vpop.permute.xlu1 %1408 }
 0x753   : > { %v1412_v52 = vsel %vm251_vm0, %v1409_v35, %v1388_v44 }
 0x754   : > { %v1432_v24 = vsel %vm276_vm1, %v1429_v26, %v1412_v52  ;;  %v1375_v26 = vmul.f32 0.11111111, %v3335_v42 }
 0x755   : > { %v1453_v15 = vmul.f32 2.0, %v1432_v24  ;;  %v1434_v32 = vrot.slane %v1432_v24, 7  ;;  %v1440_v6 = vrot.slane %v1432_v24, 1 }
 0x756   : > { %v1739_v44 = vmul.f32 2.0, %v1375_v26 }
 0x757   : > { %v1455_v22 = vrot.slane %v1453_v15, 7  ;;  %v3423_v15 = vmul.f32 %v1375_v26, %v1375_v26 }
 0x759   : > { %v1457_v41 = vadd.f32 %v1455_v22, %v1432_v24 }
 0x75b   : > { %v1424_v16 = vpop.permute.xlu1 %1423  ;;  %v1458_v8 = vperm.slane %v1457_v41, 7  ;;  %v3441_v41 = vld [vmem:[%s2512_s25 + $0x8] sm:$0xff] }
 0x75c   : > { %v1431_v43 = vsel %vm276_vm1, %v1424_v16, %v1411_v12 }
 0x75d   : > { %v1433_v10 = vrot.slane %v1431_v43, 7  ;;  %v1439_v47 = vrot.slane %v1431_v43, 1  ;;  %v1445_v9 = vmul.f32 2.0, %v1431_v43 }
 0x75f   : > { %v1435_v62 = vsel %vm299_vm2, %v1433_v10, %v1434_v32  ;;  %v1436_v53 = vsel %vm299_vm2, %v1434_v32, %v1433_v10  ;;  %v1441_v39 = vsel %vm306_vm3, %v1439_v47, %v1440_v6  ;;  %v1442_v5 = vsel %vm306_vm3, %v1440_v6, %v1439_v47 }
 0x760   : > { %v1437_v38 = vadd.f32 %v1436_v53, %v1431_v43  ;;  %v1438_v7 = vadd.f32 %v1435_v62, %v1432_v24  ;;  %v1447_v12 = vrot.slane %v1445_v9, 1  ;;  %v284_v62 = vadd.f32 %v3441_v41, %v2628_v31  ;;  %v1666_v31 = vpop.permute.xlu2 %1665 }
 0x762   : > { %v1443_v49 = vadd.f32 %v1441_v39, %v1437_v38  ;;  %v1444_v55 = vadd.f32 %v1442_v5, %v1438_v7  ;;  %v1449_v34 = vadd.f32 %v1447_v12, %v1431_v43  ;;  %v1668_v12 = vpop.permute.xlu0 %1667 }
 0x763   : > { %v3409_v11 = vpop.permute.xlu1 %1467 }
 0x764   : > { %v1450_v20 = vperm.slane %v1449_v34, 0  ;;  %v1460_v27 = vsel %vm322_vm4, %v1458_v8, %v1444_v55 }
 0x765   : > { %v1462_v17 = vmul.f32 0.11111111, %v1460_v27 }
 0x766   : > { %v1451_v42 = vsel %vm311_vm5, %v1450_v20, %v1443_v49 }
 0x767   : > { %v1461_v56 = vmul.f32 0.11111111, %v1451_v42  ;;  %v3417_v35 = vmul.f32 %v1462_v17, %v1462_v17  ;;  %v3419_v52 = vmul.f32 %v1462_v17, %v1376_v18  ;;  %v3421_v24 = vmul.f32 %v1740_v51, %v1462_v17 }
 0x768   : > { %v1688_v18 = vpop.permute.xlu2 %1687 }
 0x769   : > { %v3425_v22 = vmul.f32 %v1461_v56, %v1461_v56  ;;  %v3427_v16 = vmul.f32 %v1461_v56, %v1375_v26  ;;  %v3429_v32 = vmul.f32 %v1739_v44, %v1461_v56  ;;  %v3433_v43 = vadd.f32 %v3417_v35, %v3413_v46 }
 0x76a   : > { %v1671_v26 = vadd.f32 %v1666_v31, %v3356_v54  ;;  %v1692_v8 = vadd.f32 %v1688_v18, %v3311_v63  ;;  %v1474_v20 = vpop.permute.xlu0 %1473  ;;  %v313_v56 = vmul.f32 2.0, %v2696_v0 }
 0x76b   : > { %v1484_v6 = vpop.permute.xlu1 %1483  ;;  %v3437_v10 = vadd.f32 %v3425_v22, %v3423_v15 }
 0x76c   : > { %v1488_v47 = vadd.f32 %v1484_v6, %v3329_v36 }
 0x76e   : > { %1496 = vperm.xlu0 %2084, %v1488_v47  }
 0x770   : > { %v1560_v49 = vpop.permute.xlu2 %1559 }
 0x771   : > { %v1562_v31 = vadd.f32 %v1560_v49, %v3294_v61  ;;  %v3488_v49 = vmul.f32 0.11111111, %v2786_v50 }
 0x772   : > { %v1564_v17 = vpop.permute.xlu0 %1563 }
 0x773   : > { %v1502_v9 = vpop.permute.xlu1 %1501 }
 0x774   : > { %v1507_v5 = vadd.f32 %v1502_v9, %v3277_v1  ;;  %v1672_v1 = vadd.f32 %v1668_v12, %v3311_v63 }
 0x776   : > { %2111 = vset.pattern.permute.xlu0 %v3817_v21 }
 0x777   : > { %292 = vperm.xlu0 %2111, %v284_v62   ;;  %v315_v62 = vrot.slane %v313_v56, 1 }
 0x778   : > { %v1492_v34 = vpop.permute.xlu2 %1491 }
 0x77b   : > { %v1596_v53 = vpop.permute.xlu1 %1595 }
 0x77c   : > { %v1600_v39 = vadd.f32 %v1596_v53, %v3294_v61  ;;  %v244_v53 = vadd.f32 %v3441_v41, %v2624_v29  ;;  %v1269_v29 = vsub.f32 1.0, %v3254_v3 }
 0x77e   : > { %1608 = vperm.xlu1 %2113, %v1600_v39   ;;  %v1270_v39 = vsub.f32 1.0, %v3252_v60  ;;  %v3499_v56 = vmul.f32 0.5, %v1269_v29 }
 0x77f   : > { %1511 = vperm.xlu0 %2111, %v1507_v5  }
 0x780   : > { %v1589_v27 = vpop.permute.xlu2 %1588 }
 0x783   : > { %v1686_v38 = vpop.permute.xlu1 %1685 }
 0x784   : > { %v1691_v7 = vadd.f32 %v1686_v38, %v3356_v54  ;;  %v317_v38 = vadd.f32 %v315_v62, %v2696_v0 }
 0x786   : > { %1655 = vrot.lane.b32.xlu1 %v3356_v54, %s2333_s23  ;;  %1695 = vperm.xlu2 %2114, %v1691_v7   ;;  %v250_v7 = vadd.f32 %v2622_v28, %v244_v53  ;;  %v318_v61 = vperm.slane %v317_v38, 0  ;;  %s2223_s23 = scalar_lea.hbm %s3829_s27, 256 }
 0x787   : > { %1651 = vrot.lane.b32.xlu0 %v3311_v63, %s2334_s29  ;;  %2116 = vset.pattern.permute.xlu1 %v3818_v30 }
 0x788   : > { %2115 = vset.pattern.permute.xlu0 %v3818_v30  ;;  %v1604_v47 = vpop.permute.xlu2 %1603  ;;  %v275_v60 = vsel %vm251_vm0, %v2702_v33, %v250_v7 }
 0x78b   : > { %v1558_v55 = vpop.permute.xlu1 %1557 }
 0x78c   : > { %v1561_v51 = vadd.f32 %v1558_v55, %v3303_v37  ;;  %v1470_v37 = vadd.f32 %v3409_v11, %v3329_v36  ;;  %v3483_v36 = vmul.f32 0.5, %v1270_v39  ;;  %v3491_v55 = vmul.f32 0.11111111, %v2778_v13 }
 0x78e   : > { %1680 = vperm.xlu1 %2116, %v1672_v1   ;;  %v1567_v44 = vadd.f32 %v1564_v17, %v1561_v51  ;;  %v1476_v12 = vadd.f32 %v1474_v20, %v1470_v37  ;;  %v297_v1 = vrot.slane %v2696_v0, 7  ;;  %v1274_v13 = vmax.f32 %v3483_v36, 0.0 }
 0x78f   : > { %1675 = vperm.xlu0 %2115, %v1671_v26   ;;  %v304_v26 = vrot.slane %v2696_v0, 1  ;;  %v1753_v36 = vadd.f32 0.0001, %v3437_v10  ;;  %v3677_v10 = vld [vmem:[%s2501_s7] sm:$0xff] }
 0x790   : > { %v1650_v7 = vpop.permute.xlu2 %1649 }
 0x793   : > { %v1566_v30 = vpop.permute.xlu1 %1565 }
 0x794   : > { %v1568_v20 = vadd.f32 %v1566_v30, %v1562_v31 }
 0x796   : > { %2117 = vset.pattern.permute.xlu1 %v3817_v21  ;;  %v1592_v53 = vsel %vm251_vm0, %v1589_v27, %v1568_v20 }
 0x797   : > { %1700 = vperm.xlu1 %2117, %v1692_v8   ;;  %2118 = vset.pattern.permute.xlu0 %v3817_v21 }
 0x7b4   : > { %v1584_v42 = vpop.permute.xlu1 %1583 }
 0x7b5   : > { %v1591_v6 = vsel %vm251_vm0, %v1584_v42, %v1567_v44  ;;  %v689_v44 = vmul.f32 0.11111111, %v2889_v2  ;;  %v3497_v42 = vmul.f32 0.11111111, %v2893_v19  ;;  %v1499_v19 = vsel %vm251_vm0, %v1492_v34, %v3379_v23 }
 0x7b6   : > { %v3466_v21 = vsel %vm276_vm1, %v1604_v47, %v1591_v6 }
 0x7b7   : > { %v1625_v5 = vmul.f32 2.0, %v3466_v21  ;;  %v1613_v38 = vrot.slane %v3466_v21, 7 }
 0x7b9   : > { %v1627_v11 = vrot.slane %v1625_v5, 1 }
 0x7bb   : > { %v3507_v6 = vadd.f32 %v1627_v11, %v3466_v21 }
 0x7bd   : > { %v1517_v18 = vpop.permute.xlu1 %1516  ;;  %v1630_v27 = vperm.slane %v3507_v6, 0  ;;  %v1754_v6 = vadd.f32 0.0001, %v3433_v43 }
 0x7e0   : > { %v1497_v9 = vpop.permute.xlu0 %1496 }
 0x7e1   : > { %v1500_v28 = vsel %vm251_vm0, %v1497_v9, %v1476_v12  ;;  %v1619_v12 = vrot.slane %v3466_v21, 1 }
 0x7e2   : > { %v3503_v50 = vsel %vm276_vm1, %v1517_v18, %v1500_v28 }
 0x7e3   : > { %v3520_v37 = vmul.f32 2.0, %v3503_v50 }
 0x7e5   : > { %v1543_v20 = vrot.slane %v3520_v37, 7 }
 0x7e9   : > { %v293_v8 = vpop.permute.xlu0 %292 }
 0x7ea   : > { %v296_v3 = vsel %vm276_vm1, %v293_v8, %v275_v60  ;;  %v1522_v8 = vrot.slane %v3503_v50, 7 }
 0x7eb   : > { %v298_v51 = vrot.slane %v296_v3, 7  ;;  %v305_v33 = vrot.slane %v296_v3, 1  ;;  %v323_v17 = vmul.f32 2.0, %v296_v3 }
 0x7ed   : > { %v300_v30 = vsel %vm299_vm2, %v297_v1, %v298_v51  ;;  %v301_v2 = vsel %vm299_vm2, %v298_v51, %v297_v1  ;;  %v325_v62 = vrot.slane %v323_v17, 7  ;;  %v307_v39 = vsel %vm306_vm3, %v304_v26, %v305_v33 }
 0x7ee   : > { %v302_v47 = vadd.f32 %v301_v2, %v2696_v0  ;;  %v303_v9 = vadd.f32 %v300_v30, %v296_v3  ;;  %v308_v5 = vsel %vm306_vm3, %v305_v33, %v304_v26  ;;  %v3530_v1 = vadd.f32 %v1650_v7, %v3356_v54 }
 0x7ef   : > { %v327_v0 = vadd.f32 %v325_v62, %v296_v3  ;;  %v1528_v3 = vrot.slane %v3503_v50, 1 }
 0x7f0   : > { %v309_v23 = vadd.f32 %v307_v39, %v302_v47  ;;  %v310_v34 = vadd.f32 %v308_v5, %v303_v9  ;;  %v1609_v31 = vpop.permute.xlu1 %1608 }
 0x7f1   : > { %v1612_v29 = vsel %vm276_vm1, %v1609_v31, %v1592_v53  ;;  %v1512_v18 = vpop.permute.xlu0 %1511  ;;  %v328_v60 = vperm.slane %v327_v0, 7 }
 0x7f2   : > { %v319_v26 = vsel %vm311_vm5, %v318_v61, %v309_v23  ;;  %v1614_v11 = vrot.slane %v1612_v29, 7  ;;  %v1620_v28 = vrot.slane %v1612_v29, 1  ;;  %v1633_v61 = vmul.f32 2.0, %v1612_v29 }
 0x7f3   : > { %v331_v51 = vmul.f32 0.11111111, %v319_v26  ;;  %v330_v54 = vsel %vm322_vm4, %v328_v60, %v310_v34  ;;  %v3551_v39 = vsel %vm276_vm1, %v1512_v18, %v1499_v19 }
 0x7f4   : > { %v1615_v33 = vsel %vm299_vm2, %v1613_v38, %v1614_v11  ;;  %v1616_v17 = vsel %vm299_vm2, %v1614_v11, %v1613_v38  ;;  %v332_v30 = vmul.f32 0.11111111, %v330_v54  ;;  %v1621_v37 = vsel %vm306_vm3, %v1619_v12, %v1620_v28 }
 0x7f5   : > { %v507_v2 = vmul.f32 %v331_v51, %v331_v51  ;;  %v691_v47 = vmul.f32 %v2816_v4, %v331_v51  ;;  %v695_v9 = vmul.f32 2.0, %v331_v51  ;;  %v1617_v62 = vadd.f32 %v1616_v17, %v3466_v21 }
 0x7f6   : > { %v1618_v53 = vadd.f32 %v1615_v33, %v1612_v29  ;;  %v508_v5 = vmul.f32 %v332_v30, %v332_v30  ;;  %v692_v38 = vmul.f32 %v2813_v25, %v332_v30  ;;  %v696_v34 = vmul.f32 2.0, %v332_v30 }
 0x7f7   : > { %v509_v7 = vsub.f32 %v3488_v49, %v507_v2  ;;  %v693_v23 = vsub.f32 %v689_v44, %v691_v47  ;;  %v697_v0 = vmul.f32 %v695_v9, %v2816_v4  ;;  %v707_v31 = vadd.f32 %v2832_v40, %v507_v2 }
 0x7f8   : > { %v1635_v21 = vrot.slane %v1633_v61, 7  ;;  %v1656_v26 = vpop.permute.xlu1 %1655  ;;  %v510_v60 = vsub.f32 %v3491_v55, %v508_v5  ;;  %v694_v11 = vsub.f32 %v3497_v42, %v692_v38  ;;  %v708_v19 = vadd.f32 %v2824_v58, %v508_v5 }
 0x7f9   : > { %v701_v51 = vmul.f32 2.0, %v693_v23  ;;  %v1652_v18 = vpop.permute.xlu0 %1651  ;;  %v698_v49 = vmul.f32 %v696_v34, %v2813_v25  ;;  %v699_v54 = vadd.f32 0.0001, %v697_v0  ;;  %v3821_v44 = vsub.f32 %v2828_v59, %v2832_v40  ;;  %v1658_v59 = vpop.permute.xlu2 %1657 }
 0x7fa   : > { %v1622_v4 = vsel %vm306_vm3, %v1620_v28, %v1619_v12  ;;  %v702_v17 = vmul.f32 2.0, %v694_v11  ;;  %v709_v30 = vadd.f32 0.0001, %v707_v31  ;;  %v3822_v55 = vsub.f32 %v2820_v57, %v2824_v58 }
 0x7fb   : > { %v711_v33 = vadd.f32 %v3821_v44, %v509_v7  ;;  %v703_v61 = vadd.f32 0.0009, %v701_v51  ;;  %v700_v2 = vadd.f32 0.0001, %v698_v49  ;;  %v710_v47 = vadd.f32 0.0001, %v708_v19 }
 0x7fc   : > { %v712_v42 = vadd.f32 %v3822_v55, %v510_v60  ;;  %v1623_v5 = vadd.f32 %v1621_v37, %v1617_v62  ;;  %v704_v25 = vadd.f32 0.0009, %v702_v17  ;;  %v1637_v40 = vadd.f32 %v1635_v21, %v1612_v29 }
 0x7fd   : > { %v713_v9 = vadd.f32 0.0009, %v711_v33  ;;  %v3569_v38 = vmul.f32 %v703_v61, %v699_v54  ;;  %v1624_v12 = vadd.f32 %v1622_v4, %v1618_v53  ;;  %v1521_v28 = vrot.slane %v3551_v39, 7 }
 0x7fe   : > { %v714_v23 = vadd.f32 0.0009, %v712_v42  ;;  %v1527_v34 = vrot.slane %v3551_v39, 1  ;;  %v3575_v0 = vmul.f32 %v704_v25, %v700_v2  ;;  %v1638_v58 = vperm.slane %v1637_v40, 7 }
 0x7ff   : > { %v3571_v7 = vmul.f32 %v713_v9, %v709_v30  ;;  %v1533_v62 = vmul.f32 2.0, %v3551_v39  ;;  %v1545_v37 = vadd.f32 %v1543_v20, %v3503_v50  ;;  %v1523_v31 = vsel %vm299_vm2, %v1521_v28, %v1522_v8 }
 0x800   : > { %v3577_v57 = vmul.f32 %v714_v23, %v710_v47  ;;  %v1524_v29 = vsel %vm299_vm2, %v1522_v8, %v1521_v28  ;;  %v1529_v53 = vsel %vm306_vm3, %v1527_v34, %v1528_v3  ;;  %v1681_v21 = vpop.permute.xlu1 %1680  ;;  %v3590_v60 = vadd.f32 0.0001, %v3429_v32 }
 0x801   : > { %v1631_v20 = vsel %vm311_vm5, %v1630_v27, %v1623_v5  ;;  %v3598_v11 = vadd.f32 0.0001, %v3421_v24  ;;  %v1640_v8 = vsel %vm322_vm4, %v1638_v58, %v1624_v12  ;;  %v1525_v51 = vadd.f32 %v1524_v29, %v3551_v39  ;;  %v1676_v27 = vpop.permute.xlu0 %1675  ;;  %v1696_v2 = vpop.permute.xlu2 %1695 }
 0x802   : > { %2123 = vrcp.f32 %v3577_v57  ;;  %v1526_v19 = vadd.f32 %v1523_v31, %v3503_v50  ;;  %v1530_v32 = vsel %vm306_vm3, %v1528_v3, %v1527_v34  ;;  %v1642_v49 = vmul.f32 0.11111111, %v1640_v8 }
 0x803   : > { %v1535_v54 = vrot.slane %v1533_v62, 1  ;;  %v3611_v24 = vmin.f32 %v1274_v13, 1.0  ;;  %v1546_v44 = vperm.slane %v1545_v37, 7  ;;  %v1531_v33 = vadd.f32 %v1529_v53, %v1525_v51 }
 0x804   : > { %v1532_v4 = vadd.f32 %v1530_v32, %v1526_v19  ;;  %v1659_v17 = vadd.f32 %v1656_v26, %v3530_v1  ;;  %v741_v61 = vand.u32 2147483647, %v3577_v57  ;;  %v1641_v50 = vmul.f32 0.11111111, %v1631_v20 }
 0x805   : > { %v1537_v30 = vadd.f32 %v1535_v54, %v3551_v39  ;;  %v1654_v3 = vadd.f32 %v1652_v18, %v3311_v63  ;;  %2125 = vrcp.f32 %v3571_v7  ;;  %v1646_v1 = vsub.f32 %v1642_v49, %v3417_v35 }
 0x806   : > { %v1548_v43 = vsel %vm322_vm4, %v1546_v44, %v1532_v4  ;;  %v1683_v13 = vsel %vm251_vm0, %v1676_v27, %v1659_v17  ;;  %vm737_vm14 = vweird.f32 %v3577_v57  ;;  %v743_v63 = vand.u32 2147483648, %v3577_v57 }
 0x807   : > { %v1538_v26 = vperm.slane %v1537_v30, 0  ;;  %v1550_v42 = vmul.f32 0.11111111, %v1548_v43  ;;  %v1660_v47 = vadd.f32 %v1658_v59, %v1654_v3  ;;  %v1703_v18 = vsel %vm276_vm1, %v1696_v2, %v1683_v13 }
 0x808   : > { %v2124_v55 = vpop.eup %2123  ;;  %vm3629_vm15 = vcmp.eq.f32.partialorder %v741_v61, 8.507059e+37  ;;  %v1645_v5 = vsub.f32 %v1641_v50, %v3425_v22  ;;  %v1717_v12 = vmul.f32 2.0, %v1703_v18  ;;  %v1705_v34 = vrot.slane %v1703_v18, 7 }
 0x809   : > { %v733_v39 = vmul.f32 %v2124_v55, %v3577_v57  ;;  %v1539_v35 = vsel %vm311_vm5, %v1538_v26, %v1531_v33  ;;  %v1554_v9 = vsub.f32 %v1550_v42, %v3413_v46  ;;  %v1701_v25 = vpop.permute.xlu1 %1700  ;;  %v1684_v40 = vsel %vm251_vm0, %v1681_v21, %v1660_v47 }
 0x80a   : > { %v1549_v59 = vmul.f32 0.11111111, %v1539_v35  ;;  %vm738_vm6 = vweird.f32 %v2124_v55  ;;  %v1704_v58 = vsel %vm276_vm1, %v1701_v25, %v1684_v40  ;;  %v1719_v31 = vrot.slane %v1717_v12, 1 }
 0x80b   : > { %v734_v23 = vsub.f32 1.0, %v733_v39  ;;  %v1756_v28 = vadd.f32 %v1646_v1, %v1554_v9  ;;  %v3641_v62 = vpop.eup %2125  ;;  %v1706_v22 = vrot.slane %v1704_v58, 7  ;;  %v1711_v53 = vrot.slane %v1703_v18, 1  ;;  %vm739_vm0 = vmor %vm737_vm14, %vm738_vm6  ;;  %v2134_v9 = vld [vmem:[%s2501_s7 + $0x8] sm:$0xff] }
 0x80c   : > { %v1553_v46 = vsub.f32 %v1549_v59, %v3423_v15  ;;  %v1712_v20 = vrot.slane %v1704_v58, 1  ;;  %v1725_v8 = vmul.f32 2.0, %v1704_v58  ;;  %v1721_v19 = vadd.f32 %v1719_v31, %v1703_v18 }
 0x80d   : > { %v735_v37 = vmul.f32 %v2124_v55, %v734_v23  ;;  %v1758_v29 = vadd.f32 0.0009, %v1756_v28  ;;  %v1707_v32 = vsel %vm299_vm2, %v1705_v34, %v1706_v22  ;;  %v744_v14 = vor.u32 1.1754944e-38, %v743_v63 }
 0x80e   : > { %v1755_v21 = vadd.f32 %v1645_v5, %v1553_v46  ;;  %v1708_v15 = vsel %vm299_vm2, %v1706_v22, %v1705_v34  ;;  %v1710_v54 = vadd.f32 %v1707_v32, %v1704_v58  ;;  %v1713_v4 = vsel %vm306_vm3, %v1711_v53, %v1712_v20  ;;  %v2135_v32 = vld [vmem:[%s2512_s25 + $0x18] sm:$0xff] }
 0x80f   : > { %v736_v51 = vadd.f32 %v2124_v55, %v735_v37  ;;  %v3649_v49 = vmul.f32 %v1758_v29, %v1754_v6  ;;  %v1709_v33 = vadd.f32 %v1708_v15, %v1703_v18  ;;  %v1722_v57 = vperm.slane %v1721_v19, 0  ;;  %v3674_v18 = vld [vmem:[%s2512_s25] sm:$0xff] }
 0x810   : > { %v1757_v44 = vadd.f32 0.0009, %v1755_v21  ;;  %v1727_v61 = vrot.slane %v1725_v8, 7  ;;  %v1714_v30 = vsel %vm306_vm3, %v1712_v20, %v1711_v53  ;;  %v728_v1 = vand.u32 2147483648, %v3571_v7 }
 0x811   : > { %v740_v27 = vsel %vm739_vm0, %v2124_v55, %v736_v51  ;;  %2127 = vrcp.f32 %v3649_v49  ;;  %v1715_v3 = vadd.f32 %v1713_v4, %v1709_v33  ;;  %v1716_v43 = vadd.f32 %v1714_v30, %v1710_v54 }
 0x812   : > { %v745_v17 = vsel %vm3629_vm15, %v744_v14, %v740_v27  ;;  %v3659_v50 = vmul.f32 %v1757_v44, %v1753_v36  ;;  %v1729_v13 = vadd.f32 %v1727_v61, %v1704_v58  ;;  %v726_v55 = vand.u32 2147483647, %v3571_v7  ;;  %v2136_v14 = vld [vmem:[%s2501_s7 + $0x18] sm:$0xff]  ;;  %v2138_v61 = vld [vmem:[%s2501_s7 + $0x10] sm:$0xff] }
 0x813   : > { %v746_v6 = vmul.f32 %v745_v17, %v3575_v0  ;;  %v718_v26 = vmul.f32 %v3641_v62, %v3571_v7  ;;  %v1723_v0 = vsel %vm311_vm5, %v1722_v57, %v1715_v3  ;;  %v1785_v47 = vand.u32 2147483647, %v3649_v49  ;;  %v2137_v57 = vld [vmem:[%s2512_s25 + $0x10] sm:$0xff] }
 0x814   : > { %2129 = vrcp.f32 %v3659_v50  ;;  %v1730_v36 = vperm.slane %v1729_v13, 7  ;;  %v1733_v2 = vmul.f32 0.11111111, %v1723_v0  ;;  %v1787_v39 = vand.u32 2147483648, %v3649_v49  ;;  %v2139_v13 = vld [vmem:[%s2512_s25 + $0x28] sm:$0xff] }
 0x815   : > { %v748_v42 = vsub.f32 1.0, %v746_v6  ;;  %vm722_vm1 = vweird.f32 %v3571_v7  ;;  %v233_v35 = vsub.f32 %v3674_v18, %v3677_v10  ;;  %v234_v45 = vsub.f32 %v3441_v41, %v2134_v9 }
 0x816   : > { %vm723_vm2 = vweird.f32 %v3641_v62  ;;  %v1732_v25 = vsel %vm322_vm4, %v1730_v36, %v1716_v43  ;;  %v1737_v23 = vsub.f32 %v1733_v2, %v3427_v16  ;;  %v1770_v59 = vand.u32 2147483647, %v3659_v50 }
 0x817   : > { %v750_v63 = vmul.f32 0.5, %v748_v42  ;;  %v2128_v5 = vpop.eup %2127  ;;  %vm1781_vm3 = vweird.f32 %v3649_v49  ;;  %v1734_v12 = vmul.f32 0.11111111, %v1732_v25  ;;  %v1772_v28 = vand.u32 2147483648, %v3659_v50  ;;  %vm724_vm8 = vmor %vm722_vm1, %vm723_vm2 }
 0x818   : > { %v1777_v34 = vmul.f32 %v2128_v5, %v3649_v49  ;;  %v1745_v58 = vmul.f32 2.0, %v1737_v23  ;;  %vm3691_vm5 = vcmp.eq.f32.partialorder %v1785_v47, 8.507059e+37  ;;  %v1788_v48 = vor.u32 1.1754944e-38, %v1787_v39  ;;  %v2141_v39 = vld [vmem:[%s2512_s25 + $0x20] sm:$0xff] }
 0x819   : > { %v752_v40 = vmax.f32 %v750_v63, 0.0  ;;  %v719_v37 = vsub.f32 1.0, %v718_v26  ;;  %v1738_v31 = vsub.f32 %v1734_v12, %v3419_v52  ;;  %v236_v29 = vand.u32 2147483647, %v234_v45  ;;  %v2142_v63 = vld [vmem:[%s2501_s7 + $0x20] sm:$0xff] }
 0x81a   : > { %v2130_v16 = vpop.eup %2129  ;;  %v1778_v22 = vsub.f32 1.0, %v1777_v34  ;;  %v1747_v20 = vadd.f32 0.0009, %v1745_v58  ;;  %vm1782_vm4 = vweird.f32 %v2128_v5  ;;  %vm3698_vm7 = vcmp.eq.f32.partialorder %v726_v55, 8.507059e+37  ;;  %v2140_v55 = vld [vmem:[%s2501_s7 + $0x28] sm:$0xff]  ;;  %s2217_s7 = sshra.s32 %s1827_s6, 4  ;;  %s2218_s7 = int_to_ptr.hbm [resolvable:$true] %s2217_s7 }
 0x81b   : > { %v754_v46 = vmin.f32 %v752_v40, 1.0  ;;  %v1762_v53 = vmul.f32 %v2130_v16, %v3659_v50  ;;  %v720_v8 = vmul.f32 %v3641_v62, %v719_v37  ;;  %v1746_v51 = vmul.f32 2.0, %v1738_v31  ;;  %vm1783_vm10 = vmor %vm1781_vm3, %vm1782_vm4  ;;  %s2219_s21 = scalar_lea.hbm %s2218_s7, 16  ;;  %p2224_p10 = scmp.lt.s32.totalorder %s2218_s7, %s3829_s27 }
 0x81c   : > { %v1779_v21 = vmul.f32 %v2128_v5, %v1778_v22  ;;  %v764_v15 = vsub.f32 %v2135_v32, %v2136_v14  ;;  %v1749_v54 = vmul.f32 %v1747_v20, %v3590_v60  ;;  %v729_v17 = vor.u32 1.1754944e-38, %v728_v1  ;;  %p2220_p1 = scmp.ne.s32.totalorder %s2218_s7, %s2219_s21  ;;  %p2225_p12 = scmp.lt.s32.totalorder %s2223_s23, %s2219_s21 }
 0x81d   : > { %v1763_v52 = vsub.f32 1.0, %v1762_v53  ;;  %v721_v27 = vadd.f32 %v3641_v62, %v720_v8  ;;  %v1278_v44 = vadd.f32 %v3611_v24, %v754_v46  ;;  %v1748_v33 = vadd.f32 0.0009, %v1746_v51 }
 0x81e   : > { %v1780_v4 = vadd.f32 %v2128_v5, %v1779_v21  ;;  %v763_v6 = vsub.f32 %v2137_v57, %v2138_v61  ;;  %vm1767_vm9 = vweird.f32 %v2130_v16  ;;  %v766_v24 = vand.u32 2147483647, %v764_v15  ;;  %p2221_p5 = pnand %p2220_p1, %p2469_p8  ;;  %p2226_p13 = por %p2225_p12, %p2224_p10 }
 0x81f   : > { %v1764_v30 = vmul.f32 %v2130_v16, %v1763_v52  ;;  %v725_v60 = vsel %vm724_vm8, %v3641_v62, %v721_v27  ;;  %v1750_v3 = vmul.f32 %v1748_v33, %v3598_v11  ;;  %v1286_v1 = vsub.f32 %v2139_v13, %v2140_v55 }
 0x820   : > { %v1784_v43 = vsel %vm1783_vm10, %v2128_v5, %v1780_v4  ;;  %v730_v7 = vsel %vm3698_vm7, %v729_v17, %v725_v60  ;;  %vm1766_vm11 = vweird.f32 %v3659_v50  ;;  %vm1771_vm13 = vcmp.eq.f32.partialorder %v1770_v59, 8.507059e+37  ;;  %p2222_p6 = pneg %p2221_p5 }
 0x821   : > { %v1765_v26 = vadd.f32 %v2130_v16, %v1764_v30  ;;  %v1789_v49 = vsel %vm3691_vm5, %v1788_v48, %v1784_v43  ;;  %v731_v62 = vmul.f32 %v730_v7, %v3569_v38  ;;  %vm1768_vm12 = vmor %vm1766_vm11, %vm1767_vm9  ;;  %v1773_v11 = vor.u32 1.1754944e-38, %v1772_v28 }
 0x822   : > { %v1790_v42 = vmul.f32 %v1789_v49, %v1750_v3  ;;  %v235_v0 = vand.u32 2147483647, %v233_v35  ;;  %v765_v47 = vand.u32 2147483647, %v763_v6  ;;  %v1285_v18 = vsub.f32 %v2141_v39, %v2142_v63  ;;  %p2227_p2 = pnand %p2226_p13, %p2222_p6 }
 0x823   : > { %v1769_v36 = vsel %vm1768_vm12, %v2130_v16, %v1765_v26  ;;  %v747_v2 = vsub.f32 1.0, %v731_v62  ;;  %v768_v9 = vadd.f32 %v766_v24, %v236_v29  ;;  %v1288_v45 = vand.u32 2147483647, %v1286_v1 }
 0x824   : > { %v1774_v10 = vsel %vm1771_vm13, %v1773_v11, %v1769_v36  ;;  %v1792_v50 = vsub.f32 1.0, %v1790_v42  ;;  %v1273_v38 = vmax.f32 %v3499_v56, 0.0  ;;  %v767_v40 = vadd.f32 %v765_v47, %v235_v0 }
 0x825   : > { %v1775_v5 = vmul.f32 %v1774_v10, %v1749_v54  ;;  %v749_v25 = vmul.f32 0.5, %v747_v2  ;;  %v1287_v12 = vand.u32 2147483647, %v1285_v18  ;;  %v1290_v34 = vadd.f32 %v1288_v45, %v768_v9 }
 0x826   : > { %v1794_v23 = vmul.f32 0.5, %v1792_v50  ;;  %v1275_v58 = vmin.f32 %v1273_v38, 1.0 }
 0x827   : > { %v1791_v59 = vsub.f32 1.0, %v1775_v5  ;;  %v751_v35 = vmax.f32 %v749_v25, 0.0  ;;  %v1289_v46 = vadd.f32 %v1287_v12, %v767_v40  ;;  %v1804_v22 = vmul.f32 0.05, %v1290_v34 }
 0x828   : > { %v1796_v28 = vmax.f32 %v1794_v23, 0.0 }
 0x829   : > { %v753_v41 = vmin.f32 %v751_v35, 1.0  ;;  %v1793_v48 = vmul.f32 0.5, %v1791_v59  ;;  %v1803_v8 = vmul.f32 0.05, %v1289_v46 }
 0x82a   : > { %v1798_v37 = vmin.f32 %v1796_v28, 1.0 }
 0x82b   : > { %v1277_v16 = vadd.f32 %v1275_v58, %v753_v41  ;;  %v1795_v31 = vmax.f32 %v1793_v48, 0.0 }
 0x82c   : > { %v1800_v56 = vadd.f32 %v1798_v37, %v1278_v44 }
 0x82d   : > { %v1797_v29 = vmin.f32 %v1795_v31, 1.0 }
 0x82e   : > { %v1802_v53 = vmul.f32 0.28333333, %v1800_v56 }
 0x82f   : > { %v1799_v20 = vadd.f32 %v1797_v29, %v1277_v16 }
 0x830   : > { %v1806_v51 = vadd.f32 %v1804_v22, %v1802_v53 }
 0x831   : > { %v1801_v21 = vmul.f32 0.28333333, %v1799_v20 }
 0x832   : > { %1808 = vst [vmem:[%s223_s24 + $0x8] sm:$0xff] %v1806_v51 }
 0x833   : > { %v1805_v19 = vadd.f32 %v1803_v8, %v1801_v21 }
 0x835   : > { %1807 = vst [vmem:[%s223_s24] sm:$0xff] %v1805_v19 }
 0x836   : > { %2230 = shalt.err (!%p2227_p2)
}
 0x837   : > { %s2337_s2 = smov 128   ;;  %s2338_s30 = smov 8  }
 0x838   : > { %1973 = dma.vmem_to_hbm [thread:$0]  (%p2469_p8), %s1825_s0, 256, %s1827_s6, %s1810_s9, %s2337_s2, %s2337_s2, %s2338_s30  }
 0x839 PF: > { %s3831_s3 = sld [smem:[#allocation11_spill]]  ;;  %p1987_p7 = scmp.ge.s32.totalorder %s2329_s19, 2 }
 0x83b   : > { %p1983_p3 = pnand %p1987_p7, %p2473_p9 }
 0x83d   : > { %p1984_p11 = pneg %p1983_p3 }
 0x83f   : > { %s1841_s26 = sand.u32 1, %s3831_s3  }
 0x840   : > { %s1842_s15 = scalar_lea.sflag [#allocation4], %s1841_s26 }
 0x841   : > { %2284 = dma.done.wait (%p1984_p11), %s1842_s15, 256  }
 0x842   : > { %2286 = vsyncadd (%p1984_p11), %s1842_s15, 4294967040  ;;  %s21_s19 = sadd.s32 1, %s2329_s19   ;;  %s3833_s22 = sld [smem:[#allocation12_spill]] }
 0x843   : > { %p18_p0 = scmp.ge.s32.totalorder %s21_s19, 18   ;;  %s3834_s24 = sld [smem:[#allocation13_spill]] }
 0x844   : > { %s3835_s9 = smov %s2293_s10  ;;  %s3836_s10 = smov %s2297_s11 }
 0x845   : > { %s3837_s11 = smov %s2486_s5  ;;  %s3838_s12 = smov %s2305_s13 }
 0x846   : > { %s3839_s13 = smov %s2309_s14  ;;  %s3840_s14 = smov %s2483_s4 }
 0x847   : > { %s3841_s15 = smov %s2321_s17  ;;  %s3842_s16 = smov %s2325_s18 }
 0x848   : > { %s3843_s17 = smov %s3833_s22  ;;  %20 = sbr.rel (!%p18_p0) target bundleno = 14 (0xe), region = 90 }
 0x849   : > { %s3844_s18 = smov %s3834_s24 }
 0x84d   :  { %1848 = vsyncpa [#allocation3], 1 }
 0x84e   :  { %1850 = vsyncpa [#allocation3 + $0x1], 1 }
 0x84f   :  { %1851 = vsyncpa [#allocation6], 1 }
 0x850   :  { %1853 = vsyncpa [#allocation6 + $0x1], 1 }
 0x851   :  { %1854 = vsyncpa [#allocation4], 1 }
 0x852   :  { %1856 = vsyncpa [#allocation4 + $0x1], 1 }

</bundles_post_ra>
